<compile_context>
chip_gen: v6e
topology: v6e:2x2x1
jax: 0.10.0
libtpu: 0.0.40
codegen_flags: <defaults>
</compile_context>

<pallas_src>
import functools

import numpy as np

import jax
import jax.numpy as jnp
from jax.experimental import pallas as pl
from jax.experimental.pallas import tpu as pltpu

EPS = 1e-5
WEIGHT_DTYPE = jnp.float32   # jnp.bfloat16 for max MXU throughput (see TODO)


# --------------------------------------------------------------------------
# In-kernel helpers (operate on values; traced inline into the fused kernel)
# --------------------------------------------------------------------------
def _pad2d(v, prows, pcols, val):
    """Pad a (H, W*C) value with `prows` rows top/bottom and `pcols` lanes
    left/right filled with `val` (zero for conv padding, -inf for max-pool)."""
    if pcols:
        side = jnp.full((v.shape[0], pcols), val, v.dtype)
        v = jnp.concatenate([side, v, side], axis=1)
    if prows:
        row = jnp.full((prows, v.shape[1]), val, v.dtype)
        v = jnp.concatenate([row, v, row], axis=0)
    return v


def _tap(xp, dh, stride, Ho):
    """Rows dh, dh+stride, ..., dh+stride*(Ho-1) of xp as an (Ho, K) value.
    stride==1 is a single contiguous slice; strided taps (only the three
    stride-2 block entries and the stem, Ho<=8) are built from static row
    slices + a sublane concat, which always lowers cleanly."""
    if stride == 1:
        return xp[dh:dh + Ho, :]
    if Ho == 1:
        return xp[dh:dh + 1, :]
    return jnp.concatenate(
        [xp[dh + stride * i:dh + stride * i + 1, :] for i in range(Ho)], axis=0)


def _conv(xp, w, b, *, kh, stride, Ho, relu):
    """Conv + folded-BN (+ReLU) as ONE matmul.

    xp : (Hp, Wp*Cin)      spatially padded input value
    w  : (kh*Wp*Cin, Wo*Cout)  stacked width-Toeplitz weight slab (BN folded)
    b  : (1, Wo*Cout)      folded BN bias
    lhs row i = [xp[s*i+0] | xp[s*i+1] | ... | xp[s*i+kh-1]]  ->  (Ho, kh*Wp*Cin)
    """
    taps = [_tap(xp, dh, stride, Ho) for dh in range(kh)]
    lhs = taps[0] if kh == 1 else jnp.concatenate(taps, axis=1)
    y = jnp.dot(lhs.astype(w.dtype), w, preferred_element_type=jnp.float32)
    y = y + b
    return jnp.maximum(y, 0.0) if relu else y


def _maxpool3(y, H, W, C):
    """3x3 / stride-1 / pad-1 max-pool on a (H, W*C) value (fused epilogue)."""
    yp = _pad2d(y, 1, C, -jnp.inf)                 # (H+2, (W+2)*C)
    m = None
    for dh in range(3):
        for dw in range(3):
            v = yp[dh:dh + H, dw * C:dw * C + W * C]
            m = v if m is None else jnp.maximum(m, v)
    return m


# --------------------------------------------------------------------------
# The fused encoder kernel (one grid step == one batch element, end to end)
# --------------------------------------------------------------------------
def _make_encoder_kernel(meta):
    stem = meta["stem"]
    blocks = meta["blocks"]

    def kernel(*refs):
        x_ref, o_ref = refs[0], refs[-1]
        wit = iter(refs[1:-1])

        # --- stem: 7x7 / stride-2 / pad-3 conv + folded BN + ReLU ----------
        xp = _pad2d(x_ref[...], stem["pad"], stem["pad"] * stem["cin"], 0.0)
        w, b = next(wit)[...], next(wit)[...]
        y = _conv(xp, w, b, kh=stem["kh"], stride=stem["s"],
                  Ho=stem["Ho"], relu=True)

        # --- 3x3 / stride-1 / pad-1 max-pool (fused, stays in VMEM) --------
        y = _maxpool3(y, stem["Ho"], stem["Wo"], stem["cout"])

        # --- residual blocks ------------------------------------------------
        for bp in blocks:
            s, Ho = bp["s"], bp["Ho"]
            xpad = _pad2d(y, 1, bp["cin"], 0.0)
            w1, b1 = next(wit)[...], next(wit)[...]
            w2, b2 = next(wit)[...], next(wit)[...]
            y1 = _conv(xpad, w1, b1, kh=3, stride=s, Ho=Ho, relu=True)
            y1p = _pad2d(y1, 1, bp["cout"], 0.0)
            y2 = _conv(y1p, w2, b2, kh=3, stride=1, Ho=Ho, relu=False)
            if bp["has_ds"]:
                wd, bd = next(wit)[...], next(wit)[...]
                # 1x1 / stride-s downsample acts on the UNPADDED block input.
                ident = _conv(y, wd, bd, kh=1, stride=s, Ho=Ho, relu=False)
            else:
                ident = y
            y = jnp.maximum(y2 + ident, 0.0)

        # trace-time sanity check: every weight ref was consumed exactly once
        assert next(wit, None) is None, "weight ref ordering mismatch"
        o_ref[...] = y

    return kernel


def modern_encoder_forward(packed, x_nchw):
    stem = packed["stem"]
    B = x_nchw.shape[0]
    H, W, Cin = stem["H"], stem["W"], stem["cin"]

    # Only wrapper-side data movement: one-time NCHW -> NHWC of the raw input.
    x = jnp.transpose(x_nchw, (0, 2, 3, 1)).astype(jnp.float32)
    x = x.reshape(B, H, W * Cin)

    inputs = [x]
    in_specs = [pl.BlockSpec((None, H, W * Cin), lambda b: (b, 0, 0))]

    def _add(arr):
        inputs.append(arr)
        # Grid-invariant weight: full-array block, constant index map, so the
        # pipeline does not re-DMA it between the B grid steps.
        in_specs.append(pl.BlockSpec(arr.shape, lambda b: (0, 0)))

    _add(stem["wt"]); _add(stem["bias"])
    for bp in packed["blocks"]:
        _add(bp["wt1"]); _add(bp["b1"]); _add(bp["wt2"]); _add(bp["b2"])
        if bp["has_ds"]:
            _add(bp["wtd"]); _add(bp["bd"])

    last = packed["blocks"][-1]
    Hf, Wf, Cf = last["Ho"], last["Wo"], last["cout"]
    out = pl.pallas_call(
        _make_encoder_kernel(packed),
        out_shape=jax.ShapeDtypeStruct((B, Hf, Wf * Cf), jnp.float32),
        grid=(B,),
        in_specs=in_specs,
        out_specs=pl.BlockSpec((None, Hf, Wf * Cf), lambda b: (b, 0, 0)),
        compiler_params=pltpu.CompilerParams(
            dimension_semantics=("parallel",)),   # v7x: one batch elem per TC
    )(*inputs)
    return jnp.transpose(out.reshape(B, Hf, Wf, Cf), (0, 3, 1, 2))   # -> NCHW


# --------------------------------------------------------------------------
# Weight preprocessing: fold BN, build tap-stacked width-Toeplitz slabs
# --------------------------------------------------------------------------
def _pack_conv(conv_bn, *, Wp, Wo, stride):
    """Fold BN into the conv weights and build a single [kh*Wp*Cin, Wo*Cout]
    matrix so that the concatenation of the kh shifted padded input rows
    multiplied by it yields one flattened output row.  (Width-Toeplitz:
    ~Wp/kw zero inflation; acceptable at these resolutions, switch to
    dense [kw*Cin, Cout] + lane rolls if W grows.)"""
    w, gamma, beta, mean, var = [np.asarray(t, np.float32) for t in conv_bn]
    scale = gamma / np.sqrt(var + EPS)
    wf = w * scale[:, None, None, None]                    # (Cout, Cin, kh, kw)
    bias = beta - mean * scale
    Cout, Cin, kh, kw = wf.shape
    T = np.zeros((kh, Wp, Cin, Wo, Cout), np.float32)
    for dh in range(kh):
        for wo in range(Wo):
            for dw in range(kw):
                T[dh, stride * wo + dw, :, wo, :] = wf[:, :, dh, dw].T
    wt = jnp.asarray(T.reshape(kh * Wp * Cin, Wo * Cout), WEIGHT_DTYPE)
    b = jnp.asarray(np.tile(bias, Wo)[None, :], np.float32)
    return wt, b


def prepare_packed(params, in_hw=(16, 16), in_channels=3):
    H, W = in_hw
    # stem: 7x7, stride 2, pad 3
    k, s, p = 7, 2, 3
    Cout = np.asarray(params["stem"][0]).shape[0]
    Ho = (H + 2 * p - k) // s + 1
    Wo = (W + 2 * p - k) // s + 1
    wt, bias = _pack_conv(params["stem"], Wp=W + 2 * p, Wo=Wo, stride=s)
    packed = {"stem": dict(wt=wt, bias=bias, kh=k, s=s, pad=p,
                           H=H, W=W, cin=in_channels, Ho=Ho, Wo=Wo, cout=Cout)}
    H, W, C = Ho, Wo, Cout                    # 3x3/s1/p1 max-pool keeps H, W

    blocks = []
    for blist, stride in params["stages"]:
        for bi, blk in enumerate(blist):
            s = stride if bi == 0 else 1
            Cout = np.asarray(blk["conv1"][0]).shape[0]
            Ho = (H + 2 - 3) // s + 1
            Wo = (W + 2 - 3) // s + 1
            wt1, b1 = _pack_conv(blk["conv1"], Wp=W + 2, Wo=Wo, stride=s)
            wt2, b2 = _pack_conv(blk["conv2"], Wp=Wo + 2, Wo=Wo, stride=1)
            entry = dict(wt1=wt1, b1=b1, wt2=wt2, b2=b2, s=s,
                         cin=C, cout=Cout, H=H, W=W, Ho=Ho, Wo=Wo,
                         has_ds=blk["downsample"] is not None)
            if entry["has_ds"]:
                # 1x1/stride-s conv on the UNPADDED block input (Wp = W).
                wtd, bd = _pack_conv(blk["downsample"], Wp=W, Wo=Wo, stride=s)
                entry["wtd"], entry["bd"] = wtd, bd
            blocks.append(entry)
            H, W, C = Ho, Wo, Cout
    packed["blocks"] = blocks
    return packed


# --------------------------------------------------------------------------
# Parameter init (deterministic, synthetic) mirroring the PyTorch module
# --------------------------------------------------------------------------
def _conv_bn_params(key, cin, cout, k):
    w = jax.random.normal(key, (cout, cin, k, k), jnp.float32)
    w = w * (1.0 / (k * k * cin) ** 0.5)
    gamma = jnp.ones((cout,), jnp.float32)
    beta = jnp.zeros((cout,), jnp.float32)
    mean = jnp.zeros((cout,), jnp.float32)   # fresh BN running stats (eval mode)
    var = jnp.ones((cout,), jnp.float32)
    return (w, gamma, beta, mean, var)


def init_encoder(key, layers=(2, 2, 2, 2), base_channels=8, in_channels=3):
    keys = iter(jax.random.split(key, 128))
    params = {"stem": _conv_bn_params(next(keys), in_channels, base_channels, 7)}
    in_ch = base_channels
    stages = []
    for mult, stride, nblocks in zip((1, 2, 4, 8), (1, 2, 2, 2), layers):
        out_ch = base_channels * mult
        blocks = []
        for b in range(nblocks):
            s = stride if b == 0 else 1
            blk = {
                "conv1": _conv_bn_params(next(keys), in_ch, out_ch, 3),
                "conv2": _conv_bn_params(next(keys), out_ch, out_ch, 3),
                "downsample": (_conv_bn_params(next(keys), in_ch, out_ch, 1)
                               if (s != 1 or in_ch != out_ch) else None),
            }
            blocks.append(blk)
            in_ch = out_ch
        stages.append((blocks, stride))
    params["stages"] = stages
    return params


# --------------------------------------------------------------------------
# Pure-JAX reference (correctness check only)
# --------------------------------------------------------------------------
def _ref_conv_bn(x, params, stride, pad, relu, residual=None):
    w, gamma, beta, mean, var = params
    y = jax.lax.conv_general_dilated(
        x, w, window_strides=(stride, stride),
        padding=((pad, pad), (pad, pad)),
        dimension_numbers=("NHWC", "OIHW", "NHWC"),
        precision=jax.lax.Precision.HIGHEST)
    scale = gamma / jnp.sqrt(var + EPS)
    y = y * scale + (beta - mean * scale)
    if residual is not None:
        y = y + residual
    if relu:
        y = jnp.maximum(y, 0.0)
    return y


def _ref_forward(params, x_nchw):
    x = jnp.transpose(x_nchw, (0, 2, 3, 1)).astype(jnp.float32)
    x = _ref_conv_bn(x, params["stem"], 2, 3, True)
    x = jax.lax.reduce_window(x, -jnp.inf, jax.lax.max,
                              (1, 3, 3, 1), (1, 1, 1, 1),
                              ((0, 0), (1, 1), (1, 1), (0, 0)))
    for blocks, stride in params["stages"]:
        for bi, blk in enumerate(blocks):
            s = stride if bi == 0 else 1
            out = _ref_conv_bn(x, blk["conv1"], s, 1, True)
            ident = (_ref_conv_bn(x, blk["downsample"], s, 0, False)
                     if blk["downsample"] is not None else x)
            x = _ref_conv_bn(out, blk["conv2"], 1, 1, True, residual=ident)
    return jnp.transpose(x, (0, 3, 1, 2))


# --------------------------------------------------------------------------
if __name__ == "__main__":
    key = jax.random.PRNGKey(0)
    kx, kp = jax.random.split(key)

    # Small shapes consistent with the module: batch=2, in_channels=3, 16x16,
    # base_channels=8, layers=[2,2,2,2]  ->  output (2, 64, 1, 1).
    x = jax.random.normal(kx, (2, 3, 16, 16), jnp.float32)
    raw_params = init_encoder(kp, layers=(2, 2, 2, 2), base_channels=8,
                              in_channels=3)
    packed = prepare_packed(raw_params, in_hw=(16, 16), in_channels=3)

    fwd = jax.jit(functools.partial(modern_encoder_forward, packed))
    y = jax.block_until_ready(fwd(x))

    assert y.shape == (2, 64, 1, 1), y.shape
    y_ref = jax.block_until_ready(_ref_forward(raw_params, x))
    assert bool(jnp.allclose(y, y_ref, rtol=1e-3, atol=1e-3)), (
        "mismatch vs reference, max abs diff = "
        f"{float(jnp.max(jnp.abs(y - y_ref)))}")

    print("KERNEL_OK")
</pallas_src>

<mosaic_0001>
module attributes {stable_mosaic.version = 11 : i64} {
  func.func @kernel(%arg0: i32, %arg1: memref<1x16x48xf32, #tpu.memory_space<vmem>>, %arg2: memref<462x64xf32, #tpu.memory_space<vmem>>, %arg3: memref<1x64xf32, #tpu.memory_space<vmem>>, %arg4: memref<240x64xf32, #tpu.memory_space<vmem>>, %arg5: memref<1x64xf32, #tpu.memory_space<vmem>>, %arg6: memref<240x64xf32, #tpu.memory_space<vmem>>, %arg7: memref<1x64xf32, #tpu.memory_space<vmem>>, %arg8: memref<240x64xf32, #tpu.memory_space<vmem>>, %arg9: memref<1x64xf32, #tpu.memory_space<vmem>>, %arg10: memref<240x64xf32, #tpu.memory_space<vmem>>, %arg11: memref<1x64xf32, #tpu.memory_space<vmem>>, %arg12: memref<240x64xf32, #tpu.memory_space<vmem>>, %arg13: memref<1x64xf32, #tpu.memory_space<vmem>>, %arg14: memref<288x64xf32, #tpu.memory_space<vmem>>, %arg15: memref<1x64xf32, #tpu.memory_space<vmem>>, %arg16: memref<64x64xf32, #tpu.memory_space<vmem>>, %arg17: memref<1x64xf32, #tpu.memory_space<vmem>>, %arg18: memref<288x64xf32, #tpu.memory_space<vmem>>, %arg19: memref<1x64xf32, #tpu.memory_space<vmem>>, %arg20: memref<288x64xf32, #tpu.memory_space<vmem>>, %arg21: memref<1x64xf32, #tpu.memory_space<vmem>>, %arg22: memref<288x64xf32, #tpu.memory_space<vmem>>, %arg23: memref<1x64xf32, #tpu.memory_space<vmem>>, %arg24: memref<384x64xf32, #tpu.memory_space<vmem>>, %arg25: memref<1x64xf32, #tpu.memory_space<vmem>>, %arg26: memref<64x64xf32, #tpu.memory_space<vmem>>, %arg27: memref<1x64xf32, #tpu.memory_space<vmem>>, %arg28: memref<384x64xf32, #tpu.memory_space<vmem>>, %arg29: memref<1x64xf32, #tpu.memory_space<vmem>>, %arg30: memref<384x64xf32, #tpu.memory_space<vmem>>, %arg31: memref<1x64xf32, #tpu.memory_space<vmem>>, %arg32: memref<384x64xf32, #tpu.memory_space<vmem>>, %arg33: memref<1x64xf32, #tpu.memory_space<vmem>>, %arg34: memref<576x64xf32, #tpu.memory_space<vmem>>, %arg35: memref<1x64xf32, #tpu.memory_space<vmem>>, %arg36: memref<64x64xf32, #tpu.memory_space<vmem>>, %arg37: memref<1x64xf32, #tpu.memory_space<vmem>>, %arg38: memref<576x64xf32, #tpu.memory_space<vmem>>, %arg39: memref<1x64xf32, #tpu.memory_space<vmem>>, %arg40: memref<576x64xf32, #tpu.memory_space<vmem>>, %arg41: memref<1x64xf32, #tpu.memory_space<vmem>>, %arg42: memref<1x1x64xf32, #tpu.memory_space<vmem>>) attributes {dimension_semantics = [#tpu.dimension_semantics<parallel>], iteration_bounds = array<i64: 2>, scalar_prefetch = 0 : i64, scratch_operands = 0 : i64, tpu.core_type = #tpu.core_type<tc>, window_params = [{transform_indices = @transform_0, window_bounds = array<i64: 1, 16, 48>}, {pipeline_mode = #tpu.pipeline_mode<synchronous>, transform_indices = @transform_1, window_bounds = array<i64: 462, 64>}, {pipeline_mode = #tpu.pipeline_mode<synchronous>, transform_indices = @transform_2, window_bounds = array<i64: 1, 64>}, {pipeline_mode = #tpu.pipeline_mode<synchronous>, transform_indices = @transform_3, window_bounds = array<i64: 240, 64>}, {pipeline_mode = #tpu.pipeline_mode<synchronous>, transform_indices = @transform_4, window_bounds = array<i64: 1, 64>}, {pipeline_mode = #tpu.pipeline_mode<synchronous>, transform_indices = @transform_5, window_bounds = array<i64: 240, 64>}, {pipeline_mode = #tpu.pipeline_mode<synchronous>, transform_indices = @transform_6, window_bounds = array<i64: 1, 64>}, {pipeline_mode = #tpu.pipeline_mode<synchronous>, transform_indices = @transform_7, window_bounds = array<i64: 240, 64>}, {pipeline_mode = #tpu.pipeline_mode<synchronous>, transform_indices = @transform_8, window_bounds = array<i64: 1, 64>}, {pipeline_mode = #tpu.pipeline_mode<synchronous>, transform_indices = @transform_9, window_bounds = array<i64: 240, 64>}, {pipeline_mode = #tpu.pipeline_mode<synchronous>, transform_indices = @transform_10, window_bounds = array<i64: 1, 64>}, {pipeline_mode = #tpu.pipeline_mode<synchronous>, transform_indices = @transform_11, window_bounds = array<i64: 240, 64>}, {pipeline_mode = #tpu.pipeline_mode<synchronous>, transform_indices = @transform_12, window_bounds = array<i64: 1, 64>}, {pipeline_mode = #tpu.pipeline_mode<synchronous>, transform_indices = @transform_13, window_bounds = array<i64: 288, 64>}, {pipeline_mode = #tpu.pipeline_mode<synchronous>, transform_indices = @transform_14, window_bounds = array<i64: 1, 64>}, {pipeline_mode = #tpu.pipeline_mode<synchronous>, transform_indices = @transform_15, window_bounds = array<i64: 64, 64>}, {pipeline_mode = #tpu.pipeline_mode<synchronous>, transform_indices = @transform_16, window_bounds = array<i64: 1, 64>}, {pipeline_mode = #tpu.pipeline_mode<synchronous>, transform_indices = @transform_17, window_bounds = array<i64: 288, 64>}, {pipeline_mode = #tpu.pipeline_mode<synchronous>, transform_indices = @transform_18, window_bounds = array<i64: 1, 64>}, {pipeline_mode = #tpu.pipeline_mode<synchronous>, transform_indices = @transform_19, window_bounds = array<i64: 288, 64>}, {pipeline_mode = #tpu.pipeline_mode<synchronous>, transform_indices = @transform_20, window_bounds = array<i64: 1, 64>}, {pipeline_mode = #tpu.pipeline_mode<synchronous>, transform_indices = @transform_21, window_bounds = array<i64: 288, 64>}, {pipeline_mode = #tpu.pipeline_mode<synchronous>, transform_indices = @transform_22, window_bounds = array<i64: 1, 64>}, {pipeline_mode = #tpu.pipeline_mode<synchronous>, transform_indices = @transform_23, window_bounds = array<i64: 384, 64>}, {pipeline_mode = #tpu.pipeline_mode<synchronous>, transform_indices = @transform_24, window_bounds = array<i64: 1, 64>}, {pipeline_mode = #tpu.pipeline_mode<synchronous>, transform_indices = @transform_25, window_bounds = array<i64: 64, 64>}, {pipeline_mode = #tpu.pipeline_mode<synchronous>, transform_indices = @transform_26, window_bounds = array<i64: 1, 64>}, {pipeline_mode = #tpu.pipeline_mode<synchronous>, transform_indices = @transform_27, window_bounds = array<i64: 384, 64>}, {pipeline_mode = #tpu.pipeline_mode<synchronous>, transform_indices = @transform_28, window_bounds = array<i64: 1, 64>}, {pipeline_mode = #tpu.pipeline_mode<synchronous>, transform_indices = @transform_29, window_bounds = array<i64: 384, 64>}, {pipeline_mode = #tpu.pipeline_mode<synchronous>, transform_indices = @transform_30, window_bounds = array<i64: 1, 64>}, {pipeline_mode = #tpu.pipeline_mode<synchronous>, transform_indices = @transform_31, window_bounds = array<i64: 384, 64>}, {pipeline_mode = #tpu.pipeline_mode<synchronous>, transform_indices = @transform_32, window_bounds = array<i64: 1, 64>}, {pipeline_mode = #tpu.pipeline_mode<synchronous>, transform_indices = @transform_33, window_bounds = array<i64: 576, 64>}, {pipeline_mode = #tpu.pipeline_mode<synchronous>, transform_indices = @transform_34, window_bounds = array<i64: 1, 64>}, {pipeline_mode = #tpu.pipeline_mode<synchronous>, transform_indices = @transform_35, window_bounds = array<i64: 64, 64>}, {pipeline_mode = #tpu.pipeline_mode<synchronous>, transform_indices = @transform_36, window_bounds = array<i64: 1, 64>}, {pipeline_mode = #tpu.pipeline_mode<synchronous>, transform_indices = @transform_37, window_bounds = array<i64: 576, 64>}, {pipeline_mode = #tpu.pipeline_mode<synchronous>, transform_indices = @transform_38, window_bounds = array<i64: 1, 64>}, {pipeline_mode = #tpu.pipeline_mode<synchronous>, transform_indices = @transform_39, window_bounds = array<i64: 576, 64>}, {pipeline_mode = #tpu.pipeline_mode<synchronous>, transform_indices = @transform_40, window_bounds = array<i64: 1, 64>}, {transform_indices = @transform_41, window_bounds = array<i64: 1, 1, 64>}]} {
    %c0 = arith.constant 0 : index
    %c0_0 = arith.constant 0 : index
    %c0_1 = arith.constant 0 : index
    %0 = vector.load %arg1[%c0, %c0_0, %c0_1] : memref<1x16x48xf32, #tpu.memory_space<vmem>>, vector<1x16x48xf32>
    %1 = vector.shape_cast %0 : vector<1x16x48xf32> to vector<16x48xf32>
    %cst = arith.constant 0.000000e+00 : f32
    %2 = vector.broadcast %cst : f32 to vector<16x9xf32>
    %3 = tpu.concatenate %2, %1, %2 in 1 : vector<16x9xf32>, vector<16x48xf32>, vector<16x9xf32> -> vector<16x66xf32>
    %cst_2 = arith.constant 0.000000e+00 : f32
    %4 = vector.broadcast %cst_2 : f32 to vector<3x66xf32>
    %5 = tpu.concatenate %4, %3, %4 in 0 : vector<3x66xf32>, vector<16x66xf32>, vector<3x66xf32> -> vector<22x66xf32>
    %c0_3 = arith.constant 0 : index
    %c0_4 = arith.constant 0 : index
    %6 = vector.load %arg2[%c0_3, %c0_4] : memref<462x64xf32, #tpu.memory_space<vmem>>, vector<462x64xf32>
    %c0_5 = arith.constant 0 : index
    %c0_6 = arith.constant 0 : index
    %7 = vector.load %arg3[%c0_5, %c0_6] : memref<1x64xf32, #tpu.memory_space<vmem>>, vector<1x64xf32>
    %8 = vector.extract_strided_slice %5 {offsets = [0, 0], sizes = [1, 66], strides = [1, 1]} : vector<22x66xf32> to vector<1x66xf32>
    %9 = vector.extract_strided_slice %5 {offsets = [2, 0], sizes = [1, 66], strides = [1, 1]} : vector<22x66xf32> to vector<1x66xf32>
    %10 = vector.extract_strided_slice %5 {offsets = [4, 0], sizes = [1, 66], strides = [1, 1]} : vector<22x66xf32> to vector<1x66xf32>
    %11 = vector.extract_strided_slice %5 {offsets = [6, 0], sizes = [1, 66], strides = [1, 1]} : vector<22x66xf32> to vector<1x66xf32>
    %12 = vector.extract_strided_slice %5 {offsets = [8, 0], sizes = [1, 66], strides = [1, 1]} : vector<22x66xf32> to vector<1x66xf32>
    %13 = vector.extract_strided_slice %5 {offsets = [10, 0], sizes = [1, 66], strides = [1, 1]} : vector<22x66xf32> to vector<1x66xf32>
    %14 = vector.extract_strided_slice %5 {offsets = [12, 0], sizes = [1, 66], strides = [1, 1]} : vector<22x66xf32> to vector<1x66xf32>
    %15 = vector.extract_strided_slice %5 {offsets = [14, 0], sizes = [1, 66], strides = [1, 1]} : vector<22x66xf32> to vector<1x66xf32>
    %16 = tpu.concatenate %8, %9, %10, %11, %12, %13, %14, %15 in 0 : vector<1x66xf32>, vector<1x66xf32>, vector<1x66xf32>, vector<1x66xf32>, vector<1x66xf32>, vector<1x66xf32>, vector<1x66xf32>, vector<1x66xf32> -> vector<8x66xf32>
    %17 = vector.extract_strided_slice %5 {offsets = [1, 0], sizes = [1, 66], strides = [1, 1]} : vector<22x66xf32> to vector<1x66xf32>
    %18 = vector.extract_strided_slice %5 {offsets = [3, 0], sizes = [1, 66], strides = [1, 1]} : vector<22x66xf32> to vector<1x66xf32>
    %19 = vector.extract_strided_slice %5 {offsets = [5, 0], sizes = [1, 66], strides = [1, 1]} : vector<22x66xf32> to vector<1x66xf32>
    %20 = vector.extract_strided_slice %5 {offsets = [7, 0], sizes = [1, 66], strides = [1, 1]} : vector<22x66xf32> to vector<1x66xf32>
    %21 = vector.extract_strided_slice %5 {offsets = [9, 0], sizes = [1, 66], strides = [1, 1]} : vector<22x66xf32> to vector<1x66xf32>
    %22 = vector.extract_strided_slice %5 {offsets = [11, 0], sizes = [1, 66], strides = [1, 1]} : vector<22x66xf32> to vector<1x66xf32>
    %23 = vector.extract_strided_slice %5 {offsets = [13, 0], sizes = [1, 66], strides = [1, 1]} : vector<22x66xf32> to vector<1x66xf32>
    %24 = vector.extract_strided_slice %5 {offsets = [15, 0], sizes = [1, 66], strides = [1, 1]} : vector<22x66xf32> to vector<1x66xf32>
    %25 = tpu.concatenate %17, %18, %19, %20, %21, %22, %23, %24 in 0 : vector<1x66xf32>, vector<1x66xf32>, vector<1x66xf32>, vector<1x66xf32>, vector<1x66xf32>, vector<1x66xf32>, vector<1x66xf32>, vector<1x66xf32> -> vector<8x66xf32>
    %26 = vector.extract_strided_slice %5 {offsets = [2, 0], sizes = [1, 66], strides = [1, 1]} : vector<22x66xf32> to vector<1x66xf32>
    %27 = vector.extract_strided_slice %5 {offsets = [4, 0], sizes = [1, 66], strides = [1, 1]} : vector<22x66xf32> to vector<1x66xf32>
    %28 = vector.extract_strided_slice %5 {offsets = [6, 0], sizes = [1, 66], strides = [1, 1]} : vector<22x66xf32> to vector<1x66xf32>
    %29 = vector.extract_strided_slice %5 {offsets = [8, 0], sizes = [1, 66], strides = [1, 1]} : vector<22x66xf32> to vector<1x66xf32>
    %30 = vector.extract_strided_slice %5 {offsets = [10, 0], sizes = [1, 66], strides = [1, 1]} : vector<22x66xf32> to vector<1x66xf32>
    %31 = vector.extract_strided_slice %5 {offsets = [12, 0], sizes = [1, 66], strides = [1, 1]} : vector<22x66xf32> to vector<1x66xf32>
    %32 = vector.extract_strided_slice %5 {offsets = [14, 0], sizes = [1, 66], strides = [1, 1]} : vector<22x66xf32> to vector<1x66xf32>
    %33 = vector.extract_strided_slice %5 {offsets = [16, 0], sizes = [1, 66], strides = [1, 1]} : vector<22x66xf32> to vector<1x66xf32>
    %34 = tpu.concatenate %26, %27, %28, %29, %30, %31, %32, %33 in 0 : vector<1x66xf32>, vector<1x66xf32>, vector<1x66xf32>, vector<1x66xf32>, vector<1x66xf32>, vector<1x66xf32>, vector<1x66xf32>, vector<1x66xf32> -> vector<8x66xf32>
    %35 = vector.extract_strided_slice %5 {offsets = [3, 0], sizes = [1, 66], strides = [1, 1]} : vector<22x66xf32> to vector<1x66xf32>
    %36 = vector.extract_strided_slice %5 {offsets = [5, 0], sizes = [1, 66], strides = [1, 1]} : vector<22x66xf32> to vector<1x66xf32>
    %37 = vector.extract_strided_slice %5 {offsets = [7, 0], sizes = [1, 66], strides = [1, 1]} : vector<22x66xf32> to vector<1x66xf32>
    %38 = vector.extract_strided_slice %5 {offsets = [9, 0], sizes = [1, 66], strides = [1, 1]} : vector<22x66xf32> to vector<1x66xf32>
    %39 = vector.extract_strided_slice %5 {offsets = [11, 0], sizes = [1, 66], strides = [1, 1]} : vector<22x66xf32> to vector<1x66xf32>
    %40 = vector.extract_strided_slice %5 {offsets = [13, 0], sizes = [1, 66], strides = [1, 1]} : vector<22x66xf32> to vector<1x66xf32>
    %41 = vector.extract_strided_slice %5 {offsets = [15, 0], sizes = [1, 66], strides = [1, 1]} : vector<22x66xf32> to vector<1x66xf32>
    %42 = vector.extract_strided_slice %5 {offsets = [17, 0], sizes = [1, 66], strides = [1, 1]} : vector<22x66xf32> to vector<1x66xf32>
    %43 = tpu.concatenate %35, %36, %37, %38, %39, %40, %41, %42 in 0 : vector<1x66xf32>, vector<1x66xf32>, vector<1x66xf32>, vector<1x66xf32>, vector<1x66xf32>, vector<1x66xf32>, vector<1x66xf32>, vector<1x66xf32> -> vector<8x66xf32>
    %44 = vector.extract_strided_slice %5 {offsets = [4, 0], sizes = [1, 66], strides = [1, 1]} : vector<22x66xf32> to vector<1x66xf32>
    %45 = vector.extract_strided_slice %5 {offsets = [6, 0], sizes = [1, 66], strides = [1, 1]} : vector<22x66xf32> to vector<1x66xf32>
    %46 = vector.extract_strided_slice %5 {offsets = [8, 0], sizes = [1, 66], strides = [1, 1]} : vector<22x66xf32> to vector<1x66xf32>
    %47 = vector.extract_strided_slice %5 {offsets = [10, 0], sizes = [1, 66], strides = [1, 1]} : vector<22x66xf32> to vector<1x66xf32>
    %48 = vector.extract_strided_slice %5 {offsets = [12, 0], sizes = [1, 66], strides = [1, 1]} : vector<22x66xf32> to vector<1x66xf32>
    %49 = vector.extract_strided_slice %5 {offsets = [14, 0], sizes = [1, 66], strides = [1, 1]} : vector<22x66xf32> to vector<1x66xf32>
    %50 = vector.extract_strided_slice %5 {offsets = [16, 0], sizes = [1, 66], strides = [1, 1]} : vector<22x66xf32> to vector<1x66xf32>
    %51 = vector.extract_strided_slice %5 {offsets = [18, 0], sizes = [1, 66], strides = [1, 1]} : vector<22x66xf32> to vector<1x66xf32>
    %52 = tpu.concatenate %44, %45, %46, %47, %48, %49, %50, %51 in 0 : vector<1x66xf32>, vector<1x66xf32>, vector<1x66xf32>, vector<1x66xf32>, vector<1x66xf32>, vector<1x66xf32>, vector<1x66xf32>, vector<1x66xf32> -> vector<8x66xf32>
    %53 = vector.extract_strided_slice %5 {offsets = [5, 0], sizes = [1, 66], strides = [1, 1]} : vector<22x66xf32> to vector<1x66xf32>
    %54 = vector.extract_strided_slice %5 {offsets = [7, 0], sizes = [1, 66], strides = [1, 1]} : vector<22x66xf32> to vector<1x66xf32>
    %55 = vector.extract_strided_slice %5 {offsets = [9, 0], sizes = [1, 66], strides = [1, 1]} : vector<22x66xf32> to vector<1x66xf32>
    %56 = vector.extract_strided_slice %5 {offsets = [11, 0], sizes = [1, 66], strides = [1, 1]} : vector<22x66xf32> to vector<1x66xf32>
    %57 = vector.extract_strided_slice %5 {offsets = [13, 0], sizes = [1, 66], strides = [1, 1]} : vector<22x66xf32> to vector<1x66xf32>
    %58 = vector.extract_strided_slice %5 {offsets = [15, 0], sizes = [1, 66], strides = [1, 1]} : vector<22x66xf32> to vector<1x66xf32>
    %59 = vector.extract_strided_slice %5 {offsets = [17, 0], sizes = [1, 66], strides = [1, 1]} : vector<22x66xf32> to vector<1x66xf32>
    %60 = vector.extract_strided_slice %5 {offsets = [19, 0], sizes = [1, 66], strides = [1, 1]} : vector<22x66xf32> to vector<1x66xf32>
    %61 = tpu.concatenate %53, %54, %55, %56, %57, %58, %59, %60 in 0 : vector<1x66xf32>, vector<1x66xf32>, vector<1x66xf32>, vector<1x66xf32>, vector<1x66xf32>, vector<1x66xf32>, vector<1x66xf32>, vector<1x66xf32> -> vector<8x66xf32>
    %62 = vector.extract_strided_slice %5 {offsets = [6, 0], sizes = [1, 66], strides = [1, 1]} : vector<22x66xf32> to vector<1x66xf32>
    %63 = vector.extract_strided_slice %5 {offsets = [8, 0], sizes = [1, 66], strides = [1, 1]} : vector<22x66xf32> to vector<1x66xf32>
    %64 = vector.extract_strided_slice %5 {offsets = [10, 0], sizes = [1, 66], strides = [1, 1]} : vector<22x66xf32> to vector<1x66xf32>
    %65 = vector.extract_strided_slice %5 {offsets = [12, 0], sizes = [1, 66], strides = [1, 1]} : vector<22x66xf32> to vector<1x66xf32>
    %66 = vector.extract_strided_slice %5 {offsets = [14, 0], sizes = [1, 66], strides = [1, 1]} : vector<22x66xf32> to vector<1x66xf32>
    %67 = vector.extract_strided_slice %5 {offsets = [16, 0], sizes = [1, 66], strides = [1, 1]} : vector<22x66xf32> to vector<1x66xf32>
    %68 = vector.extract_strided_slice %5 {offsets = [18, 0], sizes = [1, 66], strides = [1, 1]} : vector<22x66xf32> to vector<1x66xf32>
    %69 = vector.extract_strided_slice %5 {offsets = [20, 0], sizes = [1, 66], strides = [1, 1]} : vector<22x66xf32> to vector<1x66xf32>
    %70 = tpu.concatenate %62, %63, %64, %65, %66, %67, %68, %69 in 0 : vector<1x66xf32>, vector<1x66xf32>, vector<1x66xf32>, vector<1x66xf32>, vector<1x66xf32>, vector<1x66xf32>, vector<1x66xf32>, vector<1x66xf32> -> vector<8x66xf32>
    %71 = tpu.concatenate %16, %25, %34, %43, %52, %61, %70 in 1 : vector<8x66xf32>, vector<8x66xf32>, vector<8x66xf32>, vector<8x66xf32>, vector<8x66xf32>, vector<8x66xf32>, vector<8x66xf32> -> vector<8x462xf32>
    %cst_7 = arith.constant dense<0.000000e+00> : vector<8x64xf32>
    %72 = tpu.matmul %71, %6, %cst_7 {dimension_numbers = #tpu.dot_dimension_numbers<[1], [0], [0], [1], [0, 0, 1, 1], [], []>} : vector<8x462xf32>, vector<462x64xf32>, vector<8x64xf32> -> vector<8x64xf32>
    %73 = vector.broadcast %7 : vector<1x64xf32> to vector<8x64xf32>
    %74 = arith.addf %72, %73 : vector<8x64xf32>
    %cst_8 = arith.constant 0.000000e+00 : f32
    %75 = vector.broadcast %cst_8 : f32 to vector<8x64xf32>
    %76 = arith.maximumf %74, %75 : vector<8x64xf32>
    %cst_9 = arith.constant 0xFF800000 : f32
    %77 = vector.broadcast %cst_9 : f32 to vector<8x8xf32>
    %78 = tpu.concatenate %77, %76, %77 in 1 : vector<8x8xf32>, vector<8x64xf32>, vector<8x8xf32> -> vector<8x80xf32>
    %cst_10 = arith.constant 0xFF800000 : f32
    %79 = vector.broadcast %cst_10 : f32 to vector<1x80xf32>
    %80 = tpu.concatenate %79, %78, %79 in 0 : vector<1x80xf32>, vector<8x80xf32>, vector<1x80xf32> -> vector<10x80xf32>
    %81 = vector.extract_strided_slice %80 {offsets = [0, 0], sizes = [8, 64], strides = [1, 1]} : vector<10x80xf32> to vector<8x64xf32>
    %82 = vector.extract_strided_slice %80 {offsets = [0, 8], sizes = [8, 64], strides = [1, 1]} : vector<10x80xf32> to vector<8x64xf32>
    %83 = arith.maximumf %81, %82 : vector<8x64xf32>
    %84 = vector.extract_strided_slice %80 {offsets = [0, 16], sizes = [8, 64], strides = [1, 1]} : vector<10x80xf32> to vector<8x64xf32>
    %85 = arith.maximumf %83, %84 : vector<8x64xf32>
    %86 = vector.extract_strided_slice %80 {offsets = [1, 0], sizes = [8, 64], strides = [1, 1]} : vector<10x80xf32> to vector<8x64xf32>
    %87 = arith.maximumf %85, %86 : vector<8x64xf32>
    %88 = vector.extract_strided_slice %80 {offsets = [1, 8], sizes = [8, 64], strides = [1, 1]} : vector<10x80xf32> to vector<8x64xf32>
    %89 = arith.maximumf %87, %88 : vector<8x64xf32>
    %90 = vector.extract_strided_slice %80 {offsets = [1, 16], sizes = [8, 64], strides = [1, 1]} : vector<10x80xf32> to vector<8x64xf32>
    %91 = arith.maximumf %89, %90 : vector<8x64xf32>
    %92 = vector.extract_strided_slice %80 {offsets = [2, 0], sizes = [8, 64], strides = [1, 1]} : vector<10x80xf32> to vector<8x64xf32>
    %93 = arith.maximumf %91, %92 : vector<8x64xf32>
    %94 = vector.extract_strided_slice %80 {offsets = [2, 8], sizes = [8, 64], strides = [1, 1]} : vector<10x80xf32> to vector<8x64xf32>
    %95 = arith.maximumf %93, %94 : vector<8x64xf32>
    %96 = vector.extract_strided_slice %80 {offsets = [2, 16], sizes = [8, 64], strides = [1, 1]} : vector<10x80xf32> to vector<8x64xf32>
    %97 = arith.maximumf %95, %96 : vector<8x64xf32>
    %cst_11 = arith.constant 0.000000e+00 : f32
    %98 = vector.broadcast %cst_11 : f32 to vector<8x8xf32>
    %99 = tpu.concatenate %98, %97, %98 in 1 : vector<8x8xf32>, vector<8x64xf32>, vector<8x8xf32> -> vector<8x80xf32>
    %cst_12 = arith.constant 0.000000e+00 : f32
    %100 = vector.broadcast %cst_12 : f32 to vector<1x80xf32>
    %101 = tpu.concatenate %100, %99, %100 in 0 : vector<1x80xf32>, vector<8x80xf32>, vector<1x80xf32> -> vector<10x80xf32>
    %c0_13 = arith.constant 0 : index
    %c0_14 = arith.constant 0 : index
    %102 = vector.load %arg4[%c0_13, %c0_14] : memref<240x64xf32, #tpu.memory_space<vmem>>, vector<240x64xf32>
    %c0_15 = arith.constant 0 : index
    %c0_16 = arith.constant 0 : index
    %103 = vector.load %arg5[%c0_15, %c0_16] : memref<1x64xf32, #tpu.memory_space<vmem>>, vector<1x64xf32>
    %c0_17 = arith.constant 0 : index
    %c0_18 = arith.constant 0 : index
    %104 = vector.load %arg6[%c0_17, %c0_18] : memref<240x64xf32, #tpu.memory_space<vmem>>, vector<240x64xf32>
    %c0_19 = arith.constant 0 : index
    %c0_20 = arith.constant 0 : index
    %105 = vector.load %arg7[%c0_19, %c0_20] : memref<1x64xf32, #tpu.memory_space<vmem>>, vector<1x64xf32>
    %106 = vector.extract_strided_slice %101 {offsets = [0, 0], sizes = [8, 80], strides = [1, 1]} : vector<10x80xf32> to vector<8x80xf32>
    %107 = vector.extract_strided_slice %101 {offsets = [1, 0], sizes = [8, 80], strides = [1, 1]} : vector<10x80xf32> to vector<8x80xf32>
    %108 = vector.extract_strided_slice %101 {offsets = [2, 0], sizes = [8, 80], strides = [1, 1]} : vector<10x80xf32> to vector<8x80xf32>
    %109 = tpu.concatenate %106, %107, %108 in 1 : vector<8x80xf32>, vector<8x80xf32>, vector<8x80xf32> -> vector<8x240xf32>
    %cst_21 = arith.constant dense<0.000000e+00> : vector<8x64xf32>
    %110 = tpu.matmul %109, %102, %cst_21 {dimension_numbers = #tpu.dot_dimension_numbers<[1], [0], [0], [1], [0, 0, 1, 1], [], []>} : vector<8x240xf32>, vector<240x64xf32>, vector<8x64xf32> -> vector<8x64xf32>
    %111 = vector.broadcast %103 : vector<1x64xf32> to vector<8x64xf32>
    %112 = arith.addf %110, %111 : vector<8x64xf32>
    %cst_22 = arith.constant 0.000000e+00 : f32
    %113 = vector.broadcast %cst_22 : f32 to vector<8x64xf32>
    %114 = arith.maximumf %112, %113 : vector<8x64xf32>
    %cst_23 = arith.constant 0.000000e+00 : f32
    %115 = vector.broadcast %cst_23 : f32 to vector<8x8xf32>
    %116 = tpu.concatenate %115, %114, %115 in 1 : vector<8x8xf32>, vector<8x64xf32>, vector<8x8xf32> -> vector<8x80xf32>
    %cst_24 = arith.constant 0.000000e+00 : f32
    %117 = vector.broadcast %cst_24 : f32 to vector<1x80xf32>
    %118 = tpu.concatenate %117, %116, %117 in 0 : vector<1x80xf32>, vector<8x80xf32>, vector<1x80xf32> -> vector<10x80xf32>
    %119 = vector.extract_strided_slice %118 {offsets = [0, 0], sizes = [8, 80], strides = [1, 1]} : vector<10x80xf32> to vector<8x80xf32>
    %120 = vector.extract_strided_slice %118 {offsets = [1, 0], sizes = [8, 80], strides = [1, 1]} : vector<10x80xf32> to vector<8x80xf32>
    %121 = vector.extract_strided_slice %118 {offsets = [2, 0], sizes = [8, 80], strides = [1, 1]} : vector<10x80xf32> to vector<8x80xf32>
    %122 = tpu.concatenate %119, %120, %121 in 1 : vector<8x80xf32>, vector<8x80xf32>, vector<8x80xf32> -> vector<8x240xf32>
    %cst_25 = arith.constant dense<0.000000e+00> : vector<8x64xf32>
    %123 = tpu.matmul %122, %104, %cst_25 {dimension_numbers = #tpu.dot_dimension_numbers<[1], [0], [0], [1], [0, 0, 1, 1], [], []>} : vector<8x240xf32>, vector<240x64xf32>, vector<8x64xf32> -> vector<8x64xf32>
    %124 = vector.broadcast %105 : vector<1x64xf32> to vector<8x64xf32>
    %125 = arith.addf %123, %124 : vector<8x64xf32>
    %126 = arith.addf %125, %97 : vector<8x64xf32>
    %cst_26 = arith.constant 0.000000e+00 : f32
    %127 = vector.broadcast %cst_26 : f32 to vector<8x64xf32>
    %128 = arith.maximumf %126, %127 : vector<8x64xf32>
    %cst_27 = arith.constant 0.000000e+00 : f32
    %129 = vector.broadcast %cst_27 : f32 to vector<8x8xf32>
    %130 = tpu.concatenate %129, %128, %129 in 1 : vector<8x8xf32>, vector<8x64xf32>, vector<8x8xf32> -> vector<8x80xf32>
    %cst_28 = arith.constant 0.000000e+00 : f32
    %131 = vector.broadcast %cst_28 : f32 to vector<1x80xf32>
    %132 = tpu.concatenate %131, %130, %131 in 0 : vector<1x80xf32>, vector<8x80xf32>, vector<1x80xf32> -> vector<10x80xf32>
    %c0_29 = arith.constant 0 : index
    %c0_30 = arith.constant 0 : index
    %133 = vector.load %arg8[%c0_29, %c0_30] : memref<240x64xf32, #tpu.memory_space<vmem>>, vector<240x64xf32>
    %c0_31 = arith.constant 0 : index
    %c0_32 = arith.constant 0 : index
    %134 = vector.load %arg9[%c0_31, %c0_32] : memref<1x64xf32, #tpu.memory_space<vmem>>, vector<1x64xf32>
    %c0_33 = arith.constant 0 : index
    %c0_34 = arith.constant 0 : index
    %135 = vector.load %arg10[%c0_33, %c0_34] : memref<240x64xf32, #tpu.memory_space<vmem>>, vector<240x64xf32>
    %c0_35 = arith.constant 0 : index
    %c0_36 = arith.constant 0 : index
    %136 = vector.load %arg11[%c0_35, %c0_36] : memref<1x64xf32, #tpu.memory_space<vmem>>, vector<1x64xf32>
    %137 = vector.extract_strided_slice %132 {offsets = [0, 0], sizes = [8, 80], strides = [1, 1]} : vector<10x80xf32> to vector<8x80xf32>
    %138 = vector.extract_strided_slice %132 {offsets = [1, 0], sizes = [8, 80], strides = [1, 1]} : vector<10x80xf32> to vector<8x80xf32>
    %139 = vector.extract_strided_slice %132 {offsets = [2, 0], sizes = [8, 80], strides = [1, 1]} : vector<10x80xf32> to vector<8x80xf32>
    %140 = tpu.concatenate %137, %138, %139 in 1 : vector<8x80xf32>, vector<8x80xf32>, vector<8x80xf32> -> vector<8x240xf32>
    %cst_37 = arith.constant dense<0.000000e+00> : vector<8x64xf32>
    %141 = tpu.matmul %140, %133, %cst_37 {dimension_numbers = #tpu.dot_dimension_numbers<[1], [0], [0], [1], [0, 0, 1, 1], [], []>} : vector<8x240xf32>, vector<240x64xf32>, vector<8x64xf32> -> vector<8x64xf32>
    %142 = vector.broadcast %134 : vector<1x64xf32> to vector<8x64xf32>
    %143 = arith.addf %141, %142 : vector<8x64xf32>
    %cst_38 = arith.constant 0.000000e+00 : f32
    %144 = vector.broadcast %cst_38 : f32 to vector<8x64xf32>
    %145 = arith.maximumf %143, %144 : vector<8x64xf32>
    %cst_39 = arith.constant 0.000000e+00 : f32
    %146 = vector.broadcast %cst_39 : f32 to vector<8x8xf32>
    %147 = tpu.concatenate %146, %145, %146 in 1 : vector<8x8xf32>, vector<8x64xf32>, vector<8x8xf32> -> vector<8x80xf32>
    %cst_40 = arith.constant 0.000000e+00 : f32
    %148 = vector.broadcast %cst_40 : f32 to vector<1x80xf32>
    %149 = tpu.concatenate %148, %147, %148 in 0 : vector<1x80xf32>, vector<8x80xf32>, vector<1x80xf32> -> vector<10x80xf32>
    %150 = vector.extract_strided_slice %149 {offsets = [0, 0], sizes = [8, 80], strides = [1, 1]} : vector<10x80xf32> to vector<8x80xf32>
    %151 = vector.extract_strided_slice %149 {offsets = [1, 0], sizes = [8, 80], strides = [1, 1]} : vector<10x80xf32> to vector<8x80xf32>
    %152 = vector.extract_strided_slice %149 {offsets = [2, 0], sizes = [8, 80], strides = [1, 1]} : vector<10x80xf32> to vector<8x80xf32>
    %153 = tpu.concatenate %150, %151, %152 in 1 : vector<8x80xf32>, vector<8x80xf32>, vector<8x80xf32> -> vector<8x240xf32>
    %cst_41 = arith.constant dense<0.000000e+00> : vector<8x64xf32>
    %154 = tpu.matmul %153, %135, %cst_41 {dimension_numbers = #tpu.dot_dimension_numbers<[1], [0], [0], [1], [0, 0, 1, 1], [], []>} : vector<8x240xf32>, vector<240x64xf32>, vector<8x64xf32> -> vector<8x64xf32>
    %155 = vector.broadcast %136 : vector<1x64xf32> to vector<8x64xf32>
    %156 = arith.addf %154, %155 : vector<8x64xf32>
    %157 = arith.addf %156, %128 : vector<8x64xf32>
    %cst_42 = arith.constant 0.000000e+00 : f32
    %158 = vector.broadcast %cst_42 : f32 to vector<8x64xf32>
    %159 = arith.maximumf %157, %158 : vector<8x64xf32>
    %cst_43 = arith.constant 0.000000e+00 : f32
    %160 = vector.broadcast %cst_43 : f32 to vector<8x8xf32>
    %161 = tpu.concatenate %160, %159, %160 in 1 : vector<8x8xf32>, vector<8x64xf32>, vector<8x8xf32> -> vector<8x80xf32>
    %cst_44 = arith.constant 0.000000e+00 : f32
    %162 = vector.broadcast %cst_44 : f32 to vector<1x80xf32>
    %163 = tpu.concatenate %162, %161, %162 in 0 : vector<1x80xf32>, vector<8x80xf32>, vector<1x80xf32> -> vector<10x80xf32>
    %c0_45 = arith.constant 0 : index
    %c0_46 = arith.constant 0 : index
    %164 = vector.load %arg12[%c0_45, %c0_46] : memref<240x64xf32, #tpu.memory_space<vmem>>, vector<240x64xf32>
    %c0_47 = arith.constant 0 : index
    %c0_48 = arith.constant 0 : index
    %165 = vector.load %arg13[%c0_47, %c0_48] : memref<1x64xf32, #tpu.memory_space<vmem>>, vector<1x64xf32>
    %c0_49 = arith.constant 0 : index
    %c0_50 = arith.constant 0 : index
    %166 = vector.load %arg14[%c0_49, %c0_50] : memref<288x64xf32, #tpu.memory_space<vmem>>, vector<288x64xf32>
    %c0_51 = arith.constant 0 : index
    %c0_52 = arith.constant 0 : index
    %167 = vector.load %arg15[%c0_51, %c0_52] : memref<1x64xf32, #tpu.memory_space<vmem>>, vector<1x64xf32>
    %168 = vector.extract_strided_slice %163 {offsets = [0, 0], sizes = [1, 80], strides = [1, 1]} : vector<10x80xf32> to vector<1x80xf32>
    %169 = vector.extract_strided_slice %163 {offsets = [2, 0], sizes = [1, 80], strides = [1, 1]} : vector<10x80xf32> to vector<1x80xf32>
    %170 = vector.extract_strided_slice %163 {offsets = [4, 0], sizes = [1, 80], strides = [1, 1]} : vector<10x80xf32> to vector<1x80xf32>
    %171 = vector.extract_strided_slice %163 {offsets = [6, 0], sizes = [1, 80], strides = [1, 1]} : vector<10x80xf32> to vector<1x80xf32>
    %172 = tpu.concatenate %168, %169, %170, %171 in 0 : vector<1x80xf32>, vector<1x80xf32>, vector<1x80xf32>, vector<1x80xf32> -> vector<4x80xf32>
    %173 = vector.extract_strided_slice %163 {offsets = [1, 0], sizes = [1, 80], strides = [1, 1]} : vector<10x80xf32> to vector<1x80xf32>
    %174 = vector.extract_strided_slice %163 {offsets = [3, 0], sizes = [1, 80], strides = [1, 1]} : vector<10x80xf32> to vector<1x80xf32>
    %175 = vector.extract_strided_slice %163 {offsets = [5, 0], sizes = [1, 80], strides = [1, 1]} : vector<10x80xf32> to vector<1x80xf32>
    %176 = vector.extract_strided_slice %163 {offsets = [7, 0], sizes = [1, 80], strides = [1, 1]} : vector<10x80xf32> to vector<1x80xf32>
    %177 = tpu.concatenate %173, %174, %175, %176 in 0 : vector<1x80xf32>, vector<1x80xf32>, vector<1x80xf32>, vector<1x80xf32> -> vector<4x80xf32>
    %178 = vector.extract_strided_slice %163 {offsets = [2, 0], sizes = [1, 80], strides = [1, 1]} : vector<10x80xf32> to vector<1x80xf32>
    %179 = vector.extract_strided_slice %163 {offsets = [4, 0], sizes = [1, 80], strides = [1, 1]} : vector<10x80xf32> to vector<1x80xf32>
    %180 = vector.extract_strided_slice %163 {offsets = [6, 0], sizes = [1, 80], strides = [1, 1]} : vector<10x80xf32> to vector<1x80xf32>
    %181 = vector.extract_strided_slice %163 {offsets = [8, 0], sizes = [1, 80], strides = [1, 1]} : vector<10x80xf32> to vector<1x80xf32>
    %182 = tpu.concatenate %178, %179, %180, %181 in 0 : vector<1x80xf32>, vector<1x80xf32>, vector<1x80xf32>, vector<1x80xf32> -> vector<4x80xf32>
    %183 = tpu.concatenate %172, %177, %182 in 1 : vector<4x80xf32>, vector<4x80xf32>, vector<4x80xf32> -> vector<4x240xf32>
    %cst_53 = arith.constant dense<0.000000e+00> : vector<4x64xf32>
    %184 = tpu.matmul %183, %164, %cst_53 {dimension_numbers = #tpu.dot_dimension_numbers<[1], [0], [0], [1], [0, 0, 1, 1], [], []>} : vector<4x240xf32>, vector<240x64xf32>, vector<4x64xf32> -> vector<4x64xf32>
    %185 = vector.broadcast %165 : vector<1x64xf32> to vector<4x64xf32>
    %186 = arith.addf %184, %185 : vector<4x64xf32>
    %cst_54 = arith.constant 0.000000e+00 : f32
    %187 = vector.broadcast %cst_54 : f32 to vector<4x64xf32>
    %188 = arith.maximumf %186, %187 : vector<4x64xf32>
    %cst_55 = arith.constant 0.000000e+00 : f32
    %189 = vector.broadcast %cst_55 : f32 to vector<4x16xf32>
    %190 = tpu.concatenate %189, %188, %189 in 1 : vector<4x16xf32>, vector<4x64xf32>, vector<4x16xf32> -> vector<4x96xf32>
    %cst_56 = arith.constant 0.000000e+00 : f32
    %191 = vector.broadcast %cst_56 : f32 to vector<1x96xf32>
    %192 = tpu.concatenate %191, %190, %191 in 0 : vector<1x96xf32>, vector<4x96xf32>, vector<1x96xf32> -> vector<6x96xf32>
    %193 = vector.extract_strided_slice %192 {offsets = [0, 0], sizes = [4, 96], strides = [1, 1]} : vector<6x96xf32> to vector<4x96xf32>
    %194 = vector.extract_strided_slice %192 {offsets = [1, 0], sizes = [4, 96], strides = [1, 1]} : vector<6x96xf32> to vector<4x96xf32>
    %195 = vector.extract_strided_slice %192 {offsets = [2, 0], sizes = [4, 96], strides = [1, 1]} : vector<6x96xf32> to vector<4x96xf32>
    %196 = tpu.concatenate %193, %194, %195 in 1 : vector<4x96xf32>, vector<4x96xf32>, vector<4x96xf32> -> vector<4x288xf32>
    %cst_57 = arith.constant dense<0.000000e+00> : vector<4x64xf32>
    %197 = tpu.matmul %196, %166, %cst_57 {dimension_numbers = #tpu.dot_dimension_numbers<[1], [0], [0], [1], [0, 0, 1, 1], [], []>} : vector<4x288xf32>, vector<288x64xf32>, vector<4x64xf32> -> vector<4x64xf32>
    %198 = vector.broadcast %167 : vector<1x64xf32> to vector<4x64xf32>
    %199 = arith.addf %197, %198 : vector<4x64xf32>
    %c0_58 = arith.constant 0 : index
    %c0_59 = arith.constant 0 : index
    %200 = vector.load %arg16[%c0_58, %c0_59] : memref<64x64xf32, #tpu.memory_space<vmem>>, vector<64x64xf32>
    %c0_60 = arith.constant 0 : index
    %c0_61 = arith.constant 0 : index
    %201 = vector.load %arg17[%c0_60, %c0_61] : memref<1x64xf32, #tpu.memory_space<vmem>>, vector<1x64xf32>
    %202 = vector.extract_strided_slice %159 {offsets = [0, 0], sizes = [1, 64], strides = [1, 1]} : vector<8x64xf32> to vector<1x64xf32>
    %203 = vector.extract_strided_slice %159 {offsets = [2, 0], sizes = [1, 64], strides = [1, 1]} : vector<8x64xf32> to vector<1x64xf32>
    %204 = vector.extract_strided_slice %159 {offsets = [4, 0], sizes = [1, 64], strides = [1, 1]} : vector<8x64xf32> to vector<1x64xf32>
    %205 = vector.extract_strided_slice %159 {offsets = [6, 0], sizes = [1, 64], strides = [1, 1]} : vector<8x64xf32> to vector<1x64xf32>
    %206 = tpu.concatenate %202, %203, %204, %205 in 0 : vector<1x64xf32>, vector<1x64xf32>, vector<1x64xf32>, vector<1x64xf32> -> vector<4x64xf32>
    %cst_62 = arith.constant dense<0.000000e+00> : vector<4x64xf32>
    %207 = tpu.matmul %206, %200, %cst_62 {dimension_numbers = #tpu.dot_dimension_numbers<[1], [0], [0], [1], [0, 0, 1, 1], [], []>} : vector<4x64xf32>, vector<64x64xf32>, vector<4x64xf32> -> vector<4x64xf32>
    %208 = vector.broadcast %201 : vector<1x64xf32> to vector<4x64xf32>
    %209 = arith.addf %207, %208 : vector<4x64xf32>
    %210 = arith.addf %199, %209 : vector<4x64xf32>
    %cst_63 = arith.constant 0.000000e+00 : f32
    %211 = vector.broadcast %cst_63 : f32 to vector<4x64xf32>
    %212 = arith.maximumf %210, %211 : vector<4x64xf32>
    %cst_64 = arith.constant 0.000000e+00 : f32
    %213 = vector.broadcast %cst_64 : f32 to vector<4x16xf32>
    %214 = tpu.concatenate %213, %212, %213 in 1 : vector<4x16xf32>, vector<4x64xf32>, vector<4x16xf32> -> vector<4x96xf32>
    %cst_65 = arith.constant 0.000000e+00 : f32
    %215 = vector.broadcast %cst_65 : f32 to vector<1x96xf32>
    %216 = tpu.concatenate %215, %214, %215 in 0 : vector<1x96xf32>, vector<4x96xf32>, vector<1x96xf32> -> vector<6x96xf32>
    %c0_66 = arith.constant 0 : index
    %c0_67 = arith.constant 0 : index
    %217 = vector.load %arg18[%c0_66, %c0_67] : memref<288x64xf32, #tpu.memory_space<vmem>>, vector<288x64xf32>
    %c0_68 = arith.constant 0 : index
    %c0_69 = arith.constant 0 : index
    %218 = vector.load %arg19[%c0_68, %c0_69] : memref<1x64xf32, #tpu.memory_space<vmem>>, vector<1x64xf32>
    %c0_70 = arith.constant 0 : index
    %c0_71 = arith.constant 0 : index
    %219 = vector.load %arg20[%c0_70, %c0_71] : memref<288x64xf32, #tpu.memory_space<vmem>>, vector<288x64xf32>
    %c0_72 = arith.constant 0 : index
    %c0_73 = arith.constant 0 : index
    %220 = vector.load %arg21[%c0_72, %c0_73] : memref<1x64xf32, #tpu.memory_space<vmem>>, vector<1x64xf32>
    %221 = vector.extract_strided_slice %216 {offsets = [0, 0], sizes = [4, 96], strides = [1, 1]} : vector<6x96xf32> to vector<4x96xf32>
    %222 = vector.extract_strided_slice %216 {offsets = [1, 0], sizes = [4, 96], strides = [1, 1]} : vector<6x96xf32> to vector<4x96xf32>
    %223 = vector.extract_strided_slice %216 {offsets = [2, 0], sizes = [4, 96], strides = [1, 1]} : vector<6x96xf32> to vector<4x96xf32>
    %224 = tpu.concatenate %221, %222, %223 in 1 : vector<4x96xf32>, vector<4x96xf32>, vector<4x96xf32> -> vector<4x288xf32>
    %cst_74 = arith.constant dense<0.000000e+00> : vector<4x64xf32>
    %225 = tpu.matmul %224, %217, %cst_74 {dimension_numbers = #tpu.dot_dimension_numbers<[1], [0], [0], [1], [0, 0, 1, 1], [], []>} : vector<4x288xf32>, vector<288x64xf32>, vector<4x64xf32> -> vector<4x64xf32>
    %226 = vector.broadcast %218 : vector<1x64xf32> to vector<4x64xf32>
    %227 = arith.addf %225, %226 : vector<4x64xf32>
    %cst_75 = arith.constant 0.000000e+00 : f32
    %228 = vector.broadcast %cst_75 : f32 to vector<4x64xf32>
    %229 = arith.maximumf %227, %228 : vector<4x64xf32>
    %cst_76 = arith.constant 0.000000e+00 : f32
    %230 = vector.broadcast %cst_76 : f32 to vector<4x16xf32>
    %231 = tpu.concatenate %230, %229, %230 in 1 : vector<4x16xf32>, vector<4x64xf32>, vector<4x16xf32> -> vector<4x96xf32>
    %cst_77 = arith.constant 0.000000e+00 : f32
    %232 = vector.broadcast %cst_77 : f32 to vector<1x96xf32>
    %233 = tpu.concatenate %232, %231, %232 in 0 : vector<1x96xf32>, vector<4x96xf32>, vector<1x96xf32> -> vector<6x96xf32>
    %234 = vector.extract_strided_slice %233 {offsets = [0, 0], sizes = [4, 96], strides = [1, 1]} : vector<6x96xf32> to vector<4x96xf32>
    %235 = vector.extract_strided_slice %233 {offsets = [1, 0], sizes = [4, 96], strides = [1, 1]} : vector<6x96xf32> to vector<4x96xf32>
    %236 = vector.extract_strided_slice %233 {offsets = [2, 0], sizes = [4, 96], strides = [1, 1]} : vector<6x96xf32> to vector<4x96xf32>
    %237 = tpu.concatenate %234, %235, %236 in 1 : vector<4x96xf32>, vector<4x96xf32>, vector<4x96xf32> -> vector<4x288xf32>
    %cst_78 = arith.constant dense<0.000000e+00> : vector<4x64xf32>
    %238 = tpu.matmul %237, %219, %cst_78 {dimension_numbers = #tpu.dot_dimension_numbers<[1], [0], [0], [1], [0, 0, 1, 1], [], []>} : vector<4x288xf32>, vector<288x64xf32>, vector<4x64xf32> -> vector<4x64xf32>
    %239 = vector.broadcast %220 : vector<1x64xf32> to vector<4x64xf32>
    %240 = arith.addf %238, %239 : vector<4x64xf32>
    %241 = arith.addf %240, %212 : vector<4x64xf32>
    %cst_79 = arith.constant 0.000000e+00 : f32
    %242 = vector.broadcast %cst_79 : f32 to vector<4x64xf32>
    %243 = arith.maximumf %241, %242 : vector<4x64xf32>
    %cst_80 = arith.constant 0.000000e+00 : f32
    %244 = vector.broadcast %cst_80 : f32 to vector<4x16xf32>
    %245 = tpu.concatenate %244, %243, %244 in 1 : vector<4x16xf32>, vector<4x64xf32>, vector<4x16xf32> -> vector<4x96xf32>
    %cst_81 = arith.constant 0.000000e+00 : f32
    %246 = vector.broadcast %cst_81 : f32 to vector<1x96xf32>
    %247 = tpu.concatenate %246, %245, %246 in 0 : vector<1x96xf32>, vector<4x96xf32>, vector<1x96xf32> -> vector<6x96xf32>
    %c0_82 = arith.constant 0 : index
    %c0_83 = arith.constant 0 : index
    %248 = vector.load %arg22[%c0_82, %c0_83] : memref<288x64xf32, #tpu.memory_space<vmem>>, vector<288x64xf32>
    %c0_84 = arith.constant 0 : index
    %c0_85 = arith.constant 0 : index
    %249 = vector.load %arg23[%c0_84, %c0_85] : memref<1x64xf32, #tpu.memory_space<vmem>>, vector<1x64xf32>
    %c0_86 = arith.constant 0 : index
    %c0_87 = arith.constant 0 : index
    %250 = vector.load %arg24[%c0_86, %c0_87] : memref<384x64xf32, #tpu.memory_space<vmem>>, vector<384x64xf32>
    %c0_88 = arith.constant 0 : index
    %c0_89 = arith.constant 0 : index
    %251 = vector.load %arg25[%c0_88, %c0_89] : memref<1x64xf32, #tpu.memory_space<vmem>>, vector<1x64xf32>
    %252 = vector.extract_strided_slice %247 {offsets = [0, 0], sizes = [1, 96], strides = [1, 1]} : vector<6x96xf32> to vector<1x96xf32>
    %253 = vector.extract_strided_slice %247 {offsets = [2, 0], sizes = [1, 96], strides = [1, 1]} : vector<6x96xf32> to vector<1x96xf32>
    %254 = tpu.concatenate %252, %253 in 0 : vector<1x96xf32>, vector<1x96xf32> -> vector<2x96xf32>
    %255 = vector.extract_strided_slice %247 {offsets = [1, 0], sizes = [1, 96], strides = [1, 1]} : vector<6x96xf32> to vector<1x96xf32>
    %256 = vector.extract_strided_slice %247 {offsets = [3, 0], sizes = [1, 96], strides = [1, 1]} : vector<6x96xf32> to vector<1x96xf32>
    %257 = tpu.concatenate %255, %256 in 0 : vector<1x96xf32>, vector<1x96xf32> -> vector<2x96xf32>
    %258 = vector.extract_strided_slice %247 {offsets = [2, 0], sizes = [1, 96], strides = [1, 1]} : vector<6x96xf32> to vector<1x96xf32>
    %259 = vector.extract_strided_slice %247 {offsets = [4, 0], sizes = [1, 96], strides = [1, 1]} : vector<6x96xf32> to vector<1x96xf32>
    %260 = tpu.concatenate %258, %259 in 0 : vector<1x96xf32>, vector<1x96xf32> -> vector<2x96xf32>
    %261 = tpu.concatenate %254, %257, %260 in 1 : vector<2x96xf32>, vector<2x96xf32>, vector<2x96xf32> -> vector<2x288xf32>
    %cst_90 = arith.constant dense<0.000000e+00> : vector<2x64xf32>
    %262 = tpu.matmul %261, %248, %cst_90 {dimension_numbers = #tpu.dot_dimension_numbers<[1], [0], [0], [1], [0, 0, 1, 1], [], []>} : vector<2x288xf32>, vector<288x64xf32>, vector<2x64xf32> -> vector<2x64xf32>
    %263 = vector.broadcast %249 : vector<1x64xf32> to vector<2x64xf32>
    %264 = arith.addf %262, %263 : vector<2x64xf32>
    %cst_91 = arith.constant 0.000000e+00 : f32
    %265 = vector.broadcast %cst_91 : f32 to vector<2x64xf32>
    %266 = arith.maximumf %264, %265 : vector<2x64xf32>
    %cst_92 = arith.constant 0.000000e+00 : f32
    %267 = vector.broadcast %cst_92 : f32 to vector<2x32xf32>
    %268 = tpu.concatenate %267, %266, %267 in 1 : vector<2x32xf32>, vector<2x64xf32>, vector<2x32xf32> -> vector<2x128xf32>
    %cst_93 = arith.constant 0.000000e+00 : f32
    %269 = vector.broadcast %cst_93 : f32 to vector<1x128xf32>
    %270 = tpu.concatenate %269, %268, %269 in 0 : vector<1x128xf32>, vector<2x128xf32>, vector<1x128xf32> -> vector<4x128xf32>
    %271 = vector.extract_strided_slice %270 {offsets = [0, 0], sizes = [2, 128], strides = [1, 1]} : vector<4x128xf32> to vector<2x128xf32>
    %272 = vector.extract_strided_slice %270 {offsets = [1, 0], sizes = [2, 128], strides = [1, 1]} : vector<4x128xf32> to vector<2x128xf32>
    %273 = vector.extract_strided_slice %270 {offsets = [2, 0], sizes = [2, 128], strides = [1, 1]} : vector<4x128xf32> to vector<2x128xf32>
    %274 = tpu.concatenate %271, %272, %273 in 1 : vector<2x128xf32>, vector<2x128xf32>, vector<2x128xf32> -> vector<2x384xf32>
    %cst_94 = arith.constant dense<0.000000e+00> : vector<2x64xf32>
    %275 = tpu.matmul %274, %250, %cst_94 {dimension_numbers = #tpu.dot_dimension_numbers<[1], [0], [0], [1], [0, 0, 1, 1], [], []>} : vector<2x384xf32>, vector<384x64xf32>, vector<2x64xf32> -> vector<2x64xf32>
    %276 = vector.broadcast %251 : vector<1x64xf32> to vector<2x64xf32>
    %277 = arith.addf %275, %276 : vector<2x64xf32>
    %c0_95 = arith.constant 0 : index
    %c0_96 = arith.constant 0 : index
    %278 = vector.load %arg26[%c0_95, %c0_96] : memref<64x64xf32, #tpu.memory_space<vmem>>, vector<64x64xf32>
    %c0_97 = arith.constant 0 : index
    %c0_98 = arith.constant 0 : index
    %279 = vector.load %arg27[%c0_97, %c0_98] : memref<1x64xf32, #tpu.memory_space<vmem>>, vector<1x64xf32>
    %280 = vector.extract_strided_slice %243 {offsets = [0, 0], sizes = [1, 64], strides = [1, 1]} : vector<4x64xf32> to vector<1x64xf32>
    %281 = vector.extract_strided_slice %243 {offsets = [2, 0], sizes = [1, 64], strides = [1, 1]} : vector<4x64xf32> to vector<1x64xf32>
    %282 = tpu.concatenate %280, %281 in 0 : vector<1x64xf32>, vector<1x64xf32> -> vector<2x64xf32>
    %cst_99 = arith.constant dense<0.000000e+00> : vector<2x64xf32>
    %283 = tpu.matmul %282, %278, %cst_99 {dimension_numbers = #tpu.dot_dimension_numbers<[1], [0], [0], [1], [0, 0, 1, 1], [], []>} : vector<2x64xf32>, vector<64x64xf32>, vector<2x64xf32> -> vector<2x64xf32>
    %284 = vector.broadcast %279 : vector<1x64xf32> to vector<2x64xf32>
    %285 = arith.addf %283, %284 : vector<2x64xf32>
    %286 = arith.addf %277, %285 : vector<2x64xf32>
    %cst_100 = arith.constant 0.000000e+00 : f32
    %287 = vector.broadcast %cst_100 : f32 to vector<2x64xf32>
    %288 = arith.maximumf %286, %287 : vector<2x64xf32>
    %cst_101 = arith.constant 0.000000e+00 : f32
    %289 = vector.broadcast %cst_101 : f32 to vector<2x32xf32>
    %290 = tpu.concatenate %289, %288, %289 in 1 : vector<2x32xf32>, vector<2x64xf32>, vector<2x32xf32> -> vector<2x128xf32>
    %cst_102 = arith.constant 0.000000e+00 : f32
    %291 = vector.broadcast %cst_102 : f32 to vector<1x128xf32>
    %292 = tpu.concatenate %291, %290, %291 in 0 : vector<1x128xf32>, vector<2x128xf32>, vector<1x128xf32> -> vector<4x128xf32>
    %c0_103 = arith.constant 0 : index
    %c0_104 = arith.constant 0 : index
    %293 = vector.load %arg28[%c0_103, %c0_104] : memref<384x64xf32, #tpu.memory_space<vmem>>, vector<384x64xf32>
    %c0_105 = arith.constant 0 : index
    %c0_106 = arith.constant 0 : index
    %294 = vector.load %arg29[%c0_105, %c0_106] : memref<1x64xf32, #tpu.memory_space<vmem>>, vector<1x64xf32>
    %c0_107 = arith.constant 0 : index
    %c0_108 = arith.constant 0 : index
    %295 = vector.load %arg30[%c0_107, %c0_108] : memref<384x64xf32, #tpu.memory_space<vmem>>, vector<384x64xf32>
    %c0_109 = arith.constant 0 : index
    %c0_110 = arith.constant 0 : index
    %296 = vector.load %arg31[%c0_109, %c0_110] : memref<1x64xf32, #tpu.memory_space<vmem>>, vector<1x64xf32>
    %297 = vector.extract_strided_slice %292 {offsets = [0, 0], sizes = [2, 128], strides = [1, 1]} : vector<4x128xf32> to vector<2x128xf32>
    %298 = vector.extract_strided_slice %292 {offsets = [1, 0], sizes = [2, 128], strides = [1, 1]} : vector<4x128xf32> to vector<2x128xf32>
    %299 = vector.extract_strided_slice %292 {offsets = [2, 0], sizes = [2, 128], strides = [1, 1]} : vector<4x128xf32> to vector<2x128xf32>
    %300 = tpu.concatenate %297, %298, %299 in 1 : vector<2x128xf32>, vector<2x128xf32>, vector<2x128xf32> -> vector<2x384xf32>
    %cst_111 = arith.constant dense<0.000000e+00> : vector<2x64xf32>
    %301 = tpu.matmul %300, %293, %cst_111 {dimension_numbers = #tpu.dot_dimension_numbers<[1], [0], [0], [1], [0, 0, 1, 1], [], []>} : vector<2x384xf32>, vector<384x64xf32>, vector<2x64xf32> -> vector<2x64xf32>
    %302 = vector.broadcast %294 : vector<1x64xf32> to vector<2x64xf32>
    %303 = arith.addf %301, %302 : vector<2x64xf32>
    %cst_112 = arith.constant 0.000000e+00 : f32
    %304 = vector.broadcast %cst_112 : f32 to vector<2x64xf32>
    %305 = arith.maximumf %303, %304 : vector<2x64xf32>
    %cst_113 = arith.constant 0.000000e+00 : f32
    %306 = vector.broadcast %cst_113 : f32 to vector<2x32xf32>
    %307 = tpu.concatenate %306, %305, %306 in 1 : vector<2x32xf32>, vector<2x64xf32>, vector<2x32xf32> -> vector<2x128xf32>
    %cst_114 = arith.constant 0.000000e+00 : f32
    %308 = vector.broadcast %cst_114 : f32 to vector<1x128xf32>
    %309 = tpu.concatenate %308, %307, %308 in 0 : vector<1x128xf32>, vector<2x128xf32>, vector<1x128xf32> -> vector<4x128xf32>
    %310 = vector.extract_strided_slice %309 {offsets = [0, 0], sizes = [2, 128], strides = [1, 1]} : vector<4x128xf32> to vector<2x128xf32>
    %311 = vector.extract_strided_slice %309 {offsets = [1, 0], sizes = [2, 128], strides = [1, 1]} : vector<4x128xf32> to vector<2x128xf32>
    %312 = vector.extract_strided_slice %309 {offsets = [2, 0], sizes = [2, 128], strides = [1, 1]} : vector<4x128xf32> to vector<2x128xf32>
    %313 = tpu.concatenate %310, %311, %312 in 1 : vector<2x128xf32>, vector<2x128xf32>, vector<2x128xf32> -> vector<2x384xf32>
    %cst_115 = arith.constant dense<0.000000e+00> : vector<2x64xf32>
    %314 = tpu.matmul %313, %295, %cst_115 {dimension_numbers = #tpu.dot_dimension_numbers<[1], [0], [0], [1], [0, 0, 1, 1], [], []>} : vector<2x384xf32>, vector<384x64xf32>, vector<2x64xf32> -> vector<2x64xf32>
    %315 = vector.broadcast %296 : vector<1x64xf32> to vector<2x64xf32>
    %316 = arith.addf %314, %315 : vector<2x64xf32>
    %317 = arith.addf %316, %288 : vector<2x64xf32>
    %cst_116 = arith.constant 0.000000e+00 : f32
    %318 = vector.broadcast %cst_116 : f32 to vector<2x64xf32>
    %319 = arith.maximumf %317, %318 : vector<2x64xf32>
    %cst_117 = arith.constant 0.000000e+00 : f32
    %320 = vector.broadcast %cst_117 : f32 to vector<2x32xf32>
    %321 = tpu.concatenate %320, %319, %320 in 1 : vector<2x32xf32>, vector<2x64xf32>, vector<2x32xf32> -> vector<2x128xf32>
    %cst_118 = arith.constant 0.000000e+00 : f32
    %322 = vector.broadcast %cst_118 : f32 to vector<1x128xf32>
    %323 = tpu.concatenate %322, %321, %322 in 0 : vector<1x128xf32>, vector<2x128xf32>, vector<1x128xf32> -> vector<4x128xf32>
    %c0_119 = arith.constant 0 : index
    %c0_120 = arith.constant 0 : index
    %324 = vector.load %arg32[%c0_119, %c0_120] : memref<384x64xf32, #tpu.memory_space<vmem>>, vector<384x64xf32>
    %c0_121 = arith.constant 0 : index
    %c0_122 = arith.constant 0 : index
    %325 = vector.load %arg33[%c0_121, %c0_122] : memref<1x64xf32, #tpu.memory_space<vmem>>, vector<1x64xf32>
    %c0_123 = arith.constant 0 : index
    %c0_124 = arith.constant 0 : index
    %326 = vector.load %arg34[%c0_123, %c0_124] : memref<576x64xf32, #tpu.memory_space<vmem>>, vector<576x64xf32>
    %c0_125 = arith.constant 0 : index
    %c0_126 = arith.constant 0 : index
    %327 = vector.load %arg35[%c0_125, %c0_126] : memref<1x64xf32, #tpu.memory_space<vmem>>, vector<1x64xf32>
    %328 = vector.extract_strided_slice %323 {offsets = [0, 0], sizes = [1, 128], strides = [1, 1]} : vector<4x128xf32> to vector<1x128xf32>
    %329 = vector.extract_strided_slice %323 {offsets = [1, 0], sizes = [1, 128], strides = [1, 1]} : vector<4x128xf32> to vector<1x128xf32>
    %330 = vector.extract_strided_slice %323 {offsets = [2, 0], sizes = [1, 128], strides = [1, 1]} : vector<4x128xf32> to vector<1x128xf32>
    %331 = tpu.concatenate %328, %329, %330 in 1 : vector<1x128xf32>, vector<1x128xf32>, vector<1x128xf32> -> vector<1x384xf32>
    %cst_127 = arith.constant dense<0.000000e+00> : vector<1x64xf32>
    %332 = tpu.matmul %331, %324, %cst_127 {dimension_numbers = #tpu.dot_dimension_numbers<[1], [0], [0], [1], [0, 0, 1, 1], [], []>} : vector<1x384xf32>, vector<384x64xf32>, vector<1x64xf32> -> vector<1x64xf32>
    %333 = arith.addf %332, %325 : vector<1x64xf32>
    %cst_128 = arith.constant 0.000000e+00 : f32
    %334 = vector.broadcast %cst_128 : f32 to vector<1x64xf32>
    %335 = arith.maximumf %333, %334 : vector<1x64xf32>
    %cst_129 = arith.constant 0.000000e+00 : f32
    %336 = vector.broadcast %cst_129 : f32 to vector<1x64xf32>
    %337 = tpu.concatenate %336, %335, %336 in 1 : vector<1x64xf32>, vector<1x64xf32>, vector<1x64xf32> -> vector<1x192xf32>
    %cst_130 = arith.constant 0.000000e+00 : f32
    %338 = vector.broadcast %cst_130 : f32 to vector<1x192xf32>
    %339 = tpu.concatenate %338, %337, %338 in 0 : vector<1x192xf32>, vector<1x192xf32>, vector<1x192xf32> -> vector<3x192xf32>
    %340 = vector.extract_strided_slice %339 {offsets = [0, 0], sizes = [1, 192], strides = [1, 1]} : vector<3x192xf32> to vector<1x192xf32>
    %341 = vector.extract_strided_slice %339 {offsets = [1, 0], sizes = [1, 192], strides = [1, 1]} : vector<3x192xf32> to vector<1x192xf32>
    %342 = vector.extract_strided_slice %339 {offsets = [2, 0], sizes = [1, 192], strides = [1, 1]} : vector<3x192xf32> to vector<1x192xf32>
    %343 = tpu.concatenate %340, %341, %342 in 1 : vector<1x192xf32>, vector<1x192xf32>, vector<1x192xf32> -> vector<1x576xf32>
    %cst_131 = arith.constant dense<0.000000e+00> : vector<1x64xf32>
    %344 = tpu.matmul %343, %326, %cst_131 {dimension_numbers = #tpu.dot_dimension_numbers<[1], [0], [0], [1], [0, 0, 1, 1], [], []>} : vector<1x576xf32>, vector<576x64xf32>, vector<1x64xf32> -> vector<1x64xf32>
    %345 = arith.addf %344, %327 : vector<1x64xf32>
    %c0_132 = arith.constant 0 : index
    %c0_133 = arith.constant 0 : index
    %346 = vector.load %arg36[%c0_132, %c0_133] : memref<64x64xf32, #tpu.memory_space<vmem>>, vector<64x64xf32>
    %c0_134 = arith.constant 0 : index
    %c0_135 = arith.constant 0 : index
    %347 = vector.load %arg37[%c0_134, %c0_135] : memref<1x64xf32, #tpu.memory_space<vmem>>, vector<1x64xf32>
    %348 = vector.extract_strided_slice %319 {offsets = [0, 0], sizes = [1, 64], strides = [1, 1]} : vector<2x64xf32> to vector<1x64xf32>
    %cst_136 = arith.constant dense<0.000000e+00> : vector<1x64xf32>
    %349 = tpu.matmul %348, %346, %cst_136 {dimension_numbers = #tpu.dot_dimension_numbers<[1], [0], [0], [1], [0, 0, 1, 1], [], []>} : vector<1x64xf32>, vector<64x64xf32>, vector<1x64xf32> -> vector<1x64xf32>
    %350 = arith.addf %349, %347 : vector<1x64xf32>
    %351 = arith.addf %345, %350 : vector<1x64xf32>
    %cst_137 = arith.constant 0.000000e+00 : f32
    %352 = vector.broadcast %cst_137 : f32 to vector<1x64xf32>
    %353 = arith.maximumf %351, %352 : vector<1x64xf32>
    %cst_138 = arith.constant 0.000000e+00 : f32
    %354 = vector.broadcast %cst_138 : f32 to vector<1x64xf32>
    %355 = tpu.concatenate %354, %353, %354 in 1 : vector<1x64xf32>, vector<1x64xf32>, vector<1x64xf32> -> vector<1x192xf32>
    %cst_139 = arith.constant 0.000000e+00 : f32
    %356 = vector.broadcast %cst_139 : f32 to vector<1x192xf32>
    %357 = tpu.concatenate %356, %355, %356 in 0 : vector<1x192xf32>, vector<1x192xf32>, vector<1x192xf32> -> vector<3x192xf32>
    %c0_140 = arith.constant 0 : index
    %c0_141 = arith.constant 0 : index
    %358 = vector.load %arg38[%c0_140, %c0_141] : memref<576x64xf32, #tpu.memory_space<vmem>>, vector<576x64xf32>
    %c0_142 = arith.constant 0 : index
    %c0_143 = arith.constant 0 : index
    %359 = vector.load %arg39[%c0_142, %c0_143] : memref<1x64xf32, #tpu.memory_space<vmem>>, vector<1x64xf32>
    %c0_144 = arith.constant 0 : index
    %c0_145 = arith.constant 0 : index
    %360 = vector.load %arg40[%c0_144, %c0_145] : memref<576x64xf32, #tpu.memory_space<vmem>>, vector<576x64xf32>
    %c0_146 = arith.constant 0 : index
    %c0_147 = arith.constant 0 : index
    %361 = vector.load %arg41[%c0_146, %c0_147] : memref<1x64xf32, #tpu.memory_space<vmem>>, vector<1x64xf32>
    %362 = vector.extract_strided_slice %357 {offsets = [0, 0], sizes = [1, 192], strides = [1, 1]} : vector<3x192xf32> to vector<1x192xf32>
    %363 = vector.extract_strided_slice %357 {offsets = [1, 0], sizes = [1, 192], strides = [1, 1]} : vector<3x192xf32> to vector<1x192xf32>
    %364 = vector.extract_strided_slice %357 {offsets = [2, 0], sizes = [1, 192], strides = [1, 1]} : vector<3x192xf32> to vector<1x192xf32>
    %365 = tpu.concatenate %362, %363, %364 in 1 : vector<1x192xf32>, vector<1x192xf32>, vector<1x192xf32> -> vector<1x576xf32>
    %cst_148 = arith.constant dense<0.000000e+00> : vector<1x64xf32>
    %366 = tpu.matmul %365, %358, %cst_148 {dimension_numbers = #tpu.dot_dimension_numbers<[1], [0], [0], [1], [0, 0, 1, 1], [], []>} : vector<1x576xf32>, vector<576x64xf32>, vector<1x64xf32> -> vector<1x64xf32>
    %367 = arith.addf %366, %359 : vector<1x64xf32>
    %cst_149 = arith.constant 0.000000e+00 : f32
    %368 = vector.broadcast %cst_149 : f32 to vector<1x64xf32>
    %369 = arith.maximumf %367, %368 : vector<1x64xf32>
    %cst_150 = arith.constant 0.000000e+00 : f32
    %370 = vector.broadcast %cst_150 : f32 to vector<1x64xf32>
    %371 = tpu.concatenate %370, %369, %370 in 1 : vector<1x64xf32>, vector<1x64xf32>, vector<1x64xf32> -> vector<1x192xf32>
    %cst_151 = arith.constant 0.000000e+00 : f32
    %372 = vector.broadcast %cst_151 : f32 to vector<1x192xf32>
    %373 = tpu.concatenate %372, %371, %372 in 0 : vector<1x192xf32>, vector<1x192xf32>, vector<1x192xf32> -> vector<3x192xf32>
    %374 = vector.extract_strided_slice %373 {offsets = [0, 0], sizes = [1, 192], strides = [1, 1]} : vector<3x192xf32> to vector<1x192xf32>
    %375 = vector.extract_strided_slice %373 {offsets = [1, 0], sizes = [1, 192], strides = [1, 1]} : vector<3x192xf32> to vector<1x192xf32>
    %376 = vector.extract_strided_slice %373 {offsets = [2, 0], sizes = [1, 192], strides = [1, 1]} : vector<3x192xf32> to vector<1x192xf32>
    %377 = tpu.concatenate %374, %375, %376 in 1 : vector<1x192xf32>, vector<1x192xf32>, vector<1x192xf32> -> vector<1x576xf32>
    %cst_152 = arith.constant dense<0.000000e+00> : vector<1x64xf32>
    %378 = tpu.matmul %377, %360, %cst_152 {dimension_numbers = #tpu.dot_dimension_numbers<[1], [0], [0], [1], [0, 0, 1, 1], [], []>} : vector<1x576xf32>, vector<576x64xf32>, vector<1x64xf32> -> vector<1x64xf32>
    %379 = arith.addf %378, %361 : vector<1x64xf32>
    %380 = arith.addf %379, %353 : vector<1x64xf32>
    %cst_153 = arith.constant 0.000000e+00 : f32
    %381 = vector.broadcast %cst_153 : f32 to vector<1x64xf32>
    %382 = arith.maximumf %380, %381 : vector<1x64xf32>
    %c0_154 = arith.constant 0 : index
    %c0_155 = arith.constant 0 : index
    %c0_156 = arith.constant 0 : index
    %383 = vector.load %arg42[%c0_154, %c0_155, %c0_156] : memref<1x1x64xf32, #tpu.memory_space<vmem>>, vector<1x1x64xf32>
    %384 = vector.shape_cast %383 : vector<1x1x64xf32> to vector<1x64xf32>
    %385 = vector.shape_cast %382 : vector<1x64xf32> to vector<1x1x64xf32>
    tpu.vector_store %arg42[%c0_154, %c0_155, %c0_156], %385 {strides = array<i32>} : memref<1x1x64xf32, #tpu.memory_space<vmem>>, vector<1x1x64xf32>,
    return
  }
  func.func @transform_0(%arg0: i32) -> (i32, i32, i32) {
    %c0_i32 = arith.constant 0 : i32
    %c0_i32_0 = arith.constant 0 : i32
    %c0_i32_1 = arith.constant 0 : i32
    return %arg0, %c0_i32, %c0_i32_0 : i32, i32, i32
  }
  func.func @transform_1(%arg0: i32) -> (i32, i32) {
    %c0_i32 = arith.constant 0 : i32
    %c0_i32_0 = arith.constant 0 : i32
    %c0_i32_1 = arith.constant 0 : i32
    return %c0_i32, %c0_i32_0 : i32, i32
  }
  func.func @transform_2(%arg0: i32) -> (i32, i32) {
    %c0_i32 = arith.constant 0 : i32
    %c0_i32_0 = arith.constant 0 : i32
    %c0_i32_1 = arith.constant 0 : i32
    return %c0_i32, %c0_i32_0 : i32, i32
  }
  func.func @transform_3(%arg0: i32) -> (i32, i32) {
    %c0_i32 = arith.constant 0 : i32
    %c0_i32_0 = arith.constant 0 : i32
    %c0_i32_1 = arith.constant 0 : i32
    return %c0_i32, %c0_i32_0 : i32, i32
  }
  func.func @transform_4(%arg0: i32) -> (i32, i32) {
    %c0_i32 = arith.constant 0 : i32
    %c0_i32_0 = arith.constant 0 : i32
    %c0_i32_1 = arith.constant 0 : i32
    return %c0_i32, %c0_i32_0 : i32, i32
  }
  func.func @transform_5(%arg0: i32) -> (i32, i32) {
    %c0_i32 = arith.constant 0 : i32
    %c0_i32_0 = arith.constant 0 : i32
    %c0_i32_1 = arith.constant 0 : i32
    return %c0_i32, %c0_i32_0 : i32, i32
  }
  func.func @transform_6(%arg0: i32) -> (i32, i32) {
    %c0_i32 = arith.constant 0 : i32
    %c0_i32_0 = arith.constant 0 : i32
    %c0_i32_1 = arith.constant 0 : i32
    return %c0_i32, %c0_i32_0 : i32, i32
  }
  func.func @transform_7(%arg0: i32) -> (i32, i32) {
    %c0_i32 = arith.constant 0 : i32
    %c0_i32_0 = arith.constant 0 : i32
    %c0_i32_1 = arith.constant 0 : i32
    return %c0_i32, %c0_i32_0 : i32, i32
  }
  func.func @transform_8(%arg0: i32) -> (i32, i32) {
    %c0_i32 = arith.constant 0 : i32
    %c0_i32_0 = arith.constant 0 : i32
    %c0_i32_1 = arith.constant 0 : i32
    return %c0_i32, %c0_i32_0 : i32, i32
  }
  func.func @transform_9(%arg0: i32) -> (i32, i32) {
    %c0_i32 = arith.constant 0 : i32
    %c0_i32_0 = arith.constant 0 : i32
    %c0_i32_1 = arith.constant 0 : i32
    return %c0_i32, %c0_i32_0 : i32, i32
  }
  func.func @transform_10(%arg0: i32) -> (i32, i32) {
    %c0_i32 = arith.constant 0 : i32
    %c0_i32_0 = arith.constant 0 : i32
    %c0_i32_1 = arith.constant 0 : i32
    return %c0_i32, %c0_i32_0 : i32, i32
  }
  func.func @transform_11(%arg0: i32) -> (i32, i32) {
    %c0_i32 = arith.constant 0 : i32
    %c0_i32_0 = arith.constant 0 : i32
    %c0_i32_1 = arith.constant 0 : i32
    return %c0_i32, %c0_i32_0 : i32, i32
  }
  func.func @transform_12(%arg0: i32) -> (i32, i32) {
    %c0_i32 = arith.constant 0 : i32
    %c0_i32_0 = arith.constant 0 : i32
    %c0_i32_1 = arith.constant 0 : i32
    return %c0_i32, %c0_i32_0 : i32, i32
  }
  func.func @transform_13(%arg0: i32) -> (i32, i32) {
    %c0_i32 = arith.constant 0 : i32
    %c0_i32_0 = arith.constant 0 : i32
    %c0_i32_1 = arith.constant 0 : i32
    return %c0_i32, %c0_i32_0 : i32, i32
  }
  func.func @transform_14(%arg0: i32) -> (i32, i32) {
    %c0_i32 = arith.constant 0 : i32
    %c0_i32_0 = arith.constant 0 : i32
    %c0_i32_1 = arith.constant 0 : i32
    return %c0_i32, %c0_i32_0 : i32, i32
  }
  func.func @transform_15(%arg0: i32) -> (i32, i32) {
    %c0_i32 = arith.constant 0 : i32
    %c0_i32_0 = arith.constant 0 : i32
    %c0_i32_1 = arith.constant 0 : i32
    return %c0_i32, %c0_i32_0 : i32, i32
  }
  func.func @transform_16(%arg0: i32) -> (i32, i32) {
    %c0_i32 = arith.constant 0 : i32
    %c0_i32_0 = arith.constant 0 : i32
    %c0_i32_1 = arith.constant 0 : i32
    return %c0_i32, %c0_i32_0 : i32, i32
  }
  func.func @transform_17(%arg0: i32) -> (i32, i32) {
    %c0_i32 = arith.constant 0 : i32
    %c0_i32_0 = arith.constant 0 : i32
    %c0_i32_1 = arith.constant 0 : i32
    return %c0_i32, %c0_i32_0 : i32, i32
  }
  func.func @transform_18(%arg0: i32) -> (i32, i32) {
    %c0_i32 = arith.constant 0 : i32
    %c0_i32_0 = arith.constant 0 : i32
    %c0_i32_1 = arith.constant 0 : i32
    return %c0_i32, %c0_i32_0 : i32, i32
  }
  func.func @transform_19(%arg0: i32) -> (i32, i32) {
    %c0_i32 = arith.constant 0 : i32
    %c0_i32_0 = arith.constant 0 : i32
    %c0_i32_1 = arith.constant 0 : i32
    return %c0_i32, %c0_i32_0 : i32, i32
  }
  func.func @transform_20(%arg0: i32) -> (i32, i32) {
    %c0_i32 = arith.constant 0 : i32
    %c0_i32_0 = arith.constant 0 : i32
    %c0_i32_1 = arith.constant 0 : i32
    return %c0_i32, %c0_i32_0 : i32, i32
  }
  func.func @transform_21(%arg0: i32) -> (i32, i32) {
    %c0_i32 = arith.constant 0 : i32
    %c0_i32_0 = arith.constant 0 : i32
    %c0_i32_1 = arith.constant 0 : i32
    return %c0_i32, %c0_i32_0 : i32, i32
  }
  func.func @transform_22(%arg0: i32) -> (i32, i32) {
    %c0_i32 = arith.constant 0 : i32
    %c0_i32_0 = arith.constant 0 : i32
    %c0_i32_1 = arith.constant 0 : i32
    return %c0_i32, %c0_i32_0 : i32, i32
  }
  func.func @transform_23(%arg0: i32) -> (i32, i32) {
    %c0_i32 = arith.constant 0 : i32
    %c0_i32_0 = arith.constant 0 : i32
    %c0_i32_1 = arith.constant 0 : i32
    return %c0_i32, %c0_i32_0 : i32, i32
  }
  func.func @transform_24(%arg0: i32) -> (i32, i32) {
    %c0_i32 = arith.constant 0 : i32
    %c0_i32_0 = arith.constant 0 : i32
    %c0_i32_1 = arith.constant 0 : i32
    return %c0_i32, %c0_i32_0 : i32, i32
  }
  func.func @transform_25(%arg0: i32) -> (i32, i32) {
    %c0_i32 = arith.constant 0 : i32
    %c0_i32_0 = arith.constant 0 : i32
    %c0_i32_1 = arith.constant 0 : i32
    return %c0_i32, %c0_i32_0 : i32, i32
  }
  func.func @transform_26(%arg0: i32) -> (i32, i32) {
    %c0_i32 = arith.constant 0 : i32
    %c0_i32_0 = arith.constant 0 : i32
    %c0_i32_1 = arith.constant 0 : i32
    return %c0_i32, %c0_i32_0 : i32, i32
  }
  func.func @transform_27(%arg0: i32) -> (i32, i32) {
    %c0_i32 = arith.constant 0 : i32
    %c0_i32_0 = arith.constant 0 : i32
    %c0_i32_1 = arith.constant 0 : i32
    return %c0_i32, %c0_i32_0 : i32, i32
  }
  func.func @transform_28(%arg0: i32) -> (i32, i32) {
    %c0_i32 = arith.constant 0 : i32
    %c0_i32_0 = arith.constant 0 : i32
    %c0_i32_1 = arith.constant 0 : i32
    return %c0_i32, %c0_i32_0 : i32, i32
  }
  func.func @transform_29(%arg0: i32) -> (i32, i32) {
    %c0_i32 = arith.constant 0 : i32
    %c0_i32_0 = arith.constant 0 : i32
    %c0_i32_1 = arith.constant 0 : i32
    return %c0_i32, %c0_i32_0 : i32, i32
  }
  func.func @transform_30(%arg0: i32) -> (i32, i32) {
    %c0_i32 = arith.constant 0 : i32
    %c0_i32_0 = arith.constant 0 : i32
    %c0_i32_1 = arith.constant 0 : i32
    return %c0_i32, %c0_i32_0 : i32, i32
  }
  func.func @transform_31(%arg0: i32) -> (i32, i32) {
    %c0_i32 = arith.constant 0 : i32
    %c0_i32_0 = arith.constant 0 : i32
    %c0_i32_1 = arith.constant 0 : i32
    return %c0_i32, %c0_i32_0 : i32, i32
  }
  func.func @transform_32(%arg0: i32) -> (i32, i32) {
    %c0_i32 = arith.constant 0 : i32
    %c0_i32_0 = arith.constant 0 : i32
    %c0_i32_1 = arith.constant 0 : i32
    return %c0_i32, %c0_i32_0 : i32, i32
  }
  func.func @transform_33(%arg0: i32) -> (i32, i32) {
    %c0_i32 = arith.constant 0 : i32
    %c0_i32_0 = arith.constant 0 : i32
    %c0_i32_1 = arith.constant 0 : i32
    return %c0_i32, %c0_i32_0 : i32, i32
  }
  func.func @transform_34(%arg0: i32) -> (i32, i32) {
    %c0_i32 = arith.constant 0 : i32
    %c0_i32_0 = arith.constant 0 : i32
    %c0_i32_1 = arith.constant 0 : i32
    return %c0_i32, %c0_i32_0 : i32, i32
  }
  func.func @transform_35(%arg0: i32) -> (i32, i32) {
    %c0_i32 = arith.constant 0 : i32
    %c0_i32_0 = arith.constant 0 : i32
    %c0_i32_1 = arith.constant 0 : i32
    return %c0_i32, %c0_i32_0 : i32, i32
  }
  func.func @transform_36(%arg0: i32) -> (i32, i32) {
    %c0_i32 = arith.constant 0 : i32
    %c0_i32_0 = arith.constant 0 : i32
    %c0_i32_1 = arith.constant 0 : i32
    return %c0_i32, %c0_i32_0 : i32, i32
  }
  func.func @transform_37(%arg0: i32) -> (i32, i32) {
    %c0_i32 = arith.constant 0 : i32
    %c0_i32_0 = arith.constant 0 : i32
    %c0_i32_1 = arith.constant 0 : i32
    return %c0_i32, %c0_i32_0 : i32, i32
  }
  func.func @transform_38(%arg0: i32) -> (i32, i32) {
    %c0_i32 = arith.constant 0 : i32
    %c0_i32_0 = arith.constant 0 : i32
    %c0_i32_1 = arith.constant 0 : i32
    return %c0_i32, %c0_i32_0 : i32, i32
  }
  func.func @transform_39(%arg0: i32) -> (i32, i32) {
    %c0_i32 = arith.constant 0 : i32
    %c0_i32_0 = arith.constant 0 : i32
    %c0_i32_1 = arith.constant 0 : i32
    return %c0_i32, %c0_i32_0 : i32, i32
  }
  func.func @transform_40(%arg0: i32) -> (i32, i32) {
    %c0_i32 = arith.constant 0 : i32
    %c0_i32_0 = arith.constant 0 : i32
    %c0_i32_1 = arith.constant 0 : i32
    return %c0_i32, %c0_i32_0 : i32, i32
  }
  func.func @transform_41(%arg0: i32) -> (i32, i32, i32) {
    %c0_i32 = arith.constant 0 : i32
    %c0_i32_0 = arith.constant 0 : i32
    %c0_i32_1 = arith.constant 0 : i32
    return %arg0, %c0_i32, %c0_i32_0 : i32, i32, i32
  }
}

</mosaic_0001>

<bundles_post_ra>
// kernel: modern_encoder_forward.1
= control target key start
LH: loop header
LB: loop body
LE: loop exit
PB: predicated region body
PF: predicated region fallthrough
CT: control target
= control target key end

     0   :  { %s7758_s6 = smov 1   ;;  %s7759_s10 = smov 2   ;;  %s9118_s0 = inlined_call_operand.smem [shape: u32[42], index: -1, kind: input, shape index: {}] }
   0x1   :  { %s7845_s5 = sld [smem:[%s9118_s0]]   ;;  %s7760_s14 = smov 3  }
   0x2   :  { %s7850_s9 = sld [smem:[%s9118_s0 + %s7758_s6]]   ;;  %s7761_s18 = smov 4  }
   0x3   :  { %s7855_s13 = sld [smem:[%s9118_s0 + %s7759_s10]]   ;;  %s7762_s22 = smov 5  }
   0x4   :  { %s7860_s17 = sld [smem:[%s9118_s0 + %s7760_s14]]   ;;  %s7763_s26 = smov 6  }
   0x5   :  { %s7865_s21 = sld [smem:[%s9118_s0 + %s7761_s18]]   ;;  %s7764_s30 = smov 7  }
   0x6   :  { %s7870_s25 = sld [smem:[%s9118_s0 + %s7762_s22]]   ;;  %s7765_s4 = smov 8  }
   0x7   :  { %9128 = sst [smem:[#allocation44_spill]] %s7845_s5  ;;  %s7766_s10 = smov 9  }
   0x8   :  { %s7875_s29 = sld [smem:[%s9118_s0 + %s7763_s26]]   ;;  %s7767_s15 = smov 10  }
   0x9   :  { %9129 = sst [smem:[#allocation45_spill]] %s7855_s13  ;;  %s7768_s20 = smov 11  }
   0xa   :  { %9130 = sst [smem:[#allocation46_spill]] %s7860_s17  ;;  %s7769_s26 = smov 12  }
   0xb   :  { %9131 = sst [smem:[#allocation47_spill]] %s7865_s21  ;;  %s7770_s1 = smov 13  }
   0xc   :  { %s7880_s3 = sld [smem:[%s9118_s0 + %s7764_s30]]   ;;  %s7771_s7 = smov 14  }
   0xd   :  { %s7885_s8 = sld [smem:[%s9118_s0 + %s7765_s4]]   ;;  %s7773_s22 = smov 16  }
   0xe   :  { %9132 = sst [smem:[#allocation48_spill]] %s7875_s29  ;;  %s7774_s28 = smov 17  }
   0xf   :  { %s7890_s14 = sld [smem:[%s9118_s0 + %s7766_s10]]  }
  0x10   :  { %s7895_s19 = sld [smem:[%s9118_s0 + %s7767_s15]]   ;;  %s7772_s15 = smov 15  }
  0x11   :  { %s7900_s24 = sld [smem:[%s9118_s0 + %s7768_s20]]  }
  0x12   :  { %9133 = sst [smem:[#allocation49_spill]] %s7880_s3 }
  0x13   :  { %9134 = sst [smem:[#allocation50_spill]] %s7885_s8 }
  0x14   :  { %s7905_s30 = sld [smem:[%s9118_s0 + %s7769_s26]]  }
  0x15   :  { %s7910_s6 = sld [smem:[%s9118_s0 + %s7770_s1]]  }
  0x16   :  { %9135 = sst [smem:[#allocation51_spill]] %s7895_s19 }
  0x17   :  { %s7915_s12 = sld [smem:[%s9118_s0 + %s7771_s7]]   ;;  %s7775_s7 = smov 18  }
  0x18   :  { %s7920_s20 = sld [smem:[%s9118_s0 + %s7772_s15]]   ;;  %s7776_s15 = smov 19  }
  0x19   :  { %s7925_s27 = sld [smem:[%s9118_s0 + %s7773_s22]]   ;;  %s7777_s22 = smov 20  }
  0x1a   :  { %9136 = sst [smem:[#allocation52_spill]] %s7905_s30 }
  0x1b   :  { %9137 = sst [smem:[#allocation53_spill]] %s7910_s6 }
  0x1c   :  { %s7930_s4 = sld [smem:[%s9118_s0 + %s7774_s28]]   ;;  %s7778_s28 = smov 21  }
  0x1d   :  { %9138 = sst [smem:[#allocation54_spill]] %s7915_s12 }
  0x1e   :  { %s7935_s12 = sld [smem:[%s9118_s0 + %s7775_s7]]   ;;  %s7779_s7 = smov 22  }
  0x1f   :  { %9139 = sst [smem:[#allocation55_spill]] %s7925_s27 }
  0x20   :  { %s7940_s6 = sld [smem:[%s9118_s0 + %s7776_s15]]   ;;  %s7780_s15 = smov 23  }
  0x21   :  { %s7945_s27 = sld [smem:[%s9118_s0 + %s7777_s22]]   ;;  %s7781_s22 = smov 24  }
  0x22   :  { %9140 = sst [smem:[#allocation56_spill]] %s7930_s4 }
  0x23   :  { %s7950_s30 = sld [smem:[%s9118_s0 + %s7778_s28]]   ;;  %s7782_s28 = smov 25  }
  0x24   :  { %9141 = sst [smem:[#allocation57_spill]] %s7935_s12 }
  0x25   :  { %s7955_s12 = sld [smem:[%s9118_s0 + %s7779_s7]]   ;;  %s7783_s7 = smov 26  }
  0x26   :  { %s7960_s19 = sld [smem:[%s9118_s0 + %s7780_s15]]   ;;  %s7784_s15 = smov 27  }
  0x27   :  { %9142 = sst [smem:[#allocation58_spill]] %s7945_s27 }
  0x28   :  { %s7965_s27 = sld [smem:[%s9118_s0 + %s7781_s22]]   ;;  %s7785_s22 = smov 28  }
  0x29   :  { %s7970_s8 = sld [smem:[%s9118_s0 + %s7782_s28]]   ;;  %s7786_s28 = smov 29  }
  0x2a   :  { %s7980_s29 = sld [smem:[%s9118_s0 + %s7784_s15]]   ;;  %s7788_s15 = smov 31  }
  0x2b   :  { %9143 = sst [smem:[#allocation59_spill]] %s7955_s12 }
  0x2c   :  { %9144 = sst [smem:[#allocation60_spill]] %s7960_s19 }
  0x2d   :  { %s7975_s12 = sld [smem:[%s9118_s0 + %s7783_s7]]   ;;  %s7787_s7 = smov 30  }
  0x2e   :  { %9145 = sst [smem:[#allocation61_spill]] %s7965_s27 }
  0x2f   :  { %s7985_s27 = sld [smem:[%s9118_s0 + %s7785_s22]]   ;;  %s7789_s22 = smov 32  }
  0x30   :  { %9147 = sst [smem:[#allocation63_spill]] %s7980_s29 }
  0x31   :  { %s7990_s21 = sld [smem:[%s9118_s0 + %s7786_s28]]   ;;  %s7790_s28 = smov 33  }
  0x32   :  { %s8000_s13 = sld [smem:[%s9118_s0 + %s7788_s15]]   ;;  %s7792_s15 = smov 35  }
  0x33   :  { %9146 = sst [smem:[#allocation62_spill]] %s7975_s12 }
  0x34   :  { %s7995_s12 = sld [smem:[%s9118_s0 + %s7787_s7]]   ;;  %s7791_s7 = smov 34  }
  0x35   :  { %9148 = sst [smem:[#allocation64_spill]] %s7985_s27 }
  0x36   :  { %s8005_s27 = sld [smem:[%s9118_s0 + %s7789_s22]]   ;;  %s7793_s22 = smov 36  }
  0x37   :  { %s8010_s5 = sld [smem:[%s9118_s0 + %s7790_s28]]   ;;  %s7794_s28 = smov 37  }
  0x38   :  { %9150 = sst [smem:[#allocation66_spill]] %s8000_s13 }
  0x39   :  { %s8020_s13 = sld [smem:[%s9118_s0 + %s7792_s15]]   ;;  %s7796_s15 = smov 39  }
  0x3a   :  { %9149 = sst [smem:[#allocation65_spill]] %s7995_s12 }
  0x3b   :  { %s8015_s12 = sld [smem:[%s9118_s0 + %s7791_s7]]   ;;  %s7795_s7 = smov 38  }
  0x3c   :  { %9151 = sst [smem:[#allocation67_spill]] %s8005_s27 }
  0x3d   :  { %s8025_s27 = sld [smem:[%s9118_s0 + %s7793_s22]]   ;;  %s7797_s22 = smov 40  }
  0x3e   :  { %s8030_s29 = sld [smem:[%s9118_s0 + %s7794_s28]]   ;;  %s7798_s28 = smov 41  }
  0x3f   :  { %9153 = sst [smem:[#allocation69_spill]] %s8020_s13 }
  0x40   :  { %s8040_s13 = sld [smem:[%s9118_s0 + %s7796_s15]]  }
  0x41   :  { %9152 = sst [smem:[#allocation68_spill]] %s8015_s12 }
  0x42   :  { %s8035_s12 = sld [smem:[%s9118_s0 + %s7795_s7]]  }
  0x43   :  { %9154 = sst [smem:[#allocation70_spill]] %s8025_s27 }
  0x44   :  { %s8045_s27 = sld [smem:[%s9118_s0 + %s7797_s22]]  }
  0x45   :  { %s8050_s19 = sld [smem:[%s9118_s0 + %s7798_s28]]  }
  0x46   :  { %88 = vsyncpa [#allocation3], 0 }
  0x47   :  { %89 = vsyncpa [#allocation6], 0 }
  0x48   :  { %90 = vsyncpa [#allocation9], 0 }
  0x49   :  { %91 = vsyncpa [#allocation12], 0 }
  0x4a   :  { %92 = vsyncpa [#allocation15], 0 }
  0x4b   :  { %93 = vsyncpa [#allocation18], 0 }
  0x4c   :  { %94 = vsyncpa [#allocation21], 0 }
  0x4d   :  { %95 = vsyncpa [#allocation24], 0 }
  0x4e   :  { %96 = vsyncpa [#allocation27], 0 }
  0x4f   :  { %97 = vsyncpa [#allocation30], 0 }
  0x50   :  { %98 = vsyncpa [#allocation4], 0 }
  0x51   :  { %100 = vsyncpa [#allocation4 + $0x1], 0  ;;  %s8052_s7 = smov 0   ;;  %s8054_s10 = smov 0  }
  0x52   :  { %s8056_s11 = smov 0   ;;  %s8058_s0 = smov 0  }
  0x53 LB: > { %9155 = sst [smem:[#allocation71_spill]] %s7744_s7  ;;  %s8073_s15 = sadd.s32 4294967295, %s7756_s0   ;;  %s7756_s0 = sphi %s8058_s0, %s9218_s0   ;;  %s7752_s11 = sphi %s8056_s11, %s9223_s11   ;;  %s7748_s10 = sphi %s8054_s10, %s9222_s10   ;;  %s7744_s7 = sphi %s8052_s7, %s9221_s7  }
  0x54   : > { %9156 = sst [smem:[#allocation72_spill]] %s7752_s11  ;;  %s5816_s16 = sadd.s32 4294967294, %s7756_s0  }
  0x55   : > { %9157 = sst [smem:[#allocation73_spill]] %s7756_s0  ;;  %s8077_s18 = sadd.s32 1, %s7756_s0  }
  0x56   : > { %9158 = sst [smem:[#allocation74_spill]] %s8077_s18  ;;  %s979_s22 = sadd.s32 1, %s7752_s11 }
  0x57   : > { %s976_s23 = ssub.s32 %s7756_s0, %s8077_s18  ;;  %p989_p0 = scmp.ne.s32.totalorder %s7752_s11, %s7748_s10 }
  0x58   : > { %p977_p1 = scmp.eq.s32.totalorder %s976_s23, 0  ;;  %p990_p2 = scmp.eq.s32.totalorder %s8073_s15, 1 }
  0x59   : > { %p995_p3 = scmp.ne.s32.totalorder %s7748_s10, %s7744_s7  ;;  %p996_p4 = scmp.eq.s32.totalorder %s5816_s16, 1 }
  0x5a   : > { %s8088_s26 = scalar_select %p977_p1, %s7752_s11, %s979_s22  }
  0x5b   : > { %p8090_p5 = por %p990_p2, %p989_p0  ;;  %p8094_p6 = por %p996_p4, %p995_p3 }
  0x5c   : > { %9159 = sst [smem:[#allocation75_spill]] %s8088_s26  ;;  %p5817_p7 = scmp.ge.s32.totalorder %s7756_s0, 1 }
  0x5d   : > { %s9160_s28 = scalar_select %p8090_p5, 1, 0 }
  0x5e   : > { %s9161_s1 = scalar_select %p8094_p6, 1, 0 }
  0x5f   : > { %p1003_p8 = scmp.lt.s32.totalorder %s7756_s0, 3  ;;  %p9126_p9 = scmp.eq.s32.totalorder %s8073_s15, 0 }
  0x60   : > { %9162 = sst [smem:[#allocation76_spill]] %s9161_s1  ;;  %s7799_s16 = smov [#allocation5]  }
  0x61   : > { %p8101_p10 = pnand %p5817_p7, %p1003_p8  ;;  %s1031_s22 = sshll.u32 %s7799_s16, 4  ;;  %s1032_s22 = int_to_ptr.vmem [resolvable:$true] %s1031_s22 }
  0x62   : > { %s7800_s26 = smov [#allocation8]   ;;  %s7801_s18 = smov [#allocation11]  }
  0x63   : > { %p6946_p11 = pneg %p8101_p10  ;;  %s1063_s11 = sshll.u32 %s7800_s26, 4  ;;  %s1064_s11 = int_to_ptr.vmem [resolvable:$true] %s1063_s11 }
  0x64   : > { %s1095_s1 = sshll.u32 %s7801_s18, 4  ;;  %s7173_s0 = scalar_lea.vmem %s1032_s22, 3840  ;;  %s1096_s1 = int_to_ptr.vmem [resolvable:$true] %s1095_s1 }
  0x65   : > { %p8109_p12 = pnand %p9126_p9, %p6946_p11  ;;  %p7174_p0 = scmp.ne.s32.totalorder %s1032_s22, %s7173_s0 }
  0x66   : > { %p7181_p3 = scmp.lt.s32.totalorder %s1032_s22, %s1032_s22  ;;  %p7182_p4 = scmp.lt.s32.totalorder %s7173_s0, %s7173_s0 }
  0x67   : > { %p8115_p13 = pneg %p8109_p12 }
  0x68   : > { %p7183_p7 = por %p7182_p4, %p7181_p3 }
  0x69   : > { %p7176_p1 = pnand %p7174_p0, %p8115_p13 }
  0x6b   : > { %p7177_p2 = pneg %p7176_p1 }
  0x6d   : > { %p7184_p8 = pnand %p7183_p7, %p7177_p2 }
  0x6f   : > { %7187 = shalt.err (!%p7184_p8)
}
  0x70   : > { %s7802_s26 = smov 128   ;;  %s9166_s17 = sld [smem:[#allocation46_spill]] }
  0x71   : > { %s7803_s18 = smov 8   ;;  %s7199_s16 = scalar_lea.vmem %s1064_s11, 3840 }
  0x72   : > { %p7200_p11 = scmp.ne.s32.totalorder %s1064_s11, %s7199_s16  ;;  %p7207_p9 = scmp.lt.s32.totalorder %s1064_s11, %s1064_s11 }
  0x73   : > { %p7208_p6 = scmp.lt.s32.totalorder %s7199_s16, %s7199_s16 }
  0x74   : > { %p7202_p0 = pnand %p7200_p11, %p8115_p13 }
  0x75   : > { %p7209_p3 = por %p7208_p6, %p7207_p9 }
  0x76   : > { %6952 = dma.hbm_to_vmem [thread:$0]  (!%p8109_p12), %s9166_s17, 3840, %s1032_s22, [#allocation6], %s7802_s26, %s7802_s26, %s7803_s18  }
  0x77   : > { %p7203_p1 = pneg %p7202_p0 }
  0x79   : > { %p7210_p2 = pnand %p7209_p3, %p7203_p1 }
  0x7b   : > { %7213 = shalt.err (!%p7210_p2)
}
  0x7c   : > { %s9167_s3 = sld [smem:[#allocation49_spill]]  ;;  %s7225_s0 = scalar_lea.vmem %s1096_s1, 3840 }
  0x7d   : > { %p7226_p4 = scmp.ne.s32.totalorder %s1096_s1, %s7225_s0  ;;  %p7233_p11 = scmp.lt.s32.totalorder %s1096_s1, %s1096_s1 }
  0x7e   : > { %p7234_p0 = scmp.lt.s32.totalorder %s7225_s0, %s7225_s0 }
  0x7f   : > { %p7228_p7 = pnand %p7226_p4, %p8115_p13 }
  0x80   : > { %p7235_p5 = por %p7234_p0, %p7233_p11 }
  0x81   : > { %p7229_p8 = pneg %p7228_p7 }
  0x82   : > { %6958 = dma.hbm_to_vmem [thread:$0]  (!%p8109_p12), %s9167_s3, 3840, %s1064_s11, [#allocation9], %s7802_s26, %s7802_s26, %s7803_s18  }
  0x83   : > { %p7236_p6 = pnand %p7235_p5, %p7229_p8 }
  0x85   : > { %7239 = shalt.err (!%p7236_p6)
}
  0x86   : > { %6964 = dma.hbm_to_vmem [thread:$0]  (!%p8109_p12), %s7900_s24, 3840, %s1096_s1, [#allocation12], %s7802_s26, %s7802_s26, %s7803_s18  }
  0x87   : > { %s7804_s11 = smov [#allocation14]   ;;  %s7805_s16 = smov [#allocation17]  }
  0x88   : > { %s1133_s22 = sshll.u32 %s7804_s11, 4  ;;  %s1165_s3 = sshll.u32 %s7805_s16, 4  ;;  %s1134_s22 = int_to_ptr.vmem [resolvable:$true] %s1133_s22  ;;  %s1166_s3 = int_to_ptr.vmem [resolvable:$true] %s1165_s3 }
  0x89   : > { %s7251_s17 = scalar_lea.vmem %s1134_s22, 4608  ;;  %p7259_p5 = scmp.lt.s32.totalorder %s1134_s22, %s1134_s22 }
  0x8a   : > { %p7252_p9 = scmp.ne.s32.totalorder %s1134_s22, %s7251_s17  ;;  %p7260_p2 = scmp.lt.s32.totalorder %s7251_s17, %s7251_s17 }
  0x8c   : > { %p7254_p1 = pnand %p7252_p9, %p8115_p13  ;;  %p7261_p4 = por %p7260_p2, %p7259_p5 }
  0x8e   : > { %p7255_p3 = pneg %p7254_p1 }
  0x90   : > { %p7262_p7 = pnand %p7261_p4, %p7255_p3 }
  0x92   : > { %7265 = shalt.err (!%p7262_p7)
}
  0x93   : > { %s9168_s4 = sld [smem:[#allocation56_spill]]  ;;  %s7277_s1 = scalar_lea.vmem %s1166_s3, 4608 }
  0x94   : > { %p7278_p8 = scmp.ne.s32.totalorder %s1166_s3, %s7277_s1  ;;  %p7285_p6 = scmp.lt.s32.totalorder %s1166_s3, %s1166_s3 }
  0x95   : > { %p7286_p9 = scmp.lt.s32.totalorder %s7277_s1, %s7277_s1 }
  0x96   : > { %p7280_p11 = pnand %p7278_p8, %p8115_p13 }
  0x97   : > { %p7287_p1 = por %p7286_p9, %p7285_p6 }
  0x98   : > { %p7281_p0 = pneg %p7280_p11 }
  0x99   : > { %6970 = dma.hbm_to_vmem [thread:$0]  (!%p8109_p12), %s9168_s4, 4608, %s1134_s22, [#allocation15], %s7802_s26, %s7802_s26, %s7803_s18  }
  0x9a   : > { %p7288_p5 = pnand %p7287_p1, %p7281_p0 }
  0x9c   : > { %7291 = shalt.err (!%p7288_p5)
}
  0x9d   : > { %6976 = dma.hbm_to_vmem [thread:$0]  (!%p8109_p12), %s7950_s30, 4608, %s1166_s3, [#allocation18], %s7802_s26, %s7802_s26, %s7803_s18  }
  0x9e   : > { %s7806_s17 = smov [#allocation20]   ;;  %s7807_s11 = smov [#allocation23]  }
  0x9f   : > { %s1197_s0 = sshll.u32 %s7806_s17, 4  ;;  %s1229_s22 = sshll.u32 %s7807_s11, 4  ;;  %s1198_s0 = int_to_ptr.vmem [resolvable:$true] %s1197_s0  ;;  %s1230_s22 = int_to_ptr.vmem [resolvable:$true] %s1229_s22 }
  0xa0   : > { %s7303_s16 = scalar_lea.vmem %s1198_s0, 1024  ;;  %p7311_p7 = scmp.lt.s32.totalorder %s1198_s0, %s1198_s0 }
  0xa1   : > { %p7304_p3 = scmp.ne.s32.totalorder %s1198_s0, %s7303_s16  ;;  %p7312_p8 = scmp.lt.s32.totalorder %s7303_s16, %s7303_s16 }
  0xa3   : > { %p7306_p2 = pnand %p7304_p3, %p8115_p13  ;;  %p7313_p11 = por %p7312_p8, %p7311_p7 }
  0xa5   : > { %p7307_p4 = pneg %p7306_p2 }
  0xa7   : > { %p7314_p0 = pnand %p7313_p11, %p7307_p4 }
  0xa9   : > { %7317 = shalt.err (!%p7314_p0)
}
  0xaa   : > { %6982 = dma.hbm_to_vmem [thread:$0]  (!%p8109_p12), %s7970_s8, 1024, %s1198_s0, [#allocation21], %s7802_s26, %s7802_s26, %s7803_s18  }
  0xab   : > { %s7329_s3 = scalar_lea.vmem %s1230_s22, 6144  ;;  %p7337_p5 = scmp.lt.s32.totalorder %s1230_s22, %s1230_s22 }
  0xac   : > { %p7330_p6 = scmp.ne.s32.totalorder %s1230_s22, %s7329_s3  ;;  %p7338_p3 = scmp.lt.s32.totalorder %s7329_s3, %s7329_s3 }
  0xae   : > { %p7332_p9 = pnand %p7330_p6, %p8115_p13  ;;  %p7339_p2 = por %p7338_p3, %p7337_p5 }
  0xb0   : > { %p7333_p1 = pneg %p7332_p9 }
  0xb2   : > { %p7340_p7 = pnand %p7339_p2, %p7333_p1 }
  0xb4   : > { %7343 = shalt.err (!%p7340_p7)
}
  0xb5   : > { %6988 = dma.hbm_to_vmem [thread:$0]  (!%p8109_p12), %s7990_s21, 6144, %s1230_s22, [#allocation24], %s7802_s26, %s7802_s26, %s7803_s18  }
  0xb6   : > { %s7808_s1 = smov [#allocation26]   ;;  %s7809_s0 = smov [#allocation29]  }
  0xb7   : > { %s1261_s17 = sshll.u32 %s7808_s1, 4  ;;  %s1293_s11 = sshll.u32 %s7809_s0, 4  ;;  %s1262_s17 = int_to_ptr.vmem [resolvable:$true] %s1261_s17  ;;  %s1294_s11 = int_to_ptr.vmem [resolvable:$true] %s1293_s11 }
  0xb8   : > { %s7355_s16 = scalar_lea.vmem %s1262_s17, 9216  ;;  %p7363_p0 = scmp.lt.s32.totalorder %s1262_s17, %s1262_s17 }
  0xb9   : > { %p7356_p4 = scmp.ne.s32.totalorder %s1262_s17, %s7355_s16  ;;  %p7364_p6 = scmp.lt.s32.totalorder %s7355_s16, %s7355_s16 }
  0xbb   : > { %p7358_p8 = pnand %p7356_p4, %p8115_p13  ;;  %p7365_p9 = por %p7364_p6, %p7363_p0 }
  0xbd   : > { %p7359_p11 = pneg %p7358_p8 }
  0xbf   : > { %p7366_p1 = pnand %p7365_p9, %p7359_p11 }
  0xc1   : > { %7369 = shalt.err (!%p7366_p1)
}
  0xc2   : > { %6994 = dma.hbm_to_vmem [thread:$0]  (!%p8109_p12), %s8010_s5, 9216, %s1262_s17, [#allocation27], %s7802_s26, %s7802_s26, %s7803_s18  }
  0xc3   : > { %s7381_s22 = scalar_lea.vmem %s1294_s11, 9216  ;;  %p7389_p7 = scmp.lt.s32.totalorder %s1294_s11, %s1294_s11 }
  0xc4   : > { %p7382_p5 = scmp.ne.s32.totalorder %s1294_s11, %s7381_s22  ;;  %p7390_p4 = scmp.lt.s32.totalorder %s7381_s22, %s7381_s22 }
  0xc6   : > { %p7384_p3 = pnand %p7382_p5, %p8115_p13  ;;  %p7391_p8 = por %p7390_p4, %p7389_p7 }
  0xc8   : > { %p7385_p2 = pneg %p7384_p3 }
  0xca   : > { %p7392_p0 = pnand %p7391_p8, %p7385_p2 }
  0xcc   : > { %7395 = shalt.err (!%p7392_p0)
}
  0xcd   : > { %7000 = dma.hbm_to_vmem [thread:$0]  (!%p8109_p12), %s8030_s29, 9216, %s1294_s11, [#allocation30], %s7802_s26, %s7802_s26, %s7803_s18  }
  0xce   : > { %s7810_s3 = smov [#allocation2]   ;;  %s7811_s17 = smov [#allocation7]  }
  0xcf   : > { %s1015_s1 = sshll.u32 %s7810_s3, 4  ;;  %s1047_s0 = sshll.u32 %s7811_s17, 4  ;;  %s1016_s1 = int_to_ptr.vmem [resolvable:$true] %s1015_s1  ;;  %s1048_s0 = int_to_ptr.vmem [resolvable:$true] %s1047_s0 }
  0xd0   : > { %s7407_s16 = scalar_lea.vmem %s1016_s1, 7424  ;;  %p7415_p1 = scmp.lt.s32.totalorder %s1016_s1, %s1016_s1 }
  0xd1   : > { %p7408_p11 = scmp.ne.s32.totalorder %s1016_s1, %s7407_s16  ;;  %p7416_p5 = scmp.lt.s32.totalorder %s7407_s16, %s7407_s16 }
  0xd3   : > { %p7410_p6 = pnand %p7408_p11, %p8115_p13  ;;  %p7417_p3 = por %p7416_p5, %p7415_p1 }
  0xd5   : > { %p7411_p9 = pneg %p7410_p6 }
  0xd7   : > { %p7418_p2 = pnand %p7417_p3, %p7411_p9 }
  0xd9   : > { %7421 = shalt.err (!%p7418_p2)
}
  0xda   : > { %6949 = dma.hbm_to_vmem [thread:$0]  (!%p8109_p12), %s7850_s9, 7424, %s1016_s1, [#allocation3], %s7802_s26, %s7802_s26, %s7803_s18  }
  0xdb   : > { %s7433_s11 = scalar_lea.vmem %s1048_s0, 3840  ;;  %p7441_p0 = scmp.lt.s32.totalorder %s1048_s0, %s1048_s0 }
  0xdc   : > { %p7434_p7 = scmp.ne.s32.totalorder %s1048_s0, %s7433_s11  ;;  %p7442_p11 = scmp.lt.s32.totalorder %s7433_s11, %s7433_s11 }
  0xde   : > { %p7436_p4 = pnand %p7434_p7, %p8115_p13  ;;  %p7443_p6 = por %p7442_p11, %p7441_p0 }
  0xe0   : > { %p7437_p8 = pneg %p7436_p4 }
  0xe2   : > { %p7444_p1 = pnand %p7443_p6, %p7437_p8 }
  0xe4   : > { %7447 = shalt.err (!%p7444_p1)
}
  0xe5   : > { %6955 = dma.hbm_to_vmem [thread:$0]  (!%p8109_p12), %s7870_s25, 3840, %s1048_s0, [#allocation6], %s7802_s26, %s7802_s26, %s7803_s18  }
  0xe6   : > { %s7812_s22 = smov [#allocation10]   ;;  %s7813_s1 = smov [#allocation13]  }
  0xe7   : > { %s1079_s3 = sshll.u32 %s7812_s22, 4  ;;  %s1117_s17 = sshll.u32 %s7813_s1, 4  ;;  %s1080_s3 = int_to_ptr.vmem [resolvable:$true] %s1079_s3  ;;  %s1118_s17 = int_to_ptr.vmem [resolvable:$true] %s1117_s17 }
  0xe8   : > { %s7459_s16 = scalar_lea.vmem %s1080_s3, 3840  ;;  %p7467_p2 = scmp.lt.s32.totalorder %s1080_s3, %s1080_s3 }
  0xe9   : > { %p7460_p9 = scmp.ne.s32.totalorder %s1080_s3, %s7459_s16  ;;  %p7468_p7 = scmp.lt.s32.totalorder %s7459_s16, %s7459_s16 }
  0xeb   : > { %p7462_p5 = pnand %p7460_p9, %p8115_p13  ;;  %p7469_p4 = por %p7468_p7, %p7467_p2 }
  0xed   : > { %p7463_p3 = pneg %p7462_p5 }
  0xef   : > { %p7470_p8 = pnand %p7469_p4, %p7463_p3 }
  0xf1   : > { %7473 = shalt.err (!%p7470_p8)
}
  0xf2   : > { %6961 = dma.hbm_to_vmem [thread:$0]  (!%p8109_p12), %s7890_s14, 3840, %s1080_s3, [#allocation9], %s7802_s26, %s7802_s26, %s7803_s18  }
  0xf3   : > { %s7485_s0 = scalar_lea.vmem %s1118_s17, 1024  ;;  %p7493_p1 = scmp.lt.s32.totalorder %s1118_s17, %s1118_s17 }
  0xf4   : > { %p7486_p0 = scmp.ne.s32.totalorder %s1118_s17, %s7485_s0  ;;  %p7494_p9 = scmp.lt.s32.totalorder %s7485_s0, %s7485_s0 }
  0xf6   : > { %p7488_p11 = pnand %p7486_p0, %p8115_p13  ;;  %p7495_p5 = por %p7494_p9, %p7493_p1 }
  0xf8   : > { %p7489_p6 = pneg %p7488_p11 }
  0xfa   : > { %p7496_p2 = pnand %p7495_p5, %p7489_p6 }
  0xfc   : > { %7499 = shalt.err (!%p7496_p2)
}
  0xfd   : > { %6967 = dma.hbm_to_vmem [thread:$0]  (!%p8109_p12), %s7920_s20, 1024, %s1118_s17, [#allocation12], %s7802_s26, %s7802_s26, %s7803_s18  }
  0xfe   : > { %s7814_s11 = smov [#allocation16]   ;;  %s7815_s3 = smov [#allocation19]  }
  0xff   : > { %s1149_s22 = sshll.u32 %s7814_s11, 4  ;;  %s1181_s1 = sshll.u32 %s7815_s3, 4  ;;  %s1150_s22 = int_to_ptr.vmem [resolvable:$true] %s1149_s22  ;;  %s1182_s1 = int_to_ptr.vmem [resolvable:$true] %s1181_s1 }
 0x100   : > { %s7511_s16 = scalar_lea.vmem %s1150_s22, 4608  ;;  %p7519_p8 = scmp.lt.s32.totalorder %s1150_s22, %s1150_s22 }
 0x101   : > { %p7512_p3 = scmp.ne.s32.totalorder %s1150_s22, %s7511_s16  ;;  %p7520_p0 = scmp.lt.s32.totalorder %s7511_s16, %s7511_s16 }
 0x103   : > { %p7514_p7 = pnand %p7512_p3, %p8115_p13  ;;  %p7521_p11 = por %p7520_p0, %p7519_p8 }
 0x105   : > { %p7515_p4 = pneg %p7514_p7 }
 0x107   : > { %p7522_p6 = pnand %p7521_p11, %p7515_p4 }
 0x109   : > { %7525 = shalt.err (!%p7522_p6)
}
 0x10a   : > { %6973 = dma.hbm_to_vmem [thread:$0]  (!%p8109_p12), %s7940_s6, 4608, %s1150_s22, [#allocation15], %s7802_s26, %s7802_s26, %s7803_s18  }
 0x10b   : > { %s7537_s17 = scalar_lea.vmem %s1182_s1, 6144  ;;  %p7545_p2 = scmp.lt.s32.totalorder %s1182_s1, %s1182_s1 }
 0x10c   : > { %p7538_p1 = scmp.ne.s32.totalorder %s1182_s1, %s7537_s17  ;;  %p7546_p3 = scmp.lt.s32.totalorder %s7537_s17, %s7537_s17 }
 0x10e   : > { %p7540_p9 = pnand %p7538_p1, %p8115_p13  ;;  %p7547_p7 = por %p7546_p3, %p7545_p2 }
 0x110   : > { %p7541_p5 = pneg %p7540_p9 }
 0x112   : > { %p7548_p8 = pnand %p7547_p7, %p7541_p5 }
 0x114   : > { %7551 = shalt.err (!%p7548_p8)
}
 0x115   : > { %s9169_s0 = sld [smem:[#allocation60_spill]]  ;;  %s7816_s11 = smov [#allocation22]  }
 0x116   : > { %s1213_s22 = sshll.u32 %s7816_s11, 4  ;;  %s7817_s3 = smov [#allocation25]   ;;  %s1214_s22 = int_to_ptr.vmem [resolvable:$true] %s1213_s22 }
 0x117   : > { %s1245_s16 = sshll.u32 %s7817_s3, 4  ;;  %s7563_s4 = scalar_lea.vmem %s1214_s22, 6144  ;;  %s1246_s16 = int_to_ptr.vmem [resolvable:$true] %s1245_s16 }
 0x118   : > { %p7564_p4 = scmp.ne.s32.totalorder %s1214_s22, %s7563_s4  ;;  %p7571_p6 = scmp.lt.s32.totalorder %s1214_s22, %s1214_s22 }
 0x119   : > { %p7572_p1 = scmp.lt.s32.totalorder %s7563_s4, %s7563_s4 }
 0x11a   : > { %p7566_p0 = pnand %p7564_p4, %p8115_p13 }
 0x11b   : > { %6979 = dma.hbm_to_vmem [thread:$0]  (!%p8109_p12), %s9169_s0, 6144, %s1182_s1, [#allocation18], %s7802_s26, %s7802_s26, %s7803_s18  }
 0x11c   : > { %p7567_p11 = pneg %p7566_p0  ;;  %p7573_p9 = por %p7572_p1, %p7571_p6 }
 0x11e   : > { %p7574_p5 = pnand %p7573_p9, %p7567_p11 }
 0x120   : > { %7577 = shalt.err (!%p7574_p5)
}
 0x121   : > { %s9170_s1 = sld [smem:[#allocation63_spill]]  ;;  %s7589_s17 = scalar_lea.vmem %s1246_s16, 6144 }
 0x122   : > { %p7590_p2 = scmp.ne.s32.totalorder %s1246_s16, %s7589_s17  ;;  %p7597_p8 = scmp.lt.s32.totalorder %s1246_s16, %s1246_s16 }
 0x123   : > { %p7598_p4 = scmp.lt.s32.totalorder %s7589_s17, %s7589_s17 }
 0x124   : > { %p7592_p3 = pnand %p7590_p2, %p8115_p13 }
 0x125   : > { %p7599_p0 = por %p7598_p4, %p7597_p8 }
 0x126   : > { %p7593_p7 = pneg %p7592_p3 }
 0x127   : > { %6985 = dma.hbm_to_vmem [thread:$0]  (!%p8109_p12), %s9170_s1, 6144, %s1214_s22, [#allocation21], %s7802_s26, %s7802_s26, %s7803_s18  }
 0x128   : > { %p7600_p6 = pnand %p7599_p0, %p7593_p7 }
 0x12a   : > { %7603 = shalt.err (!%p7600_p6)
}
 0x12b   : > { %s9171_s4 = sld [smem:[#allocation66_spill]]  ;;  %s7818_s0 = smov [#allocation28]  }
 0x12c   : > { %s1277_s11 = sshll.u32 %s7818_s0, 4  ;;  %s7819_s22 = smov [#allocation31]   ;;  %s1278_s11 = int_to_ptr.vmem [resolvable:$true] %s1277_s11 }
 0x12d   : > { %s1309_s3 = sshll.u32 %s7819_s22, 4  ;;  %s7615_s1 = scalar_lea.vmem %s1278_s11, 1024  ;;  %s1310_s3 = int_to_ptr.vmem [resolvable:$true] %s1309_s3 }
 0x12e   : > { %p7616_p11 = scmp.ne.s32.totalorder %s1278_s11, %s7615_s1  ;;  %p7623_p5 = scmp.lt.s32.totalorder %s1278_s11, %s1278_s11 }
 0x12f   : > { %p7624_p2 = scmp.lt.s32.totalorder %s7615_s1, %s7615_s1 }
 0x130   : > { %p7618_p1 = pnand %p7616_p11, %p8115_p13 }
 0x131   : > { %6991 = dma.hbm_to_vmem [thread:$0]  (!%p8109_p12), %s9171_s4, 6144, %s1246_s16, [#allocation24], %s7802_s26, %s7802_s26, %s7803_s18  }
 0x132   : > { %p7619_p9 = pneg %p7618_p1  ;;  %p7625_p3 = por %p7624_p2, %p7623_p5 }
 0x134   : > { %p7626_p7 = pnand %p7625_p3, %p7619_p9 }
 0x136   : > { %7629 = shalt.err (!%p7626_p7)
}
 0x137   : > { %s9172_s16 = sld [smem:[#allocation69_spill]]  ;;  %s7641_s17 = scalar_lea.vmem %s1310_s3, 9216 }
 0x138   : > { %p7642_p8 = scmp.ne.s32.totalorder %s1310_s3, %s7641_s17  ;;  %p7649_p6 = scmp.lt.s32.totalorder %s1310_s3, %s1310_s3 }
 0x139   : > { %p7650_p11 = scmp.lt.s32.totalorder %s7641_s17, %s7641_s17 }
 0x13a   : > { %p7644_p4 = pnand %p7642_p8, %p8115_p13 }
 0x13b   : > { %p7651_p1 = por %p7650_p11, %p7649_p6 }
 0x13c   : > { %p7645_p0 = pneg %p7644_p4 }
 0x13d   : > { %6997 = dma.hbm_to_vmem [thread:$0]  (!%p8109_p12), %s9172_s16, 1024, %s1278_s11, [#allocation27], %s7802_s26, %s7802_s26, %s7803_s18  }
 0x13e   : > { %p7652_p5 = pnand %p7651_p1, %p7645_p0 }
 0x140   : > { %7655 = shalt.err (!%p7652_p5)
}
 0x141   : > { %7003 = dma.hbm_to_vmem [thread:$0]  (!%p8109_p12), %s8040_s13, 9216, %s1310_s3, [#allocation30], %s7802_s26, %s7802_s26, %s7803_s18  }
 0x142   : > { %1336 = sbr.rel (%p8101_p10) target bundleno = 7742 (0x1e3e), region = 184  ;;  %p9173_p9 = scmp.eq.s32.totalorder (!%p8101_p10), %s8073_s15, 0 }
 0x147   : > { %7699 = dma.done.wait (%p9173_p9), [#allocation3], 7424   ;;  %p9174_p13 = pmov %p9173_p9 }
 0x148   : > { %p9175_p2 = pmov %p9173_p9 }
 0x149   : > { %7701 = vsyncadd (%p9174_p13), [#allocation3], 4294959872 }
 0x14a   : > { %7703 = dma.done.wait (%p9175_p2), [#allocation6], 7680   ;;  %p9176_p3 = pmov %p9175_p2 }
 0x14b   : > { %p9177_p7 = pmov %p9175_p2 }
 0x14c   : > { %7705 = vsyncadd (%p9176_p3), [#allocation6], 4294959616 }
 0x14d   : > { %7707 = dma.done.wait (%p9177_p7), [#allocation9], 7680   ;;  %p9178_p12 = pmov %p9175_p2 }
 0x14e   : > { %p9179_p10 = pmov %p9175_p2 }
 0x14f   : > { %7709 = vsyncadd (%p9178_p12), [#allocation9], 4294959616 }
 0x150   : > { %7711 = dma.done.wait (%p9179_p10), [#allocation12], 4864   ;;  %p9180_p8 = pmov %p9175_p2 }
 0x151   : > { %p9181_p4 = pmov %p9175_p2 }
 0x152   : > { %7713 = vsyncadd (%p9180_p8), [#allocation12], 4294962432 }
 0x153   : > { %7715 = dma.done.wait (%p9181_p4), [#allocation15], 9216   ;;  %p9182_p0 = pmov %p9175_p2 }
 0x155   : > { %7717 = vsyncadd (%p9182_p0), [#allocation15], 4294958080  ;;  %p9183_p6 = pmov %p9182_p0 }
 0x156   : > { %p9184_p11 = pmov %p9182_p0 }
 0x157   : > { %7719 = dma.done.wait (%p9183_p6), [#allocation18], 10752  }
 0x158   : > { %7721 = vsyncadd (%p9184_p11), [#allocation18], 4294956544  ;;  %p9185_p1 = pmov %p9182_p0 }
 0x159   : > { %p9186_p5 = pmov %p9182_p0 }
 0x15a   : > { %7723 = dma.done.wait (%p9185_p1), [#allocation21], 7168  }
 0x15b   : > { %7725 = vsyncadd (%p9186_p5), [#allocation21], 4294960128  ;;  %p9187_p9 = pmov %p9182_p0 }
 0x15c   : > { %p9188_p13 = pmov %p9182_p0 }
 0x15d   : > { %7727 = dma.done.wait (%p9187_p9), [#allocation24], 12288  }
 0x15e   : > { %7729 = vsyncadd (%p9188_p13), [#allocation24], 4294955008  ;;  %p9189_p2 = pmov %p9182_p0 }
 0x15f   : > { %p9190_p3 = pmov %p9182_p0 }
 0x160   : > { %7731 = dma.done.wait (%p9189_p2), [#allocation27], 10240  }
 0x161   : > { %7733 = vsyncadd (%p9190_p3), [#allocation27], 4294957056  ;;  %p9191_p7 = pmov %p9182_p0 }
 0x162   : > { %p9192_p12 = pmov %p9182_p0 }
 0x163   : > { %7735 = dma.done.wait (%p9191_p7), [#allocation30], 18432  }
 0x164   : > { %7737 = vsyncadd (%p9192_p12), [#allocation30], 4294948864  ;;  %s9193_s7 = sld [smem:[#allocation44_spill]]  ;;  %p1507_p10 = scmp.lt.s32.totalorder %s8073_s15, 1  ;;  %v1586_v2 = vld [vmem:[#allocation2 + $0x178] sm:$0xff]  ;;  %v7821_v3 = vmov 0.0  }
 0x165   : > { %s7820_s18 = smov 9   ;;  %1808 = vmatprep.subr.mxu1 %v7821_v3  ;;  %v1585_v4 = vld [vmem:[#allocation2 + $0x170] sm:$0xff]  ;;  %v1570_v5 = vld [vmem:[#allocation2 + $0xf8] sm:$0xff]  ;;  %v1584_v7 = vld [vmem:[#allocation2 + $0x168] sm:$0xff]  ;;  %vm1622_vm0 = vcmask 1045504   ;;  %vm1522_vm1 = vcmask 72704  }
 0x166   : > { %s1508_s2 = scalar_select %p1507_p10, %s8073_s15, 1  ;;  %1809 = vmatpush1.msra.mxu1 %v1586_v2  ;;  %v1554_v6 = vld [vmem:[#allocation2 + $0x78] sm:$0xff]  ;;  %5903 = vmatprep.subr.mxu0 %v1570_v5  ;;  %v1569_v8 = vld [vmem:[#allocation2 + $0xf0] sm:$0xff]  ;;  %v1568_v10 = vld [vmem:[#allocation2 + $0xe8] sm:$0xff]  ;;  %vm1525_vm2 = vcmask 465920   ;;  %vm1530_vm3 = vcmask 1042432  }
 0x167   : > { %1810 = vmatprep.subr.mxu1 %v7821_v3  ;;  %v1553_v9 = vld [vmem:[#allocation2 + $0x70] sm:$0xff]  ;;  %5904 = vmatpush3.msra.mxu0 %v1554_v6  ;;  %v1583_v11 = vld [vmem:[#allocation2 + $0x160] sm:$0xff]  ;;  %v1552_v12 = vld [vmem:[#allocation2 + $0x68] sm:$0xff]  ;;  %vm1613_vm4 = vcmask 1040384   ;;  %vm1615_vm5 = vcmask 1041408   ;;  %vm1618_vm6 = vcmask 1043456  }
 0x168   : > { %s5902_s23 = sshll.u32 %s1508_s2, 4  ;;  %1811 = vmatpush1.msra.mxu1 %v1585_v4  ;;  %5905 = vmatprep.subr.mxu0 %v1569_v8  ;;  %v1567_v13 = vld [vmem:[#allocation2 + $0xe0] sm:$0xff]  ;;  %v1582_v14 = vld [vmem:[#allocation2 + $0x158] sm:$0xff]  ;;  %v1581_v17 = vld [vmem:[#allocation2 + $0x150] sm:$0xff]  ;;  %vm1620_vm7 = vcmask 1044480   ;;  %vm1624_vm8 = vcmask 1046528  }
 0x169   : > { %1812 = vmatprep.subr.mxu1 %v7821_v3  ;;  %5906 = vmatpush3.msra.mxu0 %v1553_v9  ;;  %v1551_v15 = vld [vmem:[#allocation2 + $0x60] sm:$0xff]  ;;  %v1566_v16 = vld [vmem:[#allocation2 + $0xd8] sm:$0xff]  ;;  %v1565_v19 = vld [vmem:[#allocation2 + $0xd0] sm:$0xff]  ;;  %s7822_s4 = smov 66   ;;  %s7823_s0 = smov 70   ;;  %vm1715_vm9 = vcmask 31744  }
 0x16a   : > { %s1511_s26 = scalar_lea.vmem %s9193_s7, %s5902_s23  ;;  %1813 = vmatpush1.msra.mxu1 %v1584_v7  ;;  %5907 = vmatprep.subr.mxu0 %v1568_v10  ;;  %v1550_v18 = vld [vmem:[#allocation2 + $0x58] sm:$0xff]  ;;  %v1580_v20 = vld [vmem:[#allocation2 + $0x148] sm:$0xff]  ;;  %v1549_v21 = vld [vmem:[#allocation2 + $0x50] sm:$0xff]  ;;  %s7824_s11 = smov 4   ;;  %vm1717_vm10 = vcmask 572416   ;;  %vm1713_vm11 = vcmask 539648  }
 0x16b   : > { %v1512_v0 = vld [vmem:[%s1511_s26] sm:$0xff]  ;;  %v1513_v1 = vld [vmem:[%s1511_s26 + $0x8] sm:$0xff]  ;;  %1814 = vmatprep.subr.mxu1 %v7821_v3  ;;  %5908 = vmatpush3.msra.mxu0 %v1552_v12  ;;  %v1578_v26 = vld [vmem:[#allocation2 + $0x138] sm:$0xff]  ;;  %s7825_s22 = smov 74   ;;  %s7826_s3 = smov 8   ;;  %vm1719_vm12 = vcmask 64512  }
 0x16c   : > { %1516 = vrot.lane.b32.xlu0 %v1512_v0, %s7820_s18  ;;  %1815 = vmatpush1.msra.mxu1 %v1583_v11  ;;  %v1564_v22 = vld [vmem:[#allocation2 + $0xc8] sm:$0xff]  ;;  %v1579_v23 = vld [vmem:[#allocation2 + $0x140] sm:$0xff]  ;;  %v1562_v28 = vld [vmem:[#allocation2 + $0xb8] sm:$0xff]  ;;  %s7827_s1 = smov 12   ;;  %s9194_s16 = sld [smem:[#allocation45_spill]]  ;;  %vm1723_vm13 = vcmask 97280  }
 0x16d   : > { %1816 = vmatprep.subr.mxu1 %v7821_v3  ;;  %5909 = vmatprep.subr.mxu0 %v1567_v13  ;;  %v1548_v24 = vld [vmem:[#allocation2 + $0x48] sm:$0xff]  ;;  %v1563_v25 = vld [vmem:[#allocation2 + $0xc0] sm:$0xff]  ;;  %v1577_v29 = vld [vmem:[#allocation2 + $0x130] sm:$0xff]  ;;  %vm1731_vm14 = vcmask 637952   ;;  %vm1721_vm15 = vcmask 605184   ;;  %s7828_s17 = smov 112  }
 0x16e   : > { %1817 = vmatpush1.msra.mxu1 %v1582_v14  ;;  %5910 = vmatpush3.msra.mxu0 %v1551_v15  ;;  %v1547_v27 = vld [vmem:[#allocation2 + $0x40] sm:$0xff]  ;;  %v1546_v30 = vld [vmem:[#allocation2 + $0x38] sm:$0xff]  ;;  %v1561_v31 = vld [vmem:[#allocation2 + $0xb0] sm:$0xff]  ;;  %s7829_s7 = smov 120   ;;  %s9195_s2 = sld [smem:[#allocation47_spill]] }
 0x16f   : > { %1818 = vmatprep.subr.mxu1 %v7821_v3  ;;  %5911 = vmatprep.subr.mxu0 %v1566_v16  ;;  %v1576_v32 = vld [vmem:[#allocation2 + $0x128] sm:$0xff]  ;;  %v1545_v33 = vld [vmem:[#allocation2 + $0x30] sm:$0xff]  ;;  %v1575_v35 = vld [vmem:[#allocation2 + $0x120] sm:$0xff]  ;;  %s7830_s23 = smov 32   ;;  %s7831_s26 = smov 80  }
 0x170   : > { %1518 = vrot.lane.b32.xlu0 %v1513_v1, %s7820_s18  ;;  %1819 = vmatpush1.msra.mxu1 %v1581_v17  ;;  %v1560_v34 = vld [vmem:[#allocation2 + $0xa8] sm:$0xff]  ;;  %v1559_v37 = vld [vmem:[#allocation2 + $0xa0] sm:$0xff]  ;;  %v1574_v38 = vld [vmem:[#allocation2 + $0x118] sm:$0xff]  ;;  %s9196_s18 = sld [smem:[#allocation48_spill]]  ;;  %p9213_p4 = scmp.ne.s32.totalorder %s9160_s28, 0 }
 0x171   : > { %5912 = vmatpush3.msra.mxu0 %v1550_v18  ;;  %1820 = vmatprep.subr.mxu1 %v7821_v3  ;;  %v1544_v36 = vld [vmem:[#allocation2 + $0x28] sm:$0xff]  ;;  %v1543_v39 = vld [vmem:[#allocation2 + $0x20] sm:$0xff]  ;;  %v1558_v40 = vld [vmem:[#allocation2 + $0x98] sm:$0xff] }
 0x172   : > { %5913 = vmatprep.subr.mxu0 %v1565_v19  ;;  %1821 = vmatpush1.msra.mxu1 %v1580_v20  ;;  %v1573_v41 = vld [vmem:[#allocation2 + $0x110] sm:$0xff]  ;;  %v1572_v42 = vld [vmem:[#allocation2 + $0x108] sm:$0xff]  ;;  %v1571_v43 = vld [vmem:[#allocation2 + $0x100] sm:$0xff] }
 0x173   : > { %5914 = vmatpush3.msra.mxu0 %v1549_v21  ;;  %1822 = vmatprep.subr.mxu1 %v7821_v3  ;;  %v1596_v44 = vld [vmem:[#allocation2 + $0x1c8] sm:$0x3f]  ;;  %v1595_v45 = vld [vmem:[#allocation2 + $0x1c0] sm:$0xff]  ;;  %v1594_v46 = vld [vmem:[#allocation2 + $0x1b8] sm:$0xff] }
 0x174   : > { %5915 = vmatprep.subr.mxu0 %v1564_v22  ;;  %1823 = vmatpush1.msra.mxu1 %v1579_v23  ;;  %v1542_v51 = vld [vmem:[#allocation2 + $0x18] sm:$0xff]  ;;  %v1557_v53 = vld [vmem:[#allocation2 + $0x90] sm:$0xff]  ;;  %v1556_v58 = vld [vmem:[#allocation2 + $0x88] sm:$0xff] }
 0x175   : > { %5916 = vmatpush3.msra.mxu0 %v1548_v24  ;;  %1824 = vmatprep.subr.mxu1 %v7821_v3  ;;  %v1593_v54 = vld [vmem:[#allocation2 + $0x1b0] sm:$0xff]  ;;  %v1592_v59 = vld [vmem:[#allocation2 + $0x1a8] sm:$0xff]  ;;  %v1555_v9 = vld [vmem:[#allocation2 + $0x80] sm:$0xff] }
 0x176   : > { %5917 = vmatprep.subr.mxu0 %v1563_v25  ;;  %1825 = vmatpush1.msra.mxu1 %v1578_v26  ;;  %v1541_v55 = vld [vmem:[#allocation2 + $0x10] sm:$0xff]  ;;  %v1540_v8 = vld [vmem:[#allocation2 + $0x8] sm:$0xff]  ;;  %v1591_v10 = vld [vmem:[#allocation2 + $0x1a0] sm:$0xff] }
 0x177   : > { %5918 = vmatpush3.msra.mxu0 %v1547_v27  ;;  %1826 = vmatprep.subr.mxu1 %v7821_v3  ;;  %v1539_v13 = vld [vmem:[#allocation2] sm:$0xff]  ;;  %v1590_v17 = vld [vmem:[#allocation2 + $0x198] sm:$0xff]  ;;  %v1589_v26 = vld [vmem:[#allocation2 + $0x190] sm:$0xff] }
 0x178   : > { %5919 = vmatprep.subr.mxu0 %v1562_v28  ;;  %1827 = vmatpush1.msra.mxu1 %v1577_v29 }
 0x179   : > { %5920 = vmatpush3.msra.mxu0 %v1546_v30  ;;  %1828 = vmatprep.subr.mxu1 %v7821_v3 }
 0x17a   : > { %5921 = vmatprep.subr.mxu0 %v1561_v31  ;;  %1829 = vmatpush1.msra.mxu1 %v1576_v32  ;;  %v1588_v31 = vld [vmem:[#allocation2 + $0x188] sm:$0xff] }
 0x17b   : > { %5922 = vmatpush3.msra.mxu0 %v1545_v33  ;;  %1830 = vmatprep.subr.mxu1 %v7821_v3 }
 0x17c   : > { %5923 = vmatprep.subr.mxu0 %v1560_v34  ;;  %1831 = vmatpush1.msra.mxu1 %v1575_v35 }
 0x17d   : > { %5924 = vmatpush3.msra.mxu0 %v1544_v36  ;;  %1832 = vmatprep.subr.mxu1 %v7821_v3 }
 0x17e   : > { %5925 = vmatprep.subr.mxu0 %v1559_v37  ;;  %1833 = vmatpush1.msra.mxu1 %v1574_v38 }
 0x17f   : > { %5926 = vmatpush3.msra.mxu0 %v1543_v39  ;;  %1834 = vmatprep.subr.mxu1 %v7821_v3 }
 0x180   : > { %5927 = vmatprep.subr.mxu0 %v1558_v40  ;;  %1835 = vmatpush1.msra.mxu1 %v1573_v41 }
 0x181   : > { %1836 = vmatprep.subr.mxu1 %v7821_v3  ;;  %5928 = vmatpush3.msra.mxu0 %v1542_v51 }
 0x182   : > { %1837 = vmatpush1.msra.mxu1 %v1572_v42  ;;  %5929 = vmatprep.subr.mxu0 %v1557_v53 }
 0x183   : > { %1838 = vmatprep.subr.mxu1 %v7821_v3  ;;  %5930 = vmatpush3.msra.mxu0 %v1541_v55 }
 0x184   : > { %1839 = vmatpush1.msra.mxu1 %v1571_v43  ;;  %5931 = vmatprep.subr.mxu0 %v1556_v58 }
 0x185   : > { %1852 = vmatprep.subr.mxu1 %v7821_v3  ;;  %5932 = vmatpush3.msra.mxu0 %v1540_v8 }
 0x186   : > { %5861 = vmatpush2.msk.msra.mxu1 %vm1622_vm0, %v1596_v44  ;;  %5933 = vmatprep.subr.mxu0 %v1555_v9  ;;  %v1587_v44 = vld [vmem:[#allocation2 + $0x180] sm:$0xff] }
 0x187   : > { %1854 = vmatprep.subr.mxu1 %v7821_v3  ;;  %5934 = vmatpush3.msra.mxu0 %v1539_v13 }
 0x188   : > { %1855 = vmatpush2.msra.mxu1 %v1595_v45  ;;  %2028 = vmatprep.subr.mxu0 %v7821_v3 }
 0x189   : > { %1856 = vmatprep.subr.mxu1 %v7821_v3 }
 0x18a   : > { %1857 = vmatpush2.msra.mxu1 %v1594_v46 }
 0x18b   : > { %1858 = vmatprep.subr.mxu1 %v7821_v3 }
 0x18c   : > { %1859 = vmatpush2.msra.mxu1 %v1593_v54 }
 0x18d   : > { %1860 = vmatprep.subr.mxu1 %v7821_v3 }
 0x18e   : > { %1861 = vmatpush2.msra.mxu1 %v1592_v59 }
 0x18f   : > { %1862 = vmatprep.subr.mxu1 %v7821_v3 }
 0x190   : > { %1863 = vmatpush2.msra.mxu1 %v1591_v10 }
 0x191   : > { %1864 = vmatprep.subr.mxu1 %v7821_v3 }
 0x192   : > { %1865 = vmatpush2.msra.mxu1 %v1590_v17 }
 0x193   : > { %1866 = vmatprep.subr.mxu1 %v7821_v3 }
 0x194   : > { %1867 = vmatpush2.msra.mxu1 %v1589_v26  ;;  %v5860_v26 = vld [vmem:[%s9194_s16] ss:$0 sm:$0xff]  ;;  %s7835_s16 = smov 96  }
 0x195   : > { %1868 = vmatprep.subr.mxu1 %v7821_v3 }
 0x196   : > { %1869 = vmatpush2.msra.mxu1 %v1588_v31 }
 0x197   : > { %1870 = vmatprep.subr.mxu1 %v7821_v3 }
 0x198   : > { %1871 = vmatpush2.msra.mxu1 %v1587_v44 }
 0x199   : > { %2135 = vmatprep.subr.mxu1 %v7821_v3 }
 0x1de   : > { %v1517_v47 = vpop.permute.xlu0 %1516 }
 0x1df   : > { %v1523_v48 = vsel %vm1522_vm1, 0.0, %v1517_v47 }
 0x1e0   : > { %v1526_v49 = vsel %vm1525_vm2, %v1523_v48, 0.0 }
 0x1e1   : > { %v1531_v50 = vrot.slane %v1526_v49, 5 }
 0x1e2   : > { %v1519_v52 = vpop.permute.xlu0 %1518 }
 0x1e3   : > { %v8339_v56 = vsel %vm1530_vm3, 0.0, %v1531_v50  ;;  %v1524_v57 = vsel %vm1522_vm1, 0.0, %v1519_v52  ;;  %vm1884_vm1 = vcmask 588800  }
 0x1e4   : > { %v1599_v60 = vrot.slane %v8339_v56, 1  ;;  %v8343_v61 = vrot.slane %v8339_v56, 2  ;;  %v8346_v62 = vrot.slane %v8339_v56, 3  ;;  %v8349_v63 = vrot.slane %v8339_v56, 4 }
 0x1e5   : > { %v8353_v0 = vrot.slane %v8339_v56, 5  ;;  %v1667_v1 = vrot.slane %v8339_v56, 6  ;;  %v1527_v2 = vsel %vm1525_vm2, %v1524_v57, 0.0  ;;  %vm2014_vm2 = vcmask 654336  }
 0x1e6   : > { %v8359_v4 = vsel %vm1613_vm4, %v8339_v56, %v1599_v60  ;;  %v1532_v5 = vrot.slane %v1527_v2, 5  ;;  %v1628_v6 = vsel %vm1613_vm4, %v1599_v60, %v8343_v61  ;;  %v1651_v7 = vsel %vm1613_vm4, %v8346_v62, %v8349_v63 }
 0x1e7   : > { %v1629_v11 = vsel %vm1615_vm5, %v1628_v6, %v8346_v62  ;;  %v1638_v12 = vsel %vm1613_vm4, %v8343_v61, %v8346_v62  ;;  %v1652_v21 = vsel %vm1615_vm5, %v1651_v7, %v8353_v0  ;;  %v1673_v25 = vsel %vm1613_vm4, %v8353_v0, %v1667_v1 }
 0x1e8   : > { %v8373_v14 = vsel %vm1530_vm3, %v1531_v50, %v1532_v5  ;;  %v8376_v15 = vsel %vm1530_vm3, %v1532_v5, 0.0  ;;  %v1630_v16 = vsel %vm1530_vm3, %v1629_v11, %v8349_v63  ;;  %v1639_v24 = vsel %vm1615_vm5, %v1638_v12, %v8349_v63 }
 0x1e9   : > { %v8381_v18 = vrot.slane %v8373_v14, 5  ;;  %v8384_v19 = vrot.slane %v8373_v14, 6  ;;  %v8387_v20 = vrot.slane %v8373_v14, 7  ;;  %v1647_v22 = vrot.slane %v8373_v14, 1 }
 0x1ea   : > { %v1649_v23 = vrot.slane %v8376_v15, 2  ;;  %v1669_v30 = vrot.slane %v8373_v14, 2  ;;  %v1658_v42 = vrot.slane %v8376_v15, 3  ;;  %v1660_v48 = vsel %vm1613_vm4, %v8349_v63, %v8353_v0 }
 0x1eb   : > { %v1631_v27 = vsel %vm1618_vm6, %v1630_v16, %v8381_v18  ;;  %v1653_v28 = vsel %vm1530_vm3, %v1652_v21, %v8384_v19  ;;  %v1640_v29 = vsel %vm1530_vm3, %v1639_v24, %v8381_v18  ;;  %v1674_v35 = vsel %vm1615_vm5, %v1673_v25, %v8387_v20 }
 0x1ec   : > { %v1632_v32 = vsel %vm1620_vm7, %v1631_v27, %v8384_v19  ;;  %v1654_v33 = vsel %vm1618_vm6, %v1653_v28, %v8387_v20  ;;  %v1641_v34 = vsel %vm1618_vm6, %v1640_v29, %v8384_v19  ;;  %v1675_v39 = vsel %vm1530_vm3, %v1674_v35, %v8373_v14 }
 0x1ed   : > { %v1633_v36 = vsel %vm1622_vm0, %v1632_v32, %v8387_v20  ;;  %v1655_v37 = vsel %vm1620_vm7, %v1654_v33, %v8373_v14  ;;  %v1642_v38 = vsel %vm1620_vm7, %v1641_v34, %v8387_v20  ;;  %v1676_v43 = vsel %vm1618_vm6, %v1675_v39, %v1647_v22 }
 0x1ee   : > { %v1634_v40 = vsel %vm1624_vm8, %v1633_v36, %v8373_v14  ;;  %v1656_v41 = vsel %vm1622_vm0, %v1655_v37, %v1647_v22  ;;  %v1643_v46 = vsel %vm1622_vm0, %v1642_v38, %v8373_v14  ;;  %v1677_v47 = vsel %vm1620_vm7, %v1676_v43, %v1669_v30 }
 0x1ef   : > { %1690 = vrot.lane.b32.xlu1 %v1634_v40, %s7822_s4  ;;  %v1657_v45 = vsel %vm1624_vm8, %v1656_v41, %v1649_v23  ;;  %v1636_v49 = vrot.slane %v8376_v15, 1  ;;  %v1678_v50 = vsel %vm1622_vm0, %v1677_v47, %v1658_v42  ;;  %v1661_v51 = vsel %vm1615_vm5, %v1660_v48, %v8384_v19  ;;  %s9197_s4 = sld [smem:[#allocation50_spill]] }
 0x1f0   : > { %1698 = vrot.lane.b32.xlu0 %v1657_v45, %s7823_s0  ;;  %v1682_v52 = vsel %vm1613_vm4, %v1667_v1, %v8387_v20  ;;  %v1671_v53 = vrot.slane %v8376_v15, 4  ;;  %v1662_v54 = vsel %vm1530_vm3, %v1661_v51, %v8387_v20  ;;  %v1605_v59 = vrot.slane %v8373_v14, 4  ;;  %s9198_s0 = sld [smem:[#allocation51_spill]] }
 0x1f1   : > { %v1683_v55 = vsel %vm1615_vm5, %v1682_v52, %v8373_v14  ;;  %v1644_v57 = vsel %vm1624_vm8, %v1643_v46, %v1636_v49  ;;  %v1663_v58 = vsel %vm1618_vm6, %v1662_v54, %v8373_v14  ;;  %v1616_v1 = vsel %vm1615_vm5, %v8359_v4, %v8343_v61 }
 0x1f2   : > { %v1684_v56 = vsel %vm1530_vm3, %v1683_v55, %v1647_v22  ;;  %v1679_v60 = vsel %vm1624_vm8, %v1678_v50, %v1671_v53  ;;  %v1664_v63 = vsel %vm1620_vm7, %v1663_v58, %v1647_v22  ;;  %v1617_v6 = vsel %vm1530_vm3, %v1616_v1, %v8346_v62  ;;  %v1952_v58 = vld [vmem:[#allocation5 + $0x70] sm:$0xff]  ;;  %v1949_v1 = vld [vmem:[#allocation5 + $0x58] sm:$0xff] }
 0x1f3   : > { %1694 = vrot.lane.b32.xlu1 %v1644_v57, %s7824_s11  ;;  %v1685_v0 = vsel %vm1618_vm6, %v1684_v56, %v1669_v30  ;;  %v1665_v2 = vsel %vm1622_vm0, %v1664_v63, %v1649_v23  ;;  %v1619_v7 = vsel %vm1618_vm6, %v1617_v6, %v1605_v59  ;;  %v1680_v10 = vrot.slane %v8376_v15, 5  ;;  %v1953_v57 = vld [vmem:[#allocation5 + $0x78] sm:$0xff]  ;;  %v1946_v6 = vld [vmem:[#allocation5 + $0x40] sm:$0xff]  ;;  %s9199_s11 = sld [smem:[#allocation52_spill]] }
 0x1f4   : > { %1706 = vrot.lane.b32.xlu0 %v1679_v60, %s7825_s22  ;;  %v1686_v5 = vsel %vm1620_vm7, %v1685_v0, %v1658_v42  ;;  %v1666_v8 = vsel %vm1624_vm8, %v1665_v2, %v1658_v42  ;;  %v1621_v9 = vsel %vm1620_vm7, %v1619_v7, %v8381_v18  ;;  %v1951_v60 = vld [vmem:[#allocation5 + $0x68] sm:$0xff]  ;;  %v1950_v0 = vld [vmem:[#allocation5 + $0x60] sm:$0xff]  ;;  %v1948_v2 = vld [vmem:[#allocation5 + $0x50] sm:$0xff]  ;;  %vm2016_vm6 = vcmask 261120   ;;  %s9200_s22 = sld [smem:[#allocation53_spill]] }
 0x1f5   : > { %v1687_v61 = vsel %vm1622_vm0, %v1686_v5, %v1671_v53  ;;  %v1623_v4 = vsel %vm1622_vm0, %v1621_v9, %v8384_v19  ;;  %v1947_v5 = vld [vmem:[#allocation5 + $0x48] sm:$0xff]  ;;  %v1945_v7 = vld [vmem:[#allocation5 + $0x38] sm:$0xff] }
 0x1f6   : > { %v1625_v62 = vsel %vm1624_vm8, %v1623_v4, %v8387_v20  ;;  %v1688_v11 = vsel %vm1624_vm8, %v1687_v61, %v1680_v10  ;;  %v1943_v9 = vld [vmem:[#allocation5 + $0x28] sm:$0xff]  ;;  %v1942_v61 = vld [vmem:[#allocation5 + $0x20] sm:$0xff]  ;;  %v1941_v4 = vld [vmem:[#allocation5 + $0x18] sm:$0xff] }
 0x1f7   : > { %1702 = vrot.lane.b32.xlu1 %v1666_v8, %s7826_s3  ;;  %v1944_v8 = vld [vmem:[#allocation5 + $0x30] sm:$0xff] }
 0x1f8   : > { %v1940_v10 = vld [vmem:[#allocation5 + $0x10] sm:$0xff] }
 0x1fb   : > { %1710 = vrot.lane.b32.xlu1 %v1688_v11, %s7827_s1  ;;  %v1938_v11 = vld [vmem:[#allocation5] sm:$0xff]  ;;  %s7834_s1 = smov 64  }
 0x261   : > { %v1691_v12 = vpop.permute.xlu1 %1690 }
 0x262   : > { %v1699_v14 = vpop.permute.xlu0 %1698  ;;  %v1714_v18 = vsel %vm1713_vm11, %v1625_v62, %v1691_v12  ;;  %v1939_v62 = vld [vmem:[#allocation5 + $0x8] sm:$0xff]  ;;  %vm2695_vm11 = vcmask 785408  }
 0x265   : > { %v1695_v13 = vpop.permute.xlu1 %1694 }
 0x266   : > { %v1716_v16 = vsel %vm1715_vm9, %v1691_v12, %v1695_v13  ;;  %v1707_v20 = vpop.permute.xlu0 %1706  ;;  %v1967_v12 = vld [vmem:[#allocation5 + $0xe8] sm:$0xff]  ;;  %v1966_v13 = vld [vmem:[#allocation5 + $0xe0] sm:$0xff]  ;;  %vm2024_vm9 = vcmask 916480  }
 0x267   : > { %v1718_v17 = vsel %vm1717_vm10, %v1716_v16, %v1699_v14  ;;  %v1964_v16 = vld [vmem:[#allocation5 + $0xd0] sm:$0xff]  ;;  %vm2678_vm10 = vcmask 130048  }
 0x268   : > { %1802 = vmatprep.mubr.f32.mxu0 %v1718_v17  ;;  %v1963_v17 = vld [vmem:[#allocation5 + $0xc8] sm:$0xff] }
 0x269   : > { %v1703_v15 = vpop.permute.xlu1 %1702  ;;  %1803 = vmatmul.mubr.f32.vlgmr.msra.gmra.mxu0 %v1714_v18  ;;  %v1962_v18 = vld [vmem:[#allocation5 + $0xc0] sm:$0xff] }
 0x26a   : > { %v1720_v19 = vsel %vm1719_vm12, %v1699_v14, %v1703_v15  ;;  %2029 = vmatpush1.msra.mxu0 %v1953_v57  ;;  %v1965_v14 = vld [vmem:[#allocation5 + $0xd8] sm:$0xff]  ;;  %v1975_v57 = vld [vmem:[#allocation7 + $0x30] sm:$0xff] }
 0x26b   : > { %v1722_v23 = vsel %vm1721_vm15, %v1720_v19, %v1707_v20  ;;  %2030 = vmatprep.subr.mxu0 %v7821_v3  ;;  %v1961_v15 = vld [vmem:[#allocation5 + $0xb8] sm:$0xff]  ;;  %v1960_v19 = vld [vmem:[#allocation5 + $0xb0] sm:$0xff] }
 0x26c   : > { %2031 = vmatpush1.msra.mxu0 %v1952_v58  ;;  %v1974_v58 = vld [vmem:[#allocation7 + $0x28] sm:$0xff] }
 0x26d   : > { %v1711_v21 = vpop.permute.xlu1 %1710  ;;  %2032 = vmatprep.subr.mxu0 %v7821_v3 }
 0x26e   : > { %v1724_v22 = vsel %vm1723_vm13, %v1707_v20, %v1711_v21  ;;  %2033 = vmatpush1.msra.mxu0 %v1951_v60  ;;  %v1959_v20 = vld [vmem:[#allocation5 + $0xa8] sm:$0xff]  ;;  %v1958_v21 = vld [vmem:[#allocation5 + $0xa0] sm:$0xff] }
 0x26f   : > { %5862 = vmatprep.mubr.msk.f32.mxu1 %vm1731_vm14, %v1724_v22  ;;  %2034 = vmatprep.subr.mxu0 %v7821_v3  ;;  %v1957_v22 = vld [vmem:[#allocation5 + $0x98] sm:$0xff]  ;;  %v1971_v60 = vld [vmem:[#allocation7 + $0x10] sm:$0xff] }
 0x270   : > { %1873 = vmatmul.mubr.f32.vlgmr.msra.gmra.mxu1 %v1722_v23  ;;  %2035 = vmatpush1.msra.mxu0 %v1950_v0  ;;  %v1956_v23 = vld [vmem:[#allocation5 + $0x90] sm:$0xff]  ;;  %v1970_v0 = vld [vmem:[#allocation7 + $0x8] sm:$0xff] }
 0x271   : > { %2036 = vmatprep.subr.mxu0 %v7821_v3 }
 0x272   : > { %2037 = vmatpush1.msra.mxu0 %v1949_v1  ;;  %v1969_v1 = vld [vmem:[#allocation7] sm:$0xff] }
 0x273   : > { %2038 = vmatprep.subr.mxu0 %v7821_v3 }
 0x274   : > { %2039 = vmatpush1.msra.mxu0 %v1948_v2  ;;  %v1998_v2 = vld [vmem:[#allocation7 + $0xe8] sm:$0xff] }
 0x275   : > { %2040 = vmatprep.subr.mxu0 %v7821_v3 }
 0x276   : > { %2041 = vmatpush1.msra.mxu0 %v1947_v5  ;;  %v1997_v5 = vld [vmem:[#allocation7 + $0xe0] sm:$0xff] }
 0x277   : > { %2042 = vmatprep.subr.mxu0 %v7821_v3 }
 0x278   : > { %2043 = vmatpush1.msra.mxu0 %v1946_v6  ;;  %v1996_v6 = vld [vmem:[#allocation7 + $0xd8] sm:$0xff] }
 0x279   : > { %2044 = vmatprep.subr.mxu0 %v7821_v3 }
 0x27a   : > { %2045 = vmatpush1.msra.mxu0 %v1945_v7  ;;  %v1995_v7 = vld [vmem:[#allocation7 + $0xd0] sm:$0xff] }
 0x27b   : > { %2046 = vmatprep.subr.mxu0 %v7821_v3 }
 0x27c   : > { %2047 = vmatpush1.msra.mxu0 %v1944_v8  ;;  %v1994_v8 = vld [vmem:[#allocation7 + $0xc8] sm:$0xff] }
 0x27d   : > { %2048 = vmatprep.subr.mxu0 %v7821_v3 }
 0x27e   : > { %2049 = vmatpush1.msra.mxu0 %v1943_v9  ;;  %v1993_v9 = vld [vmem:[#allocation7 + $0xc0] sm:$0xff] }
 0x27f   : > { %2050 = vmatprep.subr.mxu0 %v7821_v3 }
 0x280   : > { %2051 = vmatpush1.msra.mxu0 %v1942_v61  ;;  %v1992_v61 = vld [vmem:[#allocation7 + $0xb8] sm:$0xff] }
 0x281   : > { %2052 = vmatprep.subr.mxu0 %v7821_v3 }
 0x282   : > { %2053 = vmatpush1.msra.mxu0 %v1941_v4  ;;  %v1991_v4 = vld [vmem:[#allocation7 + $0xb0] sm:$0xff] }
 0x283   : > { %2054 = vmatprep.subr.mxu0 %v7821_v3 }
 0x284   : > { %2055 = vmatpush1.msra.mxu0 %v1940_v10  ;;  %v1990_v10 = vld [vmem:[#allocation7 + $0xa8] sm:$0xff] }
 0x285   : > { %2056 = vmatprep.subr.mxu0 %v7821_v3 }
 0x286   : > { %2057 = vmatpush1.msra.mxu0 %v1939_v62  ;;  %v1989_v62 = vld [vmem:[#allocation7 + $0xa0] sm:$0xff] }
 0x287   : > { %2058 = vmatprep.subr.mxu0 %v7821_v3 }
 0x288   : > { %2059 = vmatpush1.msra.mxu0 %v1938_v11  ;;  %v1988_v11 = vld [vmem:[#allocation7 + $0x98] sm:$0xff] }
 0x289   : > { %2064 = vmatprep.subr.mxu0 %v7821_v3 }
 0x28a   : > { %2065 = vmatpush2.msra.mxu0 %v1967_v12  ;;  %v1987_v12 = vld [vmem:[#allocation7 + $0x90] sm:$0xff] }
 0x28b   : > { %2066 = vmatprep.subr.mxu0 %v7821_v3 }
 0x28c   : > { %2067 = vmatpush2.msra.mxu0 %v1966_v13  ;;  %v1986_v13 = vld [vmem:[#allocation7 + $0x88] sm:$0xff] }
 0x28d   : > { %2068 = vmatprep.subr.mxu0 %v7821_v3 }
 0x28e   : > { %2069 = vmatpush2.msra.mxu0 %v1965_v14  ;;  %v1985_v14 = vld [vmem:[#allocation7 + $0x80] sm:$0xff] }
 0x28f   : > { %2070 = vmatprep.subr.mxu0 %v7821_v3 }
 0x290   : > { %2071 = vmatpush2.msra.mxu0 %v1964_v16 }
 0x291   : > { %2072 = vmatprep.subr.mxu0 %v7821_v3 }
 0x292   : > { %2073 = vmatpush2.msra.mxu0 %v1963_v17 }
 0x293   : > { %2074 = vmatprep.subr.mxu0 %v7821_v3 }
 0x294   : > { %2075 = vmatpush2.msra.mxu0 %v1962_v18 }
 0x295   : > { %2076 = vmatprep.subr.mxu0 %v7821_v3 }
 0x296   : > { %2077 = vmatpush2.msra.mxu0 %v1961_v15 }
 0x297   : > { %2078 = vmatprep.subr.mxu0 %v7821_v3 }
 0x298   : > { %2079 = vmatpush2.msra.mxu0 %v1960_v19 }
 0x299   : > { %2080 = vmatprep.subr.mxu0 %v7821_v3 }
 0x29a   : > { %2081 = vmatpush2.msra.mxu0 %v1959_v20 }
 0x29b   : > { %2082 = vmatprep.subr.mxu0 %v7821_v3 }
 0x29c   : > { %2083 = vmatpush2.msra.mxu0 %v1958_v21 }
 0x29d   : > { %2084 = vmatprep.subr.mxu0 %v7821_v3 }
 0x29e   : > { %2085 = vmatpush2.msra.mxu0 %v1957_v22 }
 0x29f   : > { %2086 = vmatprep.subr.mxu0 %v7821_v3 }
 0x2a0   : > { %2087 = vmatpush2.msra.mxu0 %v1956_v23 }
 0x2a1   : > { %2088 = vmatprep.subr.mxu0 %v7821_v3 }
 0x329   : > { %v5935_v24 = vpop.f32.mrf.mxu0 }
 0x32b   : > { %v5936_v25 = vpop.f32.mrf.mxu0 }
 0x32c   : > { %v5937_v27 = vadd.f32 %v5936_v25, %v5935_v24  ;;  %v1955_v24 = vld [vmem:[#allocation5 + $0x88] sm:$0xff]  ;;  %v1954_v25 = vld [vmem:[#allocation5 + $0x80] sm:$0xff] }
 0x32d   : > { %2089 = vmatpush2.msra.mxu0 %v1955_v24 }
 0x32e   : > { %v1805_v28 = vadd.f32 %v5937_v27, %v5860_v26  ;;  %2090 = vmatprep.subr.mxu0 %v7821_v3 }
 0x32f   : > { %2091 = vmatpush2.msra.mxu0 %v1954_v25 }
 0x330   : > { %v1874_v29 = vpop.f32.mrf.mxu1  ;;  %2305 = vmatprep.subr.mxu0 %v7821_v3 }
 0x331   : > { %v1875_v30 = vadd.f32 %v1874_v29, %v1805_v28 }
 0x332   : > { %v1876_v31 = vpop.f32.mrf.mxu1 }
 0x333   : > { %v1878_v32 = vmax.f32 %v1875_v30, 0.0 }
 0x335   : > { %1880 = vrot.lane.b32.xlu0 %v1878_v32, %s7826_s3 }
 0x3a7   : > { %v1881_v33 = vpop.permute.xlu0 %1880 }
 0x3a8   : > { %v1883_v34 = vsel %vm1719_vm12, -inf, %v1881_v33 }
 0x3a9   : > { %v1885_v35 = vsel %vm1884_vm1, %v1883_v34, -inf }
 0x3aa   : > { %v1887_v36 = vrot.slane %v1885_v35, 7 }
 0x3ac   : > { %v1889_v37 = vsel %vm1613_vm4, -inf, %v1887_v36  ;;  %v1890_v38 = vsel %vm1613_vm4, %v1887_v36, -inf }
 0x3ad   : > { %v1902_v39 = vrot.slane %v1890_v38, 1  ;;  %1896 = vrot.lane.b32.xlu0 %v1889_v37, %s7828_s17  ;;  %1892 = vrot.lane.b32.xlu1 %v1889_v37, %s7829_s7  ;;  %v1901_v40 = vrot.slane %v1889_v37, 1  ;;  %v1915_v42 = vrot.slane %v1890_v38, 2  ;;  %v1914_v43 = vrot.slane %v1889_v37, 2 }
 0x3af   : > { %v1903_v41 = vsel %vm1624_vm8, %v1901_v40, %v1902_v39  ;;  %v1916_v44 = vsel %vm1622_vm0, %v1914_v43, %v1915_v42  ;;  %v5863_v42 = vld [vmem:[%s9195_s2] ss:$0 sm:$0xff]  ;;  %s9203_s2 = sld [smem:[#allocation57_spill]] }
 0x3b1   : > { %1910 = vrot.lane.b32.xlu0 %v1903_v41, %s7828_s17  ;;  %1906 = vrot.lane.b32.xlu1 %v1903_v41, %s7829_s7 }
 0x3b5   : > { %1923 = vrot.lane.b32.xlu0 %v1916_v44, %s7828_s17  ;;  %1919 = vrot.lane.b32.xlu1 %v1916_v44, %s7829_s7  ;;  %s9201_s17 = sld [smem:[#allocation54_spill]] }
 0x3b6   : > { %s9202_s7 = sld [smem:[#allocation55_spill]] }
 0x41f   : > { %v1893_v45 = vpop.permute.xlu1 %1892  ;;  %v1897_v47 = vpop.permute.xlu0 %1896 }
 0x420   : > { %v1895_v46 = vmax.f32 %v1889_v37, %v1893_v45  ;;  %v1983_v45 = vld [vmem:[#allocation7 + $0x70] sm:$0xff] }
 0x422   : > { %v1899_v48 = vmax.f32 %v1895_v46, %v1897_v47 }
 0x423   : > { %v1907_v50 = vpop.permute.xlu1 %1906  ;;  %v1911_v52 = vpop.permute.xlu0 %1910 }
 0x424   : > { %v1905_v49 = vmax.f32 %v1899_v48, %v1903_v41  ;;  %v1982_v48 = vld [vmem:[#allocation7 + $0x68] sm:$0xff] }
 0x426   : > { %v1909_v51 = vmax.f32 %v1905_v49, %v1907_v50  ;;  %v1981_v50 = vld [vmem:[#allocation7 + $0x60] sm:$0xff] }
 0x427   : > { %v1920_v55 = vpop.permute.xlu1 %1919  ;;  %v1924_v59 = vpop.permute.xlu0 %1923 }
 0x428   : > { %v1913_v53 = vmax.f32 %v1909_v51, %v1911_v52  ;;  %v1980_v51 = vld [vmem:[#allocation7 + $0x58] sm:$0xff]  ;;  %v1979_v52 = vld [vmem:[#allocation7 + $0x50] sm:$0xff] }
 0x42a   : > { %v1918_v54 = vmax.f32 %v1913_v53, %v1916_v44  ;;  %v1984_v44 = vld [vmem:[#allocation7 + $0x78] sm:$0xff]  ;;  %v1978_v53 = vld [vmem:[#allocation7 + $0x48] sm:$0xff] }
 0x42b   : > { %2136 = vmatpush1.msra.mxu1 %v1984_v44  ;;  %v2225_v44 = vld [vmem:[#allocation8 + $0x38] sm:$0xff] }
 0x42c   : > { %v1922_v56 = vmax.f32 %v1918_v54, %v1920_v55  ;;  %2137 = vmatprep.subr.mxu1 %v7821_v3  ;;  %v1977_v54 = vld [vmem:[#allocation7 + $0x40] sm:$0xff]  ;;  %v1976_v55 = vld [vmem:[#allocation7 + $0x38] sm:$0xff] }
 0x42d   : > { %2138 = vmatpush1.msra.mxu1 %v1983_v45  ;;  %v2224_v45 = vld [vmem:[#allocation8 + $0x30] sm:$0xff] }
 0x42e   : > { %v8490_v63 = vmax.f32 %v1922_v56, %v1924_v59  ;;  %2139 = vmatprep.subr.mxu1 %v7821_v3  ;;  %v1973_v56 = vld [vmem:[#allocation7 + $0x20] sm:$0xff]  ;;  %v1972_v59 = vld [vmem:[#allocation7 + $0x18] sm:$0xff] }
 0x42f   : > { %2140 = vmatpush1.msra.mxu1 %v1982_v48  ;;  %v2221_v48 = vld [vmem:[#allocation8 + $0x18] sm:$0xff] }
 0x430   : > { %1928 = vrot.lane.b32.xlu1 %v8490_v63, %s7826_s3  ;;  %2141 = vmatprep.subr.mxu1 %v7821_v3 }
 0x431   : > { %2142 = vmatpush1.msra.mxu1 %v1981_v50  ;;  %v2219_v50 = vld [vmem:[#allocation8 + $0x8] sm:$0xff] }
 0x432   : > { %2143 = vmatprep.subr.mxu1 %v7821_v3 }
 0x433   : > { %2144 = vmatpush1.msra.mxu1 %v1980_v51  ;;  %v2218_v51 = vld [vmem:[#allocation8] sm:$0xff] }
 0x434   : > { %2145 = vmatprep.subr.mxu1 %v7821_v3 }
 0x435   : > { %2146 = vmatpush1.msra.mxu1 %v1979_v52  ;;  %v2247_v52 = vld [vmem:[#allocation8 + $0xe8] sm:$0xff] }
 0x436   : > { %2147 = vmatprep.subr.mxu1 %v7821_v3 }
 0x437   : > { %2148 = vmatpush1.msra.mxu1 %v1978_v53  ;;  %v2246_v53 = vld [vmem:[#allocation8 + $0xe0] sm:$0xff] }
 0x438   : > { %2149 = vmatprep.subr.mxu1 %v7821_v3 }
 0x439   : > { %2150 = vmatpush1.msra.mxu1 %v1977_v54  ;;  %v2245_v54 = vld [vmem:[#allocation8 + $0xd8] sm:$0xff] }
 0x43a   : > { %2151 = vmatprep.subr.mxu1 %v7821_v3 }
 0x43b   : > { %2152 = vmatpush1.msra.mxu1 %v1976_v55  ;;  %v2244_v55 = vld [vmem:[#allocation8 + $0xd0] sm:$0xff] }
 0x43c   : > { %2153 = vmatprep.subr.mxu1 %v7821_v3 }
 0x43d   : > { %2154 = vmatpush1.msra.mxu1 %v1975_v57  ;;  %v2243_v57 = vld [vmem:[#allocation8 + $0xc8] sm:$0xff] }
 0x43e   : > { %2155 = vmatprep.subr.mxu1 %v7821_v3 }
 0x43f   : > { %2156 = vmatpush1.msra.mxu1 %v1974_v58  ;;  %v2242_v58 = vld [vmem:[#allocation8 + $0xc0] sm:$0xff] }
 0x440   : > { %2157 = vmatprep.subr.mxu1 %v7821_v3 }
 0x441   : > { %2158 = vmatpush1.msra.mxu1 %v1973_v56  ;;  %v2241_v56 = vld [vmem:[#allocation8 + $0xb8] sm:$0xff] }
 0x442   : > { %2159 = vmatprep.subr.mxu1 %v7821_v3 }
 0x443   : > { %2160 = vmatpush1.msra.mxu1 %v1972_v59  ;;  %v2240_v59 = vld [vmem:[#allocation8 + $0xb0] sm:$0xff] }
 0x444   : > { %2161 = vmatprep.subr.mxu1 %v7821_v3 }
 0x445   : > { %2162 = vmatpush1.msra.mxu1 %v1971_v60  ;;  %v2239_v60 = vld [vmem:[#allocation8 + $0xa8] sm:$0xff] }
 0x446   : > { %2163 = vmatprep.subr.mxu1 %v7821_v3 }
 0x447   : > { %2164 = vmatpush1.msra.mxu1 %v1970_v0  ;;  %v2238_v0 = vld [vmem:[#allocation8 + $0xa0] sm:$0xff] }
 0x448   : > { %2165 = vmatprep.subr.mxu1 %v7821_v3 }
 0x449   : > { %2166 = vmatpush1.msra.mxu1 %v1969_v1  ;;  %v2237_v1 = vld [vmem:[#allocation8 + $0x98] sm:$0xff] }
 0x44a   : > { %2171 = vmatprep.subr.mxu1 %v7821_v3 }
 0x44b   : > { %2172 = vmatpush2.msra.mxu1 %v1998_v2  ;;  %v2236_v2 = vld [vmem:[#allocation8 + $0x90] sm:$0xff] }
 0x44c   : > { %2173 = vmatprep.subr.mxu1 %v7821_v3 }
 0x44d   : > { %2174 = vmatpush2.msra.mxu1 %v1997_v5  ;;  %v2235_v5 = vld [vmem:[#allocation8 + $0x88] sm:$0xff] }
 0x44e   : > { %2175 = vmatprep.subr.mxu1 %v7821_v3 }
 0x44f   : > { %2176 = vmatpush2.msra.mxu1 %v1996_v6  ;;  %v2234_v6 = vld [vmem:[#allocation8 + $0x80] sm:$0xff] }
 0x450   : > { %2177 = vmatprep.subr.mxu1 %v7821_v3 }
 0x451   : > { %2178 = vmatpush2.msra.mxu1 %v1995_v7 }
 0x452   : > { %2179 = vmatprep.subr.mxu1 %v7821_v3 }
 0x453   : > { %2180 = vmatpush2.msra.mxu1 %v1994_v8 }
 0x454   : > { %2181 = vmatprep.subr.mxu1 %v7821_v3 }
 0x455   : > { %2182 = vmatpush2.msra.mxu1 %v1993_v9 }
 0x456   : > { %2183 = vmatprep.subr.mxu1 %v7821_v3 }
 0x457   : > { %2184 = vmatpush2.msra.mxu1 %v1992_v61 }
 0x458   : > { %2185 = vmatprep.subr.mxu1 %v7821_v3 }
 0x459   : > { %2186 = vmatpush2.msra.mxu1 %v1991_v4 }
 0x45a   : > { %2187 = vmatprep.subr.mxu1 %v7821_v3 }
 0x45b   : > { %2188 = vmatpush2.msra.mxu1 %v1990_v10 }
 0x45c   : > { %2189 = vmatprep.subr.mxu1 %v7821_v3 }
 0x45d   : > { %2190 = vmatpush2.msra.mxu1 %v1989_v62 }
 0x45e   : > { %2191 = vmatprep.subr.mxu1 %v7821_v3 }
 0x45f   : > { %2192 = vmatpush2.msra.mxu1 %v1988_v11 }
 0x460   : > { %2193 = vmatprep.subr.mxu1 %v7821_v3 }
 0x461   : > { %2194 = vmatpush2.msra.mxu1 %v1987_v12 }
 0x462   : > { %2195 = vmatprep.subr.mxu1 %v7821_v3 }
 0x463   : > { %2196 = vmatpush2.msra.mxu1 %v1986_v13 }
 0x464   : > { %2197 = vmatprep.subr.mxu1 %v7821_v3 }
 0x465   : > { %2198 = vmatpush2.msra.mxu1 %v1985_v14 }
 0x466   : > { %2412 = vmatprep.subr.mxu1 %v7821_v3 }
 0x4a2   : > { %v1929_v26 = vpop.permute.xlu1 %1928 }
 0x4a3   : > { %v1931_v27 = vsel %vm1719_vm12, 0.0, %v1929_v26 }
 0x4a4   : > { %v1932_v28 = vsel %vm1884_vm1, %v1931_v27, 0.0 }
 0x4a5   : > { %v1934_v29 = vrot.slane %v1932_v28, 7 }
 0x4a7   : > { %v1936_v30 = vsel %vm1613_vm4, 0.0, %v1934_v29  ;;  %v1937_v31 = vsel %vm1613_vm4, %v1934_v29, 0.0 }
 0x4a8   : > { %v2002_v32 = vrot.slane %v1936_v30, 1  ;;  %v2003_v33 = vrot.slane %v1937_v31, 1  ;;  %v2008_v34 = vrot.slane %v1936_v30, 2  ;;  %v2009_v35 = vrot.slane %v1937_v31, 2  ;;  %v5865_v31 = vld [vmem:[%s9196_s18] ss:$0 sm:$0xff] }
 0x4a9   : > { %s9205_s18 = sld [smem:[#allocation59_spill]] }
 0x4aa   : > { %v2010_v36 = vsel %vm1622_vm0, %v2008_v34, %v2009_v35  ;;  %v2004_v37 = vsel %vm1624_vm8, %v2002_v32, %v2003_v33  ;;  %v2233_v35 = vld [vmem:[#allocation8 + $0x78] sm:$0xff] }
 0x4ab   : > { %2011 = vrot.lane.b32.xlu1 %v2010_v36, %s7830_s23  ;;  %2005 = vrot.lane.b32.xlu0 %v2004_v37, %s7831_s26  ;;  %v2232_v36 = vld [vmem:[#allocation8 + $0x70] sm:$0xff] }
 0x51d   : > { %v2012_v38 = vpop.permute.xlu1 %2011  ;;  %v2006_v39 = vpop.permute.xlu0 %2005 }
 0x51e   : > { %v2015_v40 = vsel %vm2014_vm2, %v1936_v30, %v2006_v39  ;;  %v2017_v41 = vsel %vm2016_vm6, %v2006_v39, %v2012_v38  ;;  %v2231_v38 = vld [vmem:[#allocation8 + $0x68] sm:$0xff] }
 0x51f   : > { %5864 = vmatprep.mubr.msk.f32.mxu0 %vm2024_vm9, %v2017_v41  ;;  %v2229_v41 = vld [vmem:[#allocation8 + $0x58] sm:$0xff] }
 0x520   : > { %2093 = vmatmul.mubr.f32.vlgmr.msra.gmra.mxu0 %v2015_v40  ;;  %v2230_v40 = vld [vmem:[#allocation8 + $0x60] sm:$0xff] }
 0x521   : > { %2306 = vmatpush1.msra.mxu0 %v2233_v35  ;;  %v2254_v35 = vld [vmem:[#allocation10 + $0x28] sm:$0xff] }
 0x522   : > { %2307 = vmatprep.subr.mxu0 %v7821_v3 }
 0x523   : > { %2308 = vmatpush1.msra.mxu0 %v2232_v36  ;;  %v2253_v36 = vld [vmem:[#allocation10 + $0x20] sm:$0xff] }
 0x524   : > { %2309 = vmatprep.subr.mxu0 %v7821_v3 }
 0x525   : > { %2310 = vmatpush1.msra.mxu0 %v2231_v38  ;;  %v2252_v38 = vld [vmem:[#allocation10 + $0x18] sm:$0xff] }
 0x526   : > { %2311 = vmatprep.subr.mxu0 %v7821_v3 }
 0x527   : > { %2312 = vmatpush1.msra.mxu0 %v2230_v40  ;;  %v2251_v40 = vld [vmem:[#allocation10 + $0x10] sm:$0xff] }
 0x528   : > { %2313 = vmatprep.subr.mxu0 %v7821_v3 }
 0x529   : > { %2314 = vmatpush1.msra.mxu0 %v2229_v41  ;;  %v2250_v41 = vld [vmem:[#allocation10 + $0x8] sm:$0xff] }
 0x52a   : > { %2315 = vmatprep.subr.mxu0 %v7821_v3 }
 0x5e0   : > { %v2094_v43 = vpop.f32.mrf.mxu0 }
 0x5e1   : > { %v2095_v46 = vadd.f32 %v5863_v42, %v2094_v43  ;;  %v2227_v42 = vld [vmem:[#allocation8 + $0x48] sm:$0xff]  ;;  %v2226_v43 = vld [vmem:[#allocation8 + $0x40] sm:$0xff] }
 0x5e2   : > { %v2096_v47 = vpop.f32.mrf.mxu0 }
 0x5e3   : > { %v2098_v49 = vmax.f32 %v2095_v46, 0.0  ;;  %v2223_v46 = vld [vmem:[#allocation8 + $0x28] sm:$0xff]  ;;  %v2222_v47 = vld [vmem:[#allocation8 + $0x20] sm:$0xff] }
 0x5e5   : > { %2100 = vrot.lane.b32.xlu0 %v2098_v49, %s7826_s3  ;;  %v2220_v49 = vld [vmem:[#allocation8 + $0x10] sm:$0xff] }
 0x657   : > { %v2101_v16 = vpop.permute.xlu0 %2100 }
 0x658   : > { %v2103_v17 = vsel %vm1719_vm12, 0.0, %v2101_v16 }
 0x659   : > { %v2104_v18 = vsel %vm1884_vm1, %v2103_v17, 0.0 }
 0x65a   : > { %v2106_v15 = vrot.slane %v2104_v18, 7 }
 0x65c   : > { %v2108_v19 = vsel %vm1613_vm4, 0.0, %v2106_v15  ;;  %v2109_v20 = vsel %vm1613_vm4, %v2106_v15, 0.0 }
 0x65d   : > { %v2112_v21 = vrot.slane %v2108_v19, 1  ;;  %v2113_v22 = vrot.slane %v2109_v20, 1  ;;  %v2118_v23 = vrot.slane %v2108_v19, 2  ;;  %v2119_v24 = vrot.slane %v2109_v20, 2  ;;  %v5867_v20 = vld [vmem:[%s9197_s4] ss:$0 sm:$0xff] }
 0x65e   : > { %s9206_s4 = sld [smem:[#allocation61_spill]] }
 0x65f   : > { %v2120_v25 = vsel %vm1622_vm0, %v2118_v23, %v2119_v24  ;;  %v2114_v26 = vsel %vm1624_vm8, %v2112_v21, %v2113_v22  ;;  %v2264_v22 = vld [vmem:[#allocation10 + $0x78] sm:$0xff]  ;;  %v2263_v23 = vld [vmem:[#allocation10 + $0x70] sm:$0xff] }
 0x660   : > { %2121 = vrot.lane.b32.xlu0 %v2120_v25, %s7830_s23  ;;  %2115 = vrot.lane.b32.xlu1 %v2114_v26, %s7831_s26  ;;  %v2262_v26 = vld [vmem:[#allocation10 + $0x68] sm:$0xff] }
 0x6d2   : > { %v2122_v27 = vpop.permute.xlu0 %2121  ;;  %v2116_v28 = vpop.permute.xlu1 %2115 }
 0x6d3   : > { %v2124_v29 = vsel %vm2014_vm2, %v2108_v19, %v2116_v28  ;;  %v2125_v30 = vsel %vm2016_vm6, %v2116_v28, %v2122_v27  ;;  %v2261_v28 = vld [vmem:[#allocation10 + $0x60] sm:$0xff] }
 0x6d4   : > { %5866 = vmatprep.mubr.msk.f32.mxu1 %vm2024_vm9, %v2125_v30  ;;  %v2259_v30 = vld [vmem:[#allocation10 + $0x50] sm:$0xff] }
 0x6d5   : > { %2200 = vmatmul.mubr.f32.vlgmr.msra.gmra.mxu1 %v2124_v29  ;;  %v2260_v29 = vld [vmem:[#allocation10 + $0x58] sm:$0xff] }
 0x6d6   : > { %2413 = vmatpush1.msra.mxu1 %v2264_v22  ;;  %v2502_v22 = vld [vmem:[#allocation11 + $0x38] sm:$0xff] }
 0x6d7   : > { %2414 = vmatprep.subr.mxu1 %v7821_v3 }
 0x6d8   : > { %2415 = vmatpush1.msra.mxu1 %v2263_v23  ;;  %v2501_v23 = vld [vmem:[#allocation11 + $0x30] sm:$0xff] }
 0x6d9   : > { %2416 = vmatprep.subr.mxu1 %v7821_v3 }
 0x6da   : > { %2417 = vmatpush1.msra.mxu1 %v2262_v26  ;;  %v2498_v26 = vld [vmem:[#allocation11 + $0x18] sm:$0xff] }
 0x6db   : > { %2418 = vmatprep.subr.mxu1 %v7821_v3 }
 0x6dc   : > { %2419 = vmatpush1.msra.mxu1 %v2261_v28  ;;  %v2496_v28 = vld [vmem:[#allocation11 + $0x8] sm:$0xff] }
 0x6dd   : > { %2420 = vmatprep.subr.mxu1 %v7821_v3 }
 0x6de   : > { %2421 = vmatpush1.msra.mxu1 %v2260_v29  ;;  %v2495_v29 = vld [vmem:[#allocation11] sm:$0xff] }
 0x6df   : > { %2422 = vmatprep.subr.mxu1 %v7821_v3 }
 0x6e0   : > { %2423 = vmatpush1.msra.mxu1 %v2259_v30  ;;  %v2524_v30 = vld [vmem:[#allocation11 + $0xe8] sm:$0xff] }
 0x6e1   : > { %2424 = vmatprep.subr.mxu1 %v7821_v3 }
 0x795   : > { %v2201_v32 = vpop.f32.mrf.mxu1 }
 0x796   : > { %v2202_v33 = vadd.f32 %v5865_v31, %v2201_v32  ;;  %v2258_v31 = vld [vmem:[#allocation10 + $0x48] sm:$0xff]  ;;  %v2257_v32 = vld [vmem:[#allocation10 + $0x40] sm:$0xff] }
 0x797   : > { %v2203_v34 = vpop.f32.mrf.mxu1  ;;  %2425 = vmatpush1.msra.mxu1 %v2258_v31  ;;  %v2523_v31 = vld [vmem:[#allocation11 + $0xe0] sm:$0xff] }
 0x798   : > { %v8579_v37 = vadd.f32 %v2202_v33, %v8490_v63  ;;  %v2228_v63 = vld [vmem:[#allocation8 + $0x50] sm:$0xff]  ;;  %2426 = vmatprep.subr.mxu1 %v7821_v3  ;;  %v2256_v33 = vld [vmem:[#allocation10 + $0x38] sm:$0xff]  ;;  %v2255_v34 = vld [vmem:[#allocation10 + $0x30] sm:$0xff] }
 0x799   : > { %2316 = vmatpush1.msra.mxu0 %v2228_v63  ;;  %2427 = vmatpush1.msra.mxu1 %v2257_v32  ;;  %v2249_v63 = vld [vmem:[#allocation10] sm:$0xff]  ;;  %v2522_v32 = vld [vmem:[#allocation11 + $0xd8] sm:$0xff] }
 0x79a   : > { %v2206_v39 = vmax.f32 %v8579_v37, 0.0  ;;  %2317 = vmatprep.subr.mxu0 %v7821_v3  ;;  %2428 = vmatprep.subr.mxu1 %v7821_v3  ;;  %v2506_v37 = vld [vmem:[#allocation11 + $0x58] sm:$0xff] }
 0x79b   : > { %2318 = vmatpush1.msra.mxu0 %v2227_v42  ;;  %2429 = vmatpush1.msra.mxu1 %v2256_v33  ;;  %v2278_v42 = vld [vmem:[#allocation10 + $0xe8] sm:$0xff]  ;;  %v2521_v33 = vld [vmem:[#allocation11 + $0xd0] sm:$0xff] }
 0x79c   : > { %2208 = vrot.lane.b32.xlu1 %v2206_v39, %s7826_s3  ;;  %2319 = vmatprep.subr.mxu0 %v7821_v3 }
 0x79d   : > { %2320 = vmatpush1.msra.mxu0 %v2226_v43  ;;  %2430 = vmatprep.subr.mxu1 %v7821_v3  ;;  %v2277_v43 = vld [vmem:[#allocation10 + $0xe0] sm:$0xff] }
 0x79e   : > { %2321 = vmatprep.subr.mxu0 %v7821_v3  ;;  %2431 = vmatpush1.msra.mxu1 %v2255_v34  ;;  %v2520_v34 = vld [vmem:[#allocation11 + $0xc8] sm:$0xff] }
 0x79f   : > { %2322 = vmatpush1.msra.mxu0 %v2225_v44  ;;  %2432 = vmatprep.subr.mxu1 %v7821_v3  ;;  %v2276_v44 = vld [vmem:[#allocation10 + $0xd8] sm:$0xff] }
 0x7a0   : > { %2323 = vmatprep.subr.mxu0 %v7821_v3  ;;  %2433 = vmatpush1.msra.mxu1 %v2254_v35  ;;  %v2519_v35 = vld [vmem:[#allocation11 + $0xc0] sm:$0xff] }
 0x7a1   : > { %2324 = vmatpush1.msra.mxu0 %v2224_v45  ;;  %2434 = vmatprep.subr.mxu1 %v7821_v3  ;;  %v2275_v45 = vld [vmem:[#allocation10 + $0xd0] sm:$0xff] }
 0x7a2   : > { %2325 = vmatprep.subr.mxu0 %v7821_v3  ;;  %2435 = vmatpush1.msra.mxu1 %v2253_v36  ;;  %v2518_v36 = vld [vmem:[#allocation11 + $0xb8] sm:$0xff] }
 0x7a3   : > { %2326 = vmatpush1.msra.mxu0 %v2223_v46  ;;  %2436 = vmatprep.subr.mxu1 %v7821_v3  ;;  %v2274_v46 = vld [vmem:[#allocation10 + $0xc8] sm:$0xff] }
 0x7a4   : > { %2327 = vmatprep.subr.mxu0 %v7821_v3  ;;  %2437 = vmatpush1.msra.mxu1 %v2252_v38  ;;  %v2517_v38 = vld [vmem:[#allocation11 + $0xb0] sm:$0xff] }
 0x7a5   : > { %2328 = vmatpush1.msra.mxu0 %v2222_v47  ;;  %2438 = vmatprep.subr.mxu1 %v7821_v3  ;;  %v2273_v47 = vld [vmem:[#allocation10 + $0xc0] sm:$0xff] }
 0x7a6   : > { %2329 = vmatprep.subr.mxu0 %v7821_v3  ;;  %2439 = vmatpush1.msra.mxu1 %v2251_v40  ;;  %v2516_v40 = vld [vmem:[#allocation11 + $0xa8] sm:$0xff] }
 0x7a7   : > { %2330 = vmatpush1.msra.mxu0 %v2221_v48  ;;  %2440 = vmatprep.subr.mxu1 %v7821_v3  ;;  %v2272_v48 = vld [vmem:[#allocation10 + $0xb8] sm:$0xff] }
 0x7a8   : > { %2331 = vmatprep.subr.mxu0 %v7821_v3  ;;  %2441 = vmatpush1.msra.mxu1 %v2250_v41  ;;  %v2515_v41 = vld [vmem:[#allocation11 + $0xa0] sm:$0xff] }
 0x7a9   : > { %2332 = vmatpush1.msra.mxu0 %v2220_v49  ;;  %2442 = vmatprep.subr.mxu1 %v7821_v3  ;;  %v2271_v49 = vld [vmem:[#allocation10 + $0xb0] sm:$0xff] }
 0x7aa   : > { %2333 = vmatprep.subr.mxu0 %v7821_v3  ;;  %2443 = vmatpush1.msra.mxu1 %v2249_v63  ;;  %v2514_v63 = vld [vmem:[#allocation11 + $0x98] sm:$0xff] }
 0x7ab   : > { %2334 = vmatpush1.msra.mxu0 %v2219_v50  ;;  %2448 = vmatprep.subr.mxu1 %v7821_v3  ;;  %v2270_v50 = vld [vmem:[#allocation10 + $0xa8] sm:$0xff] }
 0x7ac   : > { %2335 = vmatprep.subr.mxu0 %v7821_v3  ;;  %2449 = vmatpush2.msra.mxu1 %v2278_v42  ;;  %v2513_v42 = vld [vmem:[#allocation11 + $0x90] sm:$0xff] }
 0x7ad   : > { %2336 = vmatpush1.msra.mxu0 %v2218_v51  ;;  %2450 = vmatprep.subr.mxu1 %v7821_v3  ;;  %v2269_v51 = vld [vmem:[#allocation10 + $0xa0] sm:$0xff] }
 0x7ae   : > { %2341 = vmatprep.subr.mxu0 %v7821_v3  ;;  %2451 = vmatpush2.msra.mxu1 %v2277_v43  ;;  %v2512_v43 = vld [vmem:[#allocation11 + $0x88] sm:$0xff] }
 0x7af   : > { %2342 = vmatpush2.msra.mxu0 %v2247_v52  ;;  %2452 = vmatprep.subr.mxu1 %v7821_v3  ;;  %v2268_v52 = vld [vmem:[#allocation10 + $0x98] sm:$0xff] }
 0x7b0   : > { %2343 = vmatprep.subr.mxu0 %v7821_v3  ;;  %2453 = vmatpush2.msra.mxu1 %v2276_v44  ;;  %v2511_v44 = vld [vmem:[#allocation11 + $0x80] sm:$0xff] }
 0x7b1   : > { %2344 = vmatpush2.msra.mxu0 %v2246_v53  ;;  %2454 = vmatprep.subr.mxu1 %v7821_v3  ;;  %v2267_v53 = vld [vmem:[#allocation10 + $0x90] sm:$0xff] }
 0x7b2   : > { %2345 = vmatprep.subr.mxu0 %v7821_v3  ;;  %2455 = vmatpush2.msra.mxu1 %v2275_v45 }
 0x7b3   : > { %2346 = vmatpush2.msra.mxu0 %v2245_v54  ;;  %2456 = vmatprep.subr.mxu1 %v7821_v3  ;;  %v2266_v54 = vld [vmem:[#allocation10 + $0x88] sm:$0xff] }
 0x7b4   : > { %2347 = vmatprep.subr.mxu0 %v7821_v3  ;;  %2457 = vmatpush2.msra.mxu1 %v2274_v46 }
 0x7b5   : > { %2348 = vmatpush2.msra.mxu0 %v2244_v55  ;;  %2458 = vmatprep.subr.mxu1 %v7821_v3  ;;  %v2265_v55 = vld [vmem:[#allocation10 + $0x80] sm:$0xff] }
 0x7b6   : > { %2349 = vmatprep.subr.mxu0 %v7821_v3  ;;  %2459 = vmatpush2.msra.mxu1 %v2273_v47 }
 0x7b7   : > { %2350 = vmatpush2.msra.mxu0 %v2243_v57  ;;  %2460 = vmatprep.subr.mxu1 %v7821_v3 }
 0x7b8   : > { %2351 = vmatprep.subr.mxu0 %v7821_v3  ;;  %2461 = vmatpush2.msra.mxu1 %v2272_v48 }
 0x7b9   : > { %2352 = vmatpush2.msra.mxu0 %v2242_v58  ;;  %2462 = vmatprep.subr.mxu1 %v7821_v3 }
 0x7ba   : > { %2353 = vmatprep.subr.mxu0 %v7821_v3  ;;  %2463 = vmatpush2.msra.mxu1 %v2271_v49 }
 0x7bb   : > { %2354 = vmatpush2.msra.mxu0 %v2241_v56  ;;  %2464 = vmatprep.subr.mxu1 %v7821_v3 }
 0x7bc   : > { %2355 = vmatprep.subr.mxu0 %v7821_v3  ;;  %2465 = vmatpush2.msra.mxu1 %v2270_v50 }
 0x7bd   : > { %2356 = vmatpush2.msra.mxu0 %v2240_v59  ;;  %2466 = vmatprep.subr.mxu1 %v7821_v3 }
 0x7be   : > { %2357 = vmatprep.subr.mxu0 %v7821_v3  ;;  %2467 = vmatpush2.msra.mxu1 %v2269_v51 }
 0x7bf   : > { %2358 = vmatpush2.msra.mxu0 %v2239_v60  ;;  %2468 = vmatprep.subr.mxu1 %v7821_v3 }
 0x7c0   : > { %2359 = vmatprep.subr.mxu0 %v7821_v3  ;;  %2469 = vmatpush2.msra.mxu1 %v2268_v52 }
 0x7c1   : > { %2360 = vmatpush2.msra.mxu0 %v2238_v0  ;;  %2470 = vmatprep.subr.mxu1 %v7821_v3 }
 0x7c2   : > { %2361 = vmatprep.subr.mxu0 %v7821_v3  ;;  %2471 = vmatpush2.msra.mxu1 %v2267_v53 }
 0x7c3   : > { %2362 = vmatpush2.msra.mxu0 %v2237_v1  ;;  %2472 = vmatprep.subr.mxu1 %v7821_v3 }
 0x7c4   : > { %2363 = vmatprep.subr.mxu0 %v7821_v3  ;;  %2473 = vmatpush2.msra.mxu1 %v2266_v54 }
 0x7c5   : > { %2364 = vmatpush2.msra.mxu0 %v2236_v2  ;;  %2474 = vmatprep.subr.mxu1 %v7821_v3 }
 0x7c6   : > { %2365 = vmatprep.subr.mxu0 %v7821_v3  ;;  %2475 = vmatpush2.msra.mxu1 %v2265_v55 }
 0x7c7   : > { %2366 = vmatpush2.msra.mxu0 %v2235_v5 }
 0x7c8   : > { %2367 = vmatprep.subr.mxu0 %v7821_v3 }
 0x7c9   : > { %2368 = vmatpush2.msra.mxu0 %v2234_v6 }
 0x7ca   : > { %2603 = vmatprep.subr.mxu0 %v7821_v3 }
 0x80e   : > { %v2209_v7 = vpop.permute.xlu1 %2208 }
 0x80f   : > { %v2211_v8 = vsel %vm1719_vm12, 0.0, %v2209_v7 }
 0x810   : > { %v2212_v9 = vsel %vm1884_vm1, %v2211_v8, 0.0 }
 0x811   : > { %v2214_v61 = vrot.slane %v2212_v9, 7 }
 0x813   : > { %v2216_v4 = vsel %vm1613_vm4, 0.0, %v2214_v61  ;;  %v2217_v10 = vsel %vm1613_vm4, %v2214_v61, 0.0 }
 0x814   : > { %v2282_v62 = vrot.slane %v2216_v4, 1  ;;  %v2283_v11 = vrot.slane %v2217_v10, 1  ;;  %v2288_v12 = vrot.slane %v2216_v4, 2  ;;  %v2289_v13 = vrot.slane %v2217_v10, 2 }
 0x816   : > { %v2290_v14 = vsel %vm1622_vm0, %v2288_v12, %v2289_v13  ;;  %v2284_v16 = vsel %vm1624_vm8, %v2282_v62, %v2283_v11  ;;  %v5869_v62 = vld [vmem:[%s9198_s0] ss:$0 sm:$0xff]  ;;  %s9207_s0 = sld [smem:[#allocation62_spill]] }
 0x817   : > { %2291 = vrot.lane.b32.xlu1 %v2290_v14, %s7830_s23  ;;  %2285 = vrot.lane.b32.xlu0 %v2284_v16, %s7831_s26  ;;  %v2510_v16 = vld [vmem:[#allocation11 + $0x78] sm:$0xff] }
 0x889   : > { %v2292_v17 = vpop.permute.xlu1 %2291  ;;  %v2286_v18 = vpop.permute.xlu0 %2285 }
 0x88a   : > { %v2294_v15 = vsel %vm2014_vm2, %v2216_v4, %v2286_v18  ;;  %v2295_v19 = vsel %vm2016_vm6, %v2286_v18, %v2292_v17  ;;  %v2509_v17 = vld [vmem:[#allocation11 + $0x70] sm:$0xff] }
 0x88b   : > { %5868 = vmatprep.mubr.msk.f32.mxu0 %vm2024_vm9, %v2295_v19  ;;  %v2507_v19 = vld [vmem:[#allocation11 + $0x60] sm:$0xff] }
 0x88c   : > { %2370 = vmatmul.mubr.f32.vlgmr.msra.gmra.mxu0 %v2294_v15  ;;  %v2508_v15 = vld [vmem:[#allocation11 + $0x68] sm:$0xff] }
 0x88d   : > { %2604 = vmatpush1.msra.mxu0 %v2510_v16 }
 0x88e   : > { %2605 = vmatprep.subr.mxu0 %v7821_v3 }
 0x88f   : > { %2606 = vmatpush1.msra.mxu0 %v2509_v17  ;;  %v2848_v17 = vld [vmem:[#allocation13 + $0x8] sm:$0xff] }
 0x890   : > { %2607 = vmatprep.subr.mxu0 %v7821_v3 }
 0x891   : > { %2608 = vmatpush1.msra.mxu0 %v2508_v15  ;;  %v2847_v15 = vld [vmem:[#allocation13] sm:$0xff] }
 0x892   : > { %2609 = vmatprep.subr.mxu0 %v7821_v3 }
 0x893   : > { %2610 = vmatpush1.msra.mxu0 %v2507_v19 }
 0x894   : > { %2611 = vmatprep.subr.mxu0 %v7821_v3 }
 0x895   : > { %2612 = vmatpush1.msra.mxu0 %v2506_v37 }
 0x896   : > { %2613 = vmatprep.subr.mxu0 %v7821_v3 }
 0x94c   : > { %v2371_v21 = vpop.f32.mrf.mxu0 }
 0x94d   : > { %v2372_v24 = vadd.f32 %v5867_v20, %v2371_v21  ;;  %v2504_v20 = vld [vmem:[#allocation11 + $0x48] sm:$0xff]  ;;  %v2503_v21 = vld [vmem:[#allocation11 + $0x40] sm:$0xff] }
 0x94e   : > { %v2373_v25 = vpop.f32.mrf.mxu0 }
 0x94f   : > { %v2375_v27 = vmax.f32 %v2372_v24, 0.0  ;;  %v2500_v24 = vld [vmem:[#allocation11 + $0x28] sm:$0xff]  ;;  %v2499_v25 = vld [vmem:[#allocation11 + $0x20] sm:$0xff] }
 0x951   : > { %2377 = vrot.lane.b32.xlu0 %v2375_v27, %s7826_s3  ;;  %v2497_v27 = vld [vmem:[#allocation11 + $0x10] sm:$0xff] }
 0x9c3   : > { %v2378_v57 = vpop.permute.xlu0 %2377 }
 0x9c4   : > { %v2380_v58 = vsel %vm1719_vm12, 0.0, %v2378_v57 }
 0x9c5   : > { %v2381_v56 = vsel %vm1884_vm1, %v2380_v58, 0.0 }
 0x9c6   : > { %v2383_v59 = vrot.slane %v2381_v56, 7 }
 0x9c8   : > { %v2385_v60 = vsel %vm1613_vm4, 0.0, %v2383_v59  ;;  %v2386_v0 = vsel %vm1613_vm4, %v2383_v59, 0.0 }
 0x9c9   : > { %v2389_v1 = vrot.slane %v2385_v60, 1  ;;  %v2390_v2 = vrot.slane %v2386_v0, 1  ;;  %v2395_v5 = vrot.slane %v2385_v60, 2  ;;  %v2396_v6 = vrot.slane %v2386_v0, 2 }
 0x9cb   : > { %v2397_v7 = vsel %vm1622_vm0, %v2395_v5, %v2396_v6  ;;  %v2391_v8 = vsel %vm1624_vm8, %v2389_v1, %v2390_v2  ;;  %vm7832_vm0 = vmmov 0   ;;  %vm2697_vm8 = vcmask 523264  }
 0x9cc   : > { %2398 = vrot.lane.b32.xlu0 %v2397_v7, %s7830_s23  ;;  %2392 = vrot.lane.b32.xlu1 %v2391_v8, %s7831_s26 }
 0xa3e   : > { %v2399_v9 = vpop.permute.xlu0 %2398  ;;  %v2393_v61 = vpop.permute.xlu1 %2392 }
 0xa3f   : > { %v2401_v4 = vsel %vm2014_vm2, %v2385_v60, %v2393_v61  ;;  %v2402_v10 = vsel %vm2016_vm6, %v2393_v61, %v2399_v9  ;;  %v2854_v61 = vld [vmem:[#allocation13 + $0x38] sm:$0xff] }
 0xa40   : > { %5870 = vmatprep.mubr.msk.f32.mxu1 %vm2024_vm9, %v2402_v10  ;;  %v2852_v10 = vld [vmem:[#allocation13 + $0x28] sm:$0xff] }
 0xa41   : > { %2477 = vmatmul.mubr.f32.vlgmr.msra.gmra.mxu1 %v2401_v4  ;;  %v2853_v4 = vld [vmem:[#allocation13 + $0x30] sm:$0xff] }
 0xb01   : > { %v2478_v11 = vpop.f32.mrf.mxu1 }
 0xb02   : > { %v2479_v12 = vadd.f32 %v5869_v62, %v2478_v11  ;;  %v2851_v62 = vld [vmem:[#allocation13 + $0x20] sm:$0xff] }
 0xb03   : > { %v2480_v13 = vpop.f32.mrf.mxu1 }
 0xb04   : > { %v2482_v14 = vadd.f32 %v2479_v12, %v2206_v39  ;;  %v2505_v39 = vld [vmem:[#allocation11 + $0x50] sm:$0xff]  ;;  %v2850_v12 = vld [vmem:[#allocation13 + $0x18] sm:$0xff]  ;;  %v2849_v13 = vld [vmem:[#allocation13 + $0x10] sm:$0xff] }
 0xb05   : > { %2614 = vmatpush1.msra.mxu0 %v2505_v39 }
 0xb06   : > { %v8671_v18 = vmax.f32 %v2482_v14, 0.0  ;;  %2615 = vmatprep.subr.mxu0 %v7821_v3 }
 0xb07   : > { %2616 = vmatpush1.msra.mxu0 %v2504_v20  ;;  %v5871_v20 = vld [vmem:[%s9199_s11] ss:$0 sm:$0xff]  ;;  %s9208_s11 = sld [smem:[#allocation64_spill]] }
 0xb08   : > { %2485 = vrot.lane.b32.xlu1 %v8671_v18, %s7826_s3  ;;  %2617 = vmatprep.subr.mxu0 %v7821_v3  ;;  %v2856_v11 = vrot.slane %v8671_v18, 1  ;;  %v2858_v14 = vrot.slane %v8671_v18, 2  ;;  %v2860_v37 = vrot.slane %v8671_v18, 3  ;;  %s7833_s3 = smov 16  }
 0xb09   : > { %2618 = vmatpush1.msra.mxu0 %v2503_v21 }
 0xb0a   : > { %2619 = vmatprep.subr.mxu0 %v7821_v3  ;;  %v2862_v16 = vsel %vm1613_vm4, %v8671_v18, %v2856_v11  ;;  %v2556_v18 = vld [vmem:[%s9200_s22 + $0xf0] sm:$0xff]  ;;  %v2559_v11 = vld [vmem:[%s9200_s22 + $0x108] sm:$0xff] }
 0xb0b   : > { %2620 = vmatpush1.msra.mxu0 %v2502_v22  ;;  %v2863_v19 = vsel %vm1615_vm5, %v2862_v16, %v2858_v14  ;;  %v2557_v22 = vld [vmem:[%s9200_s22 + $0xf8] sm:$0xff]  ;;  %v5873_v16 = vld [vmem:[%s9201_s17] ss:$0 sm:$0xff]  ;;  %s9212_s17 = sld [smem:[#allocation70_spill]] }
 0xb0c   : > { %2621 = vmatprep.subr.mxu0 %v7821_v3  ;;  %v2864_v39 = vsel %vm1530_vm3, %v2863_v19, %v2860_v37  ;;  %5938 = vmatprep.subr.mxu1 %v2557_v22  ;;  %v5875_v19 = vld [vmem:[%s9202_s7] ss:$0 sm:$0xff]  ;;  %v2988_v22 = vld [vmem:[#allocation14 + $0xf8] sm:$0xff]  ;;  %s5899_s7 = sshll.u32 %s8073_s15, 4 }
 0xb0d   : > { %2622 = vmatpush1.msra.mxu0 %v2501_v23  ;;  %v2541_v23 = vld [vmem:[%s9200_s22 + $0x78] sm:$0xff] }
 0xb0e   : > { %2623 = vmatprep.subr.mxu0 %v7821_v3  ;;  %5939 = vmatpush3.msra.mxu1 %v2541_v23  ;;  %v2972_v23 = vld [vmem:[#allocation14 + $0x78] sm:$0xff] }
 0xb0f   : > { %2624 = vmatpush1.msra.mxu0 %v2500_v24  ;;  %5940 = vmatprep.subr.mxu1 %v2556_v18  ;;  %v2987_v18 = vld [vmem:[#allocation14 + $0xf0] sm:$0xff] }
 0xb10   : > { %2625 = vmatprep.subr.mxu0 %v7821_v3 }
 0xb11   : > { %2626 = vmatpush1.msra.mxu0 %v2499_v25  ;;  %v2540_v25 = vld [vmem:[%s9200_s22 + $0x70] sm:$0xff] }
 0xb12   : > { %2627 = vmatprep.subr.mxu0 %v7821_v3  ;;  %5941 = vmatpush3.msra.mxu1 %v2540_v25  ;;  %v2971_v25 = vld [vmem:[#allocation14 + $0x70] sm:$0xff] }
 0xb13   : > { %2628 = vmatpush1.msra.mxu0 %v2498_v26 }
 0xb14   : > { %2629 = vmatprep.subr.mxu0 %v7821_v3 }
 0xb15   : > { %2630 = vmatpush1.msra.mxu0 %v2497_v27  ;;  %v2555_v27 = vld [vmem:[%s9200_s22 + $0xe8] sm:$0xff] }
 0xb16   : > { %2631 = vmatprep.subr.mxu0 %v7821_v3  ;;  %5942 = vmatprep.subr.mxu1 %v2555_v27 }
 0xb17   : > { %2632 = vmatpush1.msra.mxu0 %v2496_v28 }
 0xb18   : > { %2633 = vmatprep.subr.mxu0 %v7821_v3 }
 0xb19   : > { %2634 = vmatpush1.msra.mxu0 %v2495_v29  ;;  %v2539_v29 = vld [vmem:[%s9200_s22 + $0x68] sm:$0xff] }
 0xb1a   : > { %2639 = vmatprep.subr.mxu0 %v7821_v3  ;;  %5943 = vmatpush3.msra.mxu1 %v2539_v29  ;;  %v2985_v29 = vld [vmem:[#allocation14 + $0xe0] sm:$0xff] }
 0xb1b   : > { %2640 = vmatpush2.msra.mxu0 %v2524_v30  ;;  %v2554_v30 = vld [vmem:[%s9200_s22 + $0xe0] sm:$0xff] }
 0xb1c   : > { %2641 = vmatprep.subr.mxu0 %v7821_v3  ;;  %5944 = vmatprep.subr.mxu1 %v2554_v30  ;;  %v2969_v30 = vld [vmem:[#allocation14 + $0x60] sm:$0xff] }
 0xb1d   : > { %2642 = vmatpush2.msra.mxu0 %v2523_v31  ;;  %v2538_v31 = vld [vmem:[%s9200_s22 + $0x60] sm:$0xff] }
 0xb1e   : > { %2643 = vmatprep.subr.mxu0 %v7821_v3  ;;  %5945 = vmatpush3.msra.mxu1 %v2538_v31  ;;  %v2984_v31 = vld [vmem:[#allocation14 + $0xd8] sm:$0xff] }
 0xb1f   : > { %2644 = vmatpush2.msra.mxu0 %v2522_v32  ;;  %v2553_v32 = vld [vmem:[%s9200_s22 + $0xd8] sm:$0xff] }
 0xb20   : > { %2645 = vmatprep.subr.mxu0 %v7821_v3  ;;  %5946 = vmatprep.subr.mxu1 %v2553_v32  ;;  %v2968_v32 = vld [vmem:[#allocation14 + $0x58] sm:$0xff] }
 0xb21   : > { %2646 = vmatpush2.msra.mxu0 %v2521_v33  ;;  %v2537_v33 = vld [vmem:[%s9200_s22 + $0x58] sm:$0xff] }
 0xb22   : > { %2647 = vmatprep.subr.mxu0 %v7821_v3  ;;  %5947 = vmatpush3.msra.mxu1 %v2537_v33  ;;  %v2983_v33 = vld [vmem:[#allocation14 + $0xd0] sm:$0xff] }
 0xb23   : > { %2648 = vmatpush2.msra.mxu0 %v2520_v34  ;;  %v2552_v34 = vld [vmem:[%s9200_s22 + $0xd0] sm:$0xff] }
 0xb24   : > { %2649 = vmatprep.subr.mxu0 %v7821_v3  ;;  %5948 = vmatprep.subr.mxu1 %v2552_v34  ;;  %v2992_v34 = vld [vmem:[#allocation14 + $0x118] sm:$0xff] }
 0xb25   : > { %2650 = vmatpush2.msra.mxu0 %v2519_v35  ;;  %v2536_v35 = vld [vmem:[%s9200_s22 + $0x50] sm:$0xff] }
 0xb26   : > { %2651 = vmatprep.subr.mxu0 %v7821_v3  ;;  %5949 = vmatpush3.msra.mxu1 %v2536_v35  ;;  %v2967_v35 = vld [vmem:[#allocation14 + $0x50] sm:$0xff] }
 0xb27   : > { %2652 = vmatpush2.msra.mxu0 %v2518_v36  ;;  %v2551_v36 = vld [vmem:[%s9200_s22 + $0xc8] sm:$0xff] }
 0xb28   : > { %2653 = vmatprep.subr.mxu0 %v7821_v3  ;;  %5950 = vmatprep.subr.mxu1 %v2551_v36  ;;  %v2991_v36 = vld [vmem:[#allocation14 + $0x110] sm:$0xff] }
 0xb29   : > { %2654 = vmatpush2.msra.mxu0 %v2517_v38  ;;  %v2535_v38 = vld [vmem:[%s9200_s22 + $0x48] sm:$0xff] }
 0xb2a   : > { %2655 = vmatprep.subr.mxu0 %v7821_v3  ;;  %5951 = vmatpush3.msra.mxu1 %v2535_v38  ;;  %v2982_v38 = vld [vmem:[#allocation14 + $0xc8] sm:$0xff] }
 0xb2b   : > { %2656 = vmatpush2.msra.mxu0 %v2516_v40  ;;  %v2550_v40 = vld [vmem:[%s9200_s22 + $0xc0] sm:$0xff] }
 0xb2c   : > { %2657 = vmatprep.subr.mxu0 %v7821_v3  ;;  %5952 = vmatprep.subr.mxu1 %v2550_v40  ;;  %v2990_v40 = vld [vmem:[#allocation14 + $0x108] sm:$0xff] }
 0xb2d   : > { %2658 = vmatpush2.msra.mxu0 %v2515_v41  ;;  %v2534_v41 = vld [vmem:[%s9200_s22 + $0x40] sm:$0xff] }
 0xb2e   : > { %2659 = vmatprep.subr.mxu0 %v7821_v3  ;;  %5953 = vmatpush3.msra.mxu1 %v2534_v41  ;;  %v2966_v41 = vld [vmem:[#allocation14 + $0x48] sm:$0xff] }
 0xb2f   : > { %2660 = vmatpush2.msra.mxu0 %v2514_v63  ;;  %v2549_v63 = vld [vmem:[%s9200_s22 + $0xb8] sm:$0xff] }
 0xb30   : > { %2661 = vmatprep.subr.mxu0 %v7821_v3  ;;  %5954 = vmatprep.subr.mxu1 %v2549_v63  ;;  %v2981_v63 = vld [vmem:[#allocation14 + $0xc0] sm:$0xff] }
 0xb31   : > { %2662 = vmatpush2.msra.mxu0 %v2513_v42  ;;  %v2533_v42 = vld [vmem:[%s9200_s22 + $0x38] sm:$0xff] }
 0xb32   : > { %2663 = vmatprep.subr.mxu0 %v7821_v3  ;;  %5955 = vmatpush3.msra.mxu1 %v2533_v42  ;;  %v2989_v42 = vld [vmem:[#allocation14 + $0x100] sm:$0xff] }
 0xb33   : > { %2664 = vmatpush2.msra.mxu0 %v2512_v43 }
 0xb34   : > { %2665 = vmatprep.subr.mxu0 %v7821_v3 }
 0xb35   : > { %2666 = vmatpush2.msra.mxu0 %v2511_v44  ;;  %v2548_v44 = vld [vmem:[%s9200_s22 + $0xb0] sm:$0xff] }
 0xb36   : > { %6581 = vmatprep.subr.mxu0 %v7821_v3  ;;  %5956 = vmatprep.subr.mxu1 %v2548_v44  ;;  %v2980_v44 = vld [vmem:[#allocation14 + $0xb8] sm:$0xff] }
 0xb7a   : > { %v2486_v45 = vpop.permute.xlu1 %2485 }
 0xb7b   : > { %v2488_v46 = vsel %vm1719_vm12, 0.0, %v2486_v45  ;;  %v2532_v45 = vld [vmem:[%s9200_s22 + $0x30] sm:$0xff] }
 0xb7c   : > { %v2489_v47 = vsel %vm1884_vm1, %v2488_v46, 0.0  ;;  %5957 = vmatpush3.msra.mxu1 %v2532_v45  ;;  %v2964_v45 = vld [vmem:[#allocation14 + $0x38] sm:$0xff] }
 0xb7d   : > { %v2491_v48 = vrot.slane %v2489_v47, 7  ;;  %v2547_v47 = vld [vmem:[%s9200_s22 + $0xa8] sm:$0xff] }
 0xb7e   : > { %5958 = vmatprep.subr.mxu1 %v2547_v47  ;;  %v2963_v47 = vld [vmem:[#allocation14 + $0x30] sm:$0xff] }
 0xb7f   : > { %v2493_v49 = vsel %vm1613_vm4, 0.0, %v2491_v48  ;;  %v2494_v50 = vsel %vm1613_vm4, %v2491_v48, 0.0  ;;  %v2531_v48 = vld [vmem:[%s9200_s22 + $0x28] sm:$0xff] }
 0xb80   : > { %v2564_v51 = vrot.slane %v2493_v49, 1  ;;  %v2566_v52 = vrot.slane %v2493_v49, 2  ;;  %v2568_v53 = vrot.slane %v2493_v49, 3  ;;  %v2573_v54 = vrot.slane %v2493_v49, 4  ;;  %5959 = vmatpush3.msra.mxu1 %v2531_v48  ;;  %v2978_v48 = vld [vmem:[#allocation14 + $0xa8] sm:$0xff] }
 0xb81   : > { %v2579_v55 = vrot.slane %v2494_v50, 5  ;;  %v2530_v50 = vld [vmem:[%s9200_s22 + $0x20] sm:$0xff] }
 0xb82   : > { %v2581_v57 = vsel %vm1613_vm4, %v2566_v52, %v2568_v53  ;;  %v2575_v58 = vsel %vm1613_vm4, %v2564_v51, %v2566_v52  ;;  %v2570_v56 = vsel %vm1613_vm4, %v2493_v49, %v2564_v51  ;;  %v2546_v49 = vld [vmem:[%s9200_s22 + $0xa0] sm:$0xff]  ;;  %v2545_v51 = vld [vmem:[%s9200_s22 + $0x98] sm:$0xff] }
 0xb83   : > { %v2582_v59 = vsel %vm1615_vm5, %v2581_v57, %v2573_v54  ;;  %v2576_v60 = vsel %vm1615_vm5, %v2575_v58, %v2568_v53  ;;  %v2571_v0 = vsel %vm1615_vm5, %v2570_v56, %v2566_v52  ;;  %5960 = vmatprep.subr.mxu1 %v2546_v49  ;;  %v2529_v52 = vld [vmem:[%s9200_s22 + $0x18] sm:$0xff]  ;;  %v2527_v57 = vld [vmem:[%s9200_s22 + $0x8] sm:$0xff]  ;;  %v2542_v58 = vld [vmem:[%s9200_s22 + $0x80] sm:$0xff] }
 0xb84   : > { %v2583_v1 = vsel %vm1530_vm3, %v2582_v59, %v2579_v55  ;;  %v2577_v2 = vsel %vm1530_vm3, %v2576_v60, %v2573_v54  ;;  %v2572_v5 = vsel %vm1530_vm3, %v2571_v0, %v2568_v53  ;;  %5961 = vmatpush3.msra.mxu1 %v2530_v50  ;;  %v2544_v53 = vld [vmem:[%s9200_s22 + $0x90] sm:$0xff]  ;;  %v2543_v55 = vld [vmem:[%s9200_s22 + $0x88] sm:$0xff]  ;;  %v2526_v56 = vld [vmem:[%s9200_s22] sm:$0xff] }
 0xb85   : > { %2589 = vrot.lane.b32.xlu1 %v2583_v1, %s7830_s23  ;;  %2585 = vrot.lane.b32.xlu0 %v2577_v2, %s7831_s26  ;;  %v2528_v54 = vld [vmem:[%s9200_s22 + $0x10] sm:$0xff]  ;;  %v2962_v49 = vld [vmem:[#allocation14 + $0x28] sm:$0xff]  ;;  %v2977_v50 = vld [vmem:[#allocation14 + $0xa0] sm:$0xff]  ;;  %s9204_s26 = sld [smem:[#allocation58_spill]] }
 0xb86   : > { %5962 = vmatprep.subr.mxu1 %v2545_v51  ;;  %v2961_v51 = vld [vmem:[#allocation14 + $0x20] sm:$0xff] }
 0xb87   : > { %5963 = vmatpush3.msra.mxu1 %v2529_v52  ;;  %v2976_v52 = vld [vmem:[#allocation14 + $0x98] sm:$0xff] }
 0xb88   : > { %5964 = vmatprep.subr.mxu1 %v2544_v53  ;;  %v2960_v53 = vld [vmem:[#allocation14 + $0x18] sm:$0xff] }
 0xb89   : > { %5965 = vmatpush3.msra.mxu1 %v2528_v54  ;;  %v2975_v54 = vld [vmem:[#allocation14 + $0x90] sm:$0xff] }
 0xb8a   : > { %5966 = vmatprep.subr.mxu1 %v2543_v55  ;;  %v2959_v55 = vld [vmem:[#allocation14 + $0x10] sm:$0xff] }
 0xb8b   : > { %5967 = vmatpush3.msra.mxu1 %v2527_v57  ;;  %v2974_v57 = vld [vmem:[#allocation14 + $0x88] sm:$0xff] }
 0xb8c   : > { %5968 = vmatprep.subr.mxu1 %v2542_v58  ;;  %v2958_v58 = vld [vmem:[#allocation14 + $0x8] sm:$0xff] }
 0xb8d   : > { %5969 = vmatpush3.msra.mxu1 %v2526_v56  ;;  %v2973_v56 = vld [vmem:[#allocation14 + $0x80] sm:$0xff] }
 0xb8e   : > { %6570 = vmatprep.subr.mxu1 %v7821_v3 }
 0xbf7   : > { %v2590_v6 = vpop.permute.xlu1 %2589  ;;  %v2586_v7 = vpop.permute.xlu0 %2585 }
 0xbf8   : > { %v2592_v8 = vsel %vm2014_vm2, %v2572_v5, %v2586_v7  ;;  %v2593_v9 = vsel %vm2016_vm6, %v2586_v7, %v2590_v6 }
 0xbf9   : > { %5872 = vmatprep.mubr.msk.f32.mxu0 %vm2024_vm9, %v2593_v9 }
 0xbfa   : > { %2668 = vmatmul.mubr.f32.vlgmr.msra.gmra.mxu0 %v2592_v8 }
 0xbfb   : > { %6582 = vmatpush3.msra.mxu0 %v2854_v61  ;;  %6597 = vmatprep.mubr.msk.f32.mxu0 %vm7832_vm0, %v7821_v3 }
 0xbfc   : > { %6583 = vmatprep.subr.mxu0 %v7821_v3 }
 0xbfd   : > { %6584 = vmatpush3.msra.mxu0 %v2853_v4 }
 0xbfe   : > { %6585 = vmatprep.subr.mxu0 %v7821_v3 }
 0xbff   : > { %6586 = vmatpush3.msra.mxu0 %v2852_v10  ;;  %v2561_v10 = vld [vmem:[%s9200_s22 + $0x118] sm:$0xff] }
 0xc00   : > { %6587 = vmatprep.subr.mxu0 %v7821_v3 }
 0xc01   : > { %6588 = vmatpush3.msra.mxu0 %v2851_v62  ;;  %v2560_v62 = vld [vmem:[%s9200_s22 + $0x110] sm:$0xff] }
 0xc02   : > { %6589 = vmatprep.subr.mxu0 %v7821_v3 }
 0xc03   : > { %6590 = vmatpush3.msra.mxu0 %v2850_v12  ;;  %v2558_v12 = vld [vmem:[%s9200_s22 + $0x100] sm:$0xff] }
 0xc04   : > { %6591 = vmatprep.subr.mxu0 %v7821_v3 }
 0xc05   : > { %6592 = vmatpush3.msra.mxu0 %v2849_v13 }
 0xc06   : > { %6593 = vmatprep.subr.mxu0 %v7821_v3 }
 0xc07   : > { %6594 = vmatpush3.msra.mxu0 %v2848_v17 }
 0xc08   : > { %6595 = vmatprep.subr.mxu0 %v7821_v3 }
 0xc09   : > { %6596 = vmatpush3.msra.mxu0 %v2847_v15 }
 0xc0a   : > { %6598 = vmatmul.mubr.msk.f32.vlgmr.msra.gmra.mxu0 %vm2697_vm8, %v2864_v39  ;;  %6600 = vmatprep.subr.mxu0 %v7821_v3 }
 0xc0b   : > { %6608 = vmatprep.mubr.msk.f32.mxu0 %vm7832_vm0, %v7821_v3  ;;  %6601 = vmatpush3.msra.mxu0 %v2992_v34  ;;  %v3027_v34 = vld [vmem:[#allocation16 + $0x108] sm:$0xff] }
 0xc0c   : > { %6602 = vmatprep.subr.mxu0 %v7821_v3 }
 0xc0d   : > { %6603 = vmatpush3.msra.mxu0 %v2991_v36  ;;  %v3018_v36 = vld [vmem:[#allocation16 + $0xc0] sm:$0xff] }
 0xc0e   : > { %6604 = vmatprep.subr.mxu0 %v7821_v3 }
 0xc0f   : > { %6605 = vmatpush3.msra.mxu0 %v2990_v40  ;;  %v3002_v40 = vld [vmem:[#allocation16 + $0x40] sm:$0xff] }
 0xc10   : > { %6606 = vmatprep.subr.mxu0 %v7821_v3 }
 0xc11   : > { %6607 = vmatpush3.msra.mxu0 %v2989_v42  ;;  %v3016_v42 = vld [vmem:[#allocation16 + $0xb0] sm:$0xff] }
 0xcba   : > { %v2669_v21 = vpop.f32.mrf.mxu0 }
 0xcbb   : > { %v2670_v24 = vadd.f32 %v5871_v20, %v2669_v21 }
 0xcbc   : > { %v2671_v26 = vpop.f32.mrf.mxu0 }
 0xcbd   : > { %v2673_v28 = vmax.f32 %v2670_v24, 0.0  ;;  %v2986_v26 = vld [vmem:[#allocation14 + $0xe8] sm:$0xff] }
 0xcbf   : > { %2675 = vrot.lane.b32.xlu0 %v2673_v28, %s7833_s3  ;;  %v2970_v28 = vld [vmem:[#allocation14 + $0x68] sm:$0xff] }
 0xcca   : > { %v8763_v43 = vpop.f32.mrf.mxu0 }
 0xccb   : > { %v2941_v39 = vadd.f32 %v5875_v19, %v8763_v43  ;;  %v2965_v43 = vld [vmem:[#allocation14 + $0x40] sm:$0xff]  ;;  %v3009_v19 = vld [vmem:[#allocation16 + $0x78] sm:$0xff] }
 0xccc   : > { %v6599_v46 = vpop.f32.mrf.mxu0 }
 0xccd   : > { %v2979_v46 = vld [vmem:[#allocation14 + $0xb0] sm:$0xff] }
 0xd31   : > { %v2676_v59 = vpop.permute.xlu0 %2675 }
 0xd32   : > { %v2679_v60 = vsel %vm2678_vm10, 0.0, %v2676_v59  ;;  %v2957_v59 = vld [vmem:[#allocation14] sm:$0xff] }
 0xd33   : > { %v2680_v0 = vsel %vm2014_vm2, %v2679_v60, 0.0 }
 0xd34   : > { %v2682_v1 = vrot.slane %v2680_v0, 7 }
 0xd36   : > { %v2684_v2 = vsel %vm1613_vm4, 0.0, %v2682_v1 }
 0xd37   : > { %v2685_v5 = vsel %vm1620_vm7, %v2684_v2, 0.0 }
 0xd38   : > { %v2691_v6 = vrot.slane %v2685_v5, 2  ;;  %v2687_v7 = vrot.slane %v2685_v5, 1 }
 0xd3a   : > { %2692 = vrot.lane.b32.xlu0 %v2691_v6, %s7834_s1  ;;  %2688 = vrot.lane.b32.xlu1 %v2687_v7, %s7835_s16 }
 0xdac   : > { %v2693_v8 = vpop.permute.xlu0 %2692  ;;  %v2689_v9 = vpop.permute.xlu1 %2688 }
 0xdad   : > { %v2696_v61 = vsel %vm2695_vm11, %v2685_v5, %v2689_v9  ;;  %v2698_v4 = vsel %vm2697_vm8, %v2689_v9, %v2693_v8 }
 0xdae   : > { %2771 = vmatprep.mubr.f32.mxu1 %v2698_v4 }
 0xdaf   : > { %2772 = vmatmul.mubr.f32.vlgmr.msra.gmra.mxu1 %v2696_v61 }
 0xdb0   : > { %6571 = vmatpush3.msra.mxu1 %v2561_v10  ;;  %6578 = vmatprep.mubr.msk.f32.mxu1 %vm7832_vm0, %v7821_v3 }
 0xdb1   : > { %6572 = vmatprep.subr.mxu1 %v7821_v3 }
 0xdb2   : > { %6573 = vmatpush3.msra.mxu1 %v2560_v62 }
 0xdb3   : > { %6574 = vmatprep.subr.mxu1 %v7821_v3 }
 0xdb4   : > { %6575 = vmatpush3.msra.mxu1 %v2559_v11 }
 0xdb5   : > { %6576 = vmatprep.subr.mxu1 %v7821_v3 }
 0xdb6   : > { %6577 = vmatpush3.msra.mxu1 %v2558_v12 }
 0xdb7   : > { %6579 = vmatmul.mubr.msk.f32.vlgmr.msra.gmra.mxu1 %vm2016_vm6, %v2693_v8  ;;  %5987 = vmatprep.subr.mxu1 %v2988_v22 }
 0xdb8   : > { %5988 = vmatpush3.msra.mxu1 %v2972_v23  ;;  %v3007_v23 = vld [vmem:[#allocation16 + $0x68] sm:$0xff] }
 0xdb9   : > { %5989 = vmatprep.subr.mxu1 %v2987_v18  ;;  %v3022_v18 = vld [vmem:[#allocation16 + $0xe0] sm:$0xff] }
 0xdba   : > { %5990 = vmatpush3.msra.mxu1 %v2971_v25  ;;  %v3006_v25 = vld [vmem:[#allocation16 + $0x60] sm:$0xff] }
 0xdbb   : > { %5991 = vmatprep.subr.mxu1 %v2986_v26  ;;  %v3021_v26 = vld [vmem:[#allocation16 + $0xd8] sm:$0xff] }
 0xdbc   : > { %5992 = vmatpush3.msra.mxu1 %v2970_v28  ;;  %v3005_v28 = vld [vmem:[#allocation16 + $0x58] sm:$0xff] }
 0xdbd   : > { %5993 = vmatprep.subr.mxu1 %v2985_v29  ;;  %v3020_v29 = vld [vmem:[#allocation16 + $0xd0] sm:$0xff] }
 0xdbe   : > { %5994 = vmatpush3.msra.mxu1 %v2969_v30  ;;  %v3029_v30 = vld [vmem:[#allocation16 + $0x118] sm:$0xff] }
 0xdbf   : > { %5995 = vmatprep.subr.mxu1 %v2984_v31  ;;  %v3004_v31 = vld [vmem:[#allocation16 + $0x50] sm:$0xff] }
 0xdc0   : > { %5996 = vmatpush3.msra.mxu1 %v2968_v32  ;;  %v3028_v32 = vld [vmem:[#allocation16 + $0x110] sm:$0xff] }
 0xdc1   : > { %5997 = vmatprep.subr.mxu1 %v2983_v33  ;;  %v3019_v33 = vld [vmem:[#allocation16 + $0xc8] sm:$0xff] }
 0xdc2   : > { %5998 = vmatpush3.msra.mxu1 %v2967_v35  ;;  %v3003_v35 = vld [vmem:[#allocation16 + $0x48] sm:$0xff] }
 0xdc3   : > { %5999 = vmatprep.subr.mxu1 %v2982_v38  ;;  %v3026_v38 = vld [vmem:[#allocation16 + $0x100] sm:$0xff] }
 0xdc4   : > { %6000 = vmatpush3.msra.mxu1 %v2966_v41  ;;  %v3017_v41 = vld [vmem:[#allocation16 + $0xb8] sm:$0xff] }
 0xdc5   : > { %6001 = vmatprep.subr.mxu1 %v2981_v63  ;;  %v3001_v63 = vld [vmem:[#allocation16 + $0x38] sm:$0xff] }
 0xdc6   : > { %6002 = vmatpush3.msra.mxu1 %v2965_v43  ;;  %v3000_v43 = vld [vmem:[#allocation16 + $0x30] sm:$0xff] }
 0xdc7   : > { %6003 = vmatprep.subr.mxu1 %v2980_v44  ;;  %v3015_v44 = vld [vmem:[#allocation16 + $0xa8] sm:$0xff] }
 0xdc8   : > { %6004 = vmatpush3.msra.mxu1 %v2964_v45  ;;  %v2999_v45 = vld [vmem:[#allocation16 + $0x28] sm:$0xff] }
 0xdc9   : > { %6005 = vmatprep.subr.mxu1 %v2979_v46  ;;  %v3014_v46 = vld [vmem:[#allocation16 + $0xa0] sm:$0xff] }
 0xdca   : > { %6006 = vmatpush3.msra.mxu1 %v2963_v47  ;;  %v2998_v47 = vld [vmem:[#allocation16 + $0x20] sm:$0xff] }
 0xdcb   : > { %6007 = vmatprep.subr.mxu1 %v2978_v48  ;;  %v3013_v48 = vld [vmem:[#allocation16 + $0x98] sm:$0xff] }
 0xdcc   : > { %6008 = vmatpush3.msra.mxu1 %v2962_v49  ;;  %v2997_v49 = vld [vmem:[#allocation16 + $0x18] sm:$0xff] }
 0xdcd   : > { %6009 = vmatprep.subr.mxu1 %v2977_v50  ;;  %v3012_v50 = vld [vmem:[#allocation16 + $0x90] sm:$0xff] }
 0xdce   : > { %6010 = vmatpush3.msra.mxu1 %v2961_v51  ;;  %v2996_v51 = vld [vmem:[#allocation16 + $0x10] sm:$0xff] }
 0xdcf   : > { %6011 = vmatprep.subr.mxu1 %v2976_v52  ;;  %v3011_v52 = vld [vmem:[#allocation16 + $0x88] sm:$0xff] }
 0xdd0   : > { %6012 = vmatpush3.msra.mxu1 %v2960_v53  ;;  %v2995_v53 = vld [vmem:[#allocation16 + $0x8] sm:$0xff] }
 0xdd1   : > { %6013 = vmatprep.subr.mxu1 %v2975_v54  ;;  %v3010_v54 = vld [vmem:[#allocation16 + $0x80] sm:$0xff] }
 0xdd2   : > { %6014 = vmatpush3.msra.mxu1 %v2959_v55  ;;  %v2994_v55 = vld [vmem:[#allocation16] sm:$0xff] }
 0xdd3   : > { %6015 = vmatprep.subr.mxu1 %v2974_v57 }
 0xdd4   : > { %6016 = vmatpush3.msra.mxu1 %v2958_v58 }
 0xdd5   : > { %6017 = vmatprep.subr.mxu1 %v2973_v56 }
 0xdd6   : > { %6018 = vmatpush3.msra.mxu1 %v2957_v59 }
 0xdd7   : > { %6611 = vmatprep.subr.mxu1 %v7821_v3 }
 0xe6f   : > { %v5970_v13 = vpop.f32.mrf.mxu1 }
 0xe71   : > { %v5971_v14 = vpop.f32.mrf.mxu1 }
 0xe72   : > { %v5972_v17 = vadd.f32 %v5971_v14, %v5970_v13  ;;  %v5877_v13 = vld [vmem:[%s9203_s2] ss:$0 sm:$0xff] }
 0xe74   : > { %v2774_v15 = vadd.f32 %v5972_v17, %v5873_v16 }
 0xe77   : > { %v2843_v37 = vpop.f32.mrf.mxu1 }
 0xe78   : > { %v2844_v20 = vadd.f32 %v2843_v37, %v2774_v15  ;;  %v3025_v15 = vld [vmem:[#allocation16 + $0xf8] sm:$0xff]  ;;  %v3024_v37 = vld [vmem:[#allocation16 + $0xf0] sm:$0xff] }
 0xe79   : > { %v6580_v21 = vpop.f32.mrf.mxu1  ;;  %6027 = vmatprep.subr.mxu0 %v3025_v15  ;;  %v3404_v15 = vld [vmem:[#allocation17 + $0xf0] sm:$0xff] }
 0xe7a   : > { %v8801_v24 = vadd.f32 %v2941_v39, %v2844_v20  ;;  %v3008_v20 = vld [vmem:[#allocation16 + $0x70] sm:$0xff]  ;;  %v3023_v21 = vld [vmem:[#allocation16 + $0xe8] sm:$0xff] }
 0xe7c   : > { %v2945_v27 = vmax.f32 %v8801_v24, 0.0  ;;  %v3401_v24 = vld [vmem:[#allocation17 + $0xd8] sm:$0xff] }
 0xe7e   : > { %2947 = vrot.lane.b32.xlu1 %v2945_v27, %s7833_s3 }
 0xef0   : > { %v2948_v60 = vpop.permute.xlu1 %2947 }
 0xef1   : > { %v2950_v0 = vsel %vm2678_vm10, 0.0, %v2948_v60 }
 0xef2   : > { %v2951_v1 = vsel %vm2014_vm2, %v2950_v0, 0.0 }
 0xef3   : > { %v2953_v2 = vrot.slane %v2951_v1, 7 }
 0xef5   : > { %v2955_v5 = vsel %vm1613_vm4, 0.0, %v2953_v2 }
 0xef6   : > { %v2956_v6 = vsel %vm1620_vm7, %v2955_v5, 0.0 }
 0xef7   : > { %v3036_v7 = vrot.slane %v2956_v6, 2  ;;  %v3032_v8 = vrot.slane %v2956_v6, 1 }
 0xef9   : > { %3037 = vrot.lane.b32.xlu1 %v3036_v7, %s7834_s1  ;;  %3033 = vrot.lane.b32.xlu0 %v3032_v8, %s7835_s16 }
 0xf6b   : > { %v3038_v9 = vpop.permute.xlu1 %3037  ;;  %v3034_v61 = vpop.permute.xlu0 %3033 }
 0xf6c   : > { %v3040_v4 = vsel %vm2695_vm11, %v2956_v6, %v3034_v61  ;;  %6609 = vmatmul.mubr.msk.f32.vlgmr.msra.gmra.mxu0 %vm2016_vm6, %v3038_v9  ;;  %v3041_v10 = vsel %vm2697_vm8, %v3034_v61, %v3038_v9 }
 0xf6d   : > { %3114 = vmatprep.mubr.f32.mxu1 %v3041_v10  ;;  %6028 = vmatpush3.msra.mxu0 %v3009_v19  ;;  %v5879_v10 = vld [vmem:[%s9204_s26] ss:$0 sm:$0xff]  ;;  %v3388_v19 = vld [vmem:[#allocation17 + $0x70] sm:$0xff] }
 0xf6e   : > { %3115 = vmatmul.mubr.f32.vlgmr.msra.gmra.mxu1 %v3040_v4  ;;  %6029 = vmatprep.subr.mxu0 %v3024_v37 }
 0xf6f   : > { %6619 = vmatprep.mubr.msk.f32.mxu1 %vm7832_vm0, %v7821_v3  ;;  %6030 = vmatpush3.msra.mxu0 %v3008_v20  ;;  %v3387_v20 = vld [vmem:[#allocation17 + $0x68] sm:$0xff] }
 0xf70   : > { %6031 = vmatprep.subr.mxu0 %v3023_v21  ;;  %6612 = vmatpush3.msra.mxu1 %v3029_v30  ;;  %v3402_v21 = vld [vmem:[#allocation17 + $0xe0] sm:$0xff]  ;;  %v3383_v30 = vld [vmem:[#allocation17 + $0x48] sm:$0xff] }
 0xf71   : > { %6032 = vmatpush3.msra.mxu0 %v3007_v23  ;;  %6613 = vmatprep.subr.mxu1 %v7821_v3  ;;  %v3400_v23 = vld [vmem:[#allocation17 + $0xd0] sm:$0xff] }
 0xf72   : > { %6033 = vmatprep.subr.mxu0 %v3022_v18  ;;  %6614 = vmatpush3.msra.mxu1 %v3028_v32  ;;  %v3409_v18 = vld [vmem:[#allocation17 + $0x118] sm:$0xff]  ;;  %v3406_v32 = vld [vmem:[#allocation17 + $0x100] sm:$0xff] }
 0xf73   : > { %6034 = vmatpush3.msra.mxu0 %v3006_v25  ;;  %6615 = vmatprep.subr.mxu1 %v7821_v3  ;;  %v3384_v25 = vld [vmem:[#allocation17 + $0x50] sm:$0xff] }
 0xf74   : > { %6035 = vmatprep.subr.mxu0 %v3021_v26  ;;  %6616 = vmatpush3.msra.mxu1 %v3027_v34  ;;  %v3408_v26 = vld [vmem:[#allocation17 + $0x110] sm:$0xff]  ;;  %v3397_v34 = vld [vmem:[#allocation17 + $0xb8] sm:$0xff] }
 0xf75   : > { %6036 = vmatpush3.msra.mxu0 %v3005_v28  ;;  %6617 = vmatprep.subr.mxu1 %v7821_v3  ;;  %v3399_v28 = vld [vmem:[#allocation17 + $0xc8] sm:$0xff] }
 0xf76   : > { %6037 = vmatprep.subr.mxu0 %v3020_v29  ;;  %6618 = vmatpush3.msra.mxu1 %v3026_v38  ;;  %v3407_v29 = vld [vmem:[#allocation17 + $0x108] sm:$0xff]  ;;  %v3380_v38 = vld [vmem:[#allocation17 + $0x30] sm:$0xff] }
 0xf77   : > { %6038 = vmatpush3.msra.mxu0 %v3004_v31  ;;  %v3398_v31 = vld [vmem:[#allocation17 + $0xc0] sm:$0xff] }
 0xf78   : > { %6039 = vmatprep.subr.mxu0 %v3019_v33  ;;  %v3382_v33 = vld [vmem:[#allocation17 + $0x40] sm:$0xff] }
 0xf79   : > { %6040 = vmatpush3.msra.mxu0 %v3003_v35  ;;  %v3381_v35 = vld [vmem:[#allocation17 + $0x38] sm:$0xff] }
 0xf7a   : > { %6041 = vmatprep.subr.mxu0 %v3018_v36  ;;  %v3396_v36 = vld [vmem:[#allocation17 + $0xb0] sm:$0xff] }
 0xf7b   : > { %6042 = vmatpush3.msra.mxu0 %v3002_v40  ;;  %v3395_v40 = vld [vmem:[#allocation17 + $0xa8] sm:$0xff] }
 0xf7c   : > { %6043 = vmatprep.subr.mxu0 %v3017_v41  ;;  %v3379_v41 = vld [vmem:[#allocation17 + $0x28] sm:$0xff] }
 0xf7d   : > { %6044 = vmatpush3.msra.mxu0 %v3001_v63  ;;  %v3394_v63 = vld [vmem:[#allocation17 + $0xa0] sm:$0xff] }
 0xf7e   : > { %6045 = vmatprep.subr.mxu0 %v3016_v42  ;;  %v3378_v42 = vld [vmem:[#allocation17 + $0x20] sm:$0xff] }
 0xf7f   : > { %6046 = vmatpush3.msra.mxu0 %v3000_v43  ;;  %v3393_v43 = vld [vmem:[#allocation17 + $0x98] sm:$0xff] }
 0xf80   : > { %6047 = vmatprep.subr.mxu0 %v3015_v44  ;;  %v3377_v44 = vld [vmem:[#allocation17 + $0x18] sm:$0xff] }
 0xf81   : > { %6048 = vmatpush3.msra.mxu0 %v2999_v45  ;;  %v3392_v45 = vld [vmem:[#allocation17 + $0x90] sm:$0xff] }
 0xf82   : > { %6049 = vmatprep.subr.mxu0 %v3014_v46  ;;  %v3376_v46 = vld [vmem:[#allocation17 + $0x10] sm:$0xff] }
 0xf83   : > { %6050 = vmatpush3.msra.mxu0 %v2998_v47  ;;  %v3391_v47 = vld [vmem:[#allocation17 + $0x88] sm:$0xff] }
 0xf84   : > { %6051 = vmatprep.subr.mxu0 %v3013_v48  ;;  %v3375_v48 = vld [vmem:[#allocation17 + $0x8] sm:$0xff] }
 0xf85   : > { %6052 = vmatpush3.msra.mxu0 %v2997_v49  ;;  %v3390_v49 = vld [vmem:[#allocation17 + $0x80] sm:$0xff] }
 0xf86   : > { %6053 = vmatprep.subr.mxu0 %v3012_v50  ;;  %v3374_v50 = vld [vmem:[#allocation17] sm:$0xff] }
 0xf87   : > { %6054 = vmatpush3.msra.mxu0 %v2996_v51 }
 0xf88   : > { %6055 = vmatprep.subr.mxu0 %v3011_v52 }
 0xf89   : > { %6056 = vmatpush3.msra.mxu0 %v2995_v53 }
 0xf8a   : > { %6057 = vmatprep.subr.mxu0 %v3010_v54 }
 0xf8b   : > { %6058 = vmatpush3.msra.mxu0 %v2994_v55 }
 0xf8c   : > { %6622 = vmatprep.subr.mxu0 %v7821_v3 }
0x102c   : > { %v3186_v62 = vpop.f32.mrf.mxu0 }
0x102e   : > { %v6019_v11 = vpop.f32.mrf.mxu1  ;;  %v6610_v12 = vpop.f32.mrf.mxu0 }
0x1030   : > { %v6020_v14 = vpop.f32.mrf.mxu1 }
0x1031   : > { %v6021_v16 = vadd.f32 %v6020_v14, %v6019_v11 }
0x1033   : > { %v3117_v17 = vadd.f32 %v6021_v16, %v5877_v13  ;;  %v3405_v16 = vld [vmem:[#allocation17 + $0xf8] sm:$0xff] }
0x1034   : > { %6067 = vmatprep.subr.mxu1 %v3405_v16  ;;  %v3455_v16 = vld [vmem:[#allocation19 + $0x160] sm:$0xff] }
0x1035   : > { %v3187_v39 = vadd.f32 %v3186_v62, %v3117_v17  ;;  %v3389_v17 = vld [vmem:[#allocation17 + $0x78] sm:$0xff] }
0x1037   : > { %v3190_v22 = vmax.f32 %v3187_v39, 0.0  ;;  %v3403_v39 = vld [vmem:[#allocation17 + $0xe8] sm:$0xff] }
0x1039   : > { %3192 = vrot.lane.b32.xlu0 %v3190_v22, %s7833_s3  ;;  %v3386_v22 = vld [vmem:[#allocation17 + $0x60] sm:$0xff] }
0x10ab   : > { %v3193_v57 = vpop.permute.xlu0 %3192 }
0x10ac   : > { %v3195_v58 = vsel %vm2678_vm10, 0.0, %v3193_v57 }
0x10ad   : > { %v3196_v56 = vsel %vm2014_vm2, %v3195_v58, 0.0 }
0x10ae   : > { %v3198_v59 = vrot.slane %v3196_v56, 7 }
0x10b0   : > { %v3200_v60 = vsel %vm1613_vm4, 0.0, %v3198_v59 }
0x10b1   : > { %v3201_v0 = vsel %vm1620_vm7, %v3200_v60, 0.0 }
0x10b2   : > { %v3207_v1 = vrot.slane %v3201_v0, 2  ;;  %v3203_v2 = vrot.slane %v3201_v0, 1 }
0x10b4   : > { %3208 = vrot.lane.b32.xlu0 %v3207_v1, %s7834_s1  ;;  %3204 = vrot.lane.b32.xlu1 %v3203_v2, %s7835_s16 }
0x1126   : > { %v3209_v5 = vpop.permute.xlu0 %3208  ;;  %v3205_v6 = vpop.permute.xlu1 %3204 }
0x1127   : > { %v3211_v7 = vsel %vm2695_vm11, %v3201_v0, %v3205_v6  ;;  %6620 = vmatmul.mubr.msk.f32.vlgmr.msra.gmra.mxu1 %vm2016_vm6, %v3209_v5  ;;  %v3212_v8 = vsel %vm2697_vm8, %v3205_v6, %v3209_v5 }
0x1128   : > { %3285 = vmatprep.mubr.f32.mxu0 %v3212_v8  ;;  %6068 = vmatpush3.msra.mxu1 %v3389_v17  ;;  %v3442_v8 = vld [vmem:[#allocation19 + $0xf8] sm:$0xff]  ;;  %v3423_v17 = vld [vmem:[#allocation19 + $0x60] sm:$0xff] }
0x1129   : > { %3286 = vmatmul.mubr.f32.vlgmr.msra.gmra.mxu0 %v3211_v7  ;;  %6069 = vmatprep.subr.mxu1 %v3404_v15  ;;  %v3438_v15 = vld [vmem:[#allocation19 + $0xd8] sm:$0xff] }
0x112a   : > { %6630 = vmatprep.mubr.msk.f32.mxu0 %vm7832_vm0, %v7821_v3  ;;  %6070 = vmatpush3.msra.mxu1 %v3388_v19  ;;  %v3454_v19 = vld [vmem:[#allocation19 + $0x158] sm:$0xff] }
0x112b   : > { %6071 = vmatprep.subr.mxu1 %v3403_v39  ;;  %6623 = vmatpush3.msra.mxu0 %v3409_v18  ;;  %v3422_v39 = vld [vmem:[#allocation19 + $0x58] sm:$0xff]  ;;  %v3435_v18 = vld [vmem:[#allocation19 + $0xc0] sm:$0xff] }
0x112c   : > { %6072 = vmatpush3.msra.mxu1 %v3387_v20  ;;  %6624 = vmatprep.subr.mxu0 %v7821_v3  ;;  %v3437_v20 = vld [vmem:[#allocation19 + $0xd0] sm:$0xff] }
0x112d   : > { %6073 = vmatprep.subr.mxu1 %v3402_v21  ;;  %6625 = vmatpush3.msra.mxu0 %v3408_v26  ;;  %v3453_v21 = vld [vmem:[#allocation19 + $0x150] sm:$0xff]  ;;  %v3419_v26 = vld [vmem:[#allocation19 + $0x40] sm:$0xff] }
0x112e   : > { %6074 = vmatpush3.msra.mxu1 %v3386_v22  ;;  %6626 = vmatprep.subr.mxu0 %v7821_v3  ;;  %v3421_v22 = vld [vmem:[#allocation19 + $0x50] sm:$0xff] }
0x112f   : > { %6075 = vmatprep.subr.mxu1 %v3401_v24  ;;  %6627 = vmatpush3.msra.mxu0 %v3407_v29  ;;  %v3436_v24 = vld [vmem:[#allocation19 + $0xc8] sm:$0xff]  ;;  %v3450_v29 = vld [vmem:[#allocation19 + $0x138] sm:$0xff] }
0x1130   : > { %6628 = vmatprep.subr.mxu0 %v7821_v3 }
0x1131   : > { %6629 = vmatpush3.msra.mxu0 %v3406_v32  ;;  %v3449_v32 = vld [vmem:[#allocation19 + $0x130] sm:$0xff] }
0x1132   : > { %6107 = vmatprep.subr.mxu0 %v3442_v8 }
0x11e7   : > { %v3357_v9 = vpop.f32.mrf.mxu1 }
0x11e9   : > { %v6059_v61 = vpop.f32.mrf.mxu0  ;;  %v6621_v4 = vpop.f32.mrf.mxu1 }
0x11ea   : > { %v3441_v4 = vld [vmem:[#allocation19 + $0xf0] sm:$0xff] }
0x11eb   : > { %v6060_v62 = vpop.f32.mrf.mxu0 }
0x11ec   : > { %v6061_v11 = vadd.f32 %v6060_v62, %v6059_v61  ;;  %v3458_v61 = vld [vmem:[#allocation19 + $0x178] sm:$0xff]  ;;  %v3457_v62 = vld [vmem:[#allocation19 + $0x170] sm:$0xff] }
0x11ee   : > { %v3288_v12 = vadd.f32 %v6061_v11, %v5879_v10  ;;  %v3425_v10 = vld [vmem:[#allocation19 + $0x70] sm:$0xff]  ;;  %v3440_v11 = vld [vmem:[#allocation19 + $0xe8] sm:$0xff] }
0x11f0   : > { %v3358_v13 = vadd.f32 %v3357_v9, %v3288_v12  ;;  %v3426_v9 = vld [vmem:[#allocation19 + $0x78] sm:$0xff]  ;;  %v3456_v12 = vld [vmem:[#allocation19 + $0x168] sm:$0xff] }
0x11f2   : > { %v3361_v14 = vadd.f32 %v3358_v13, %v2945_v27  ;;  %v3385_v27 = vld [vmem:[#allocation17 + $0x58] sm:$0xff]  ;;  %v3424_v13 = vld [vmem:[#allocation19 + $0x68] sm:$0xff] }
0x11f3   : > { %6076 = vmatpush3.msra.mxu1 %v3385_v27  ;;  %v3452_v27 = vld [vmem:[#allocation19 + $0x148] sm:$0xff] }
0x11f4   : > { %v8842_v37 = vmax.f32 %v3361_v14, 0.0  ;;  %6077 = vmatprep.subr.mxu1 %v3400_v23  ;;  %v3439_v14 = vld [vmem:[#allocation19 + $0xe0] sm:$0xff]  ;;  %v3420_v23 = vld [vmem:[#allocation19 + $0x48] sm:$0xff] }
0x11f5   : > { %6078 = vmatpush3.msra.mxu1 %v3384_v25  ;;  %v3451_v25 = vld [vmem:[#allocation19 + $0x140] sm:$0xff] }
0x11f6   : > { %3364 = vrot.lane.b32.xlu1 %v8842_v37, %s7833_s3  ;;  %6079 = vmatprep.subr.mxu1 %v3399_v28  ;;  %v3434_v28 = vld [vmem:[#allocation19 + $0xb8] sm:$0xff]  ;;  %s9209_s3 = sld [smem:[#allocation65_spill]] }
0x11f7   : > { %6080 = vmatpush3.msra.mxu1 %v3383_v30  ;;  %v3418_v30 = vld [vmem:[#allocation19 + $0x38] sm:$0xff] }
0x11f8   : > { %6081 = vmatprep.subr.mxu1 %v3398_v31  ;;  %v3433_v31 = vld [vmem:[#allocation19 + $0xb0] sm:$0xff] }
0x11f9   : > { %6082 = vmatpush3.msra.mxu1 %v3382_v33  ;;  %v3417_v33 = vld [vmem:[#allocation19 + $0x30] sm:$0xff] }
0x11fa   : > { %6083 = vmatprep.subr.mxu1 %v3397_v34  ;;  %v3432_v34 = vld [vmem:[#allocation19 + $0xa8] sm:$0xff] }
0x11fb   : > { %6084 = vmatpush3.msra.mxu1 %v3381_v35  ;;  %v3448_v35 = vld [vmem:[#allocation19 + $0x128] sm:$0xff] }
0x11fc   : > { %6085 = vmatprep.subr.mxu1 %v3396_v36  ;;  %v3416_v36 = vld [vmem:[#allocation19 + $0x28] sm:$0xff] }
0x11fd   : > { %6086 = vmatpush3.msra.mxu1 %v3380_v38  ;;  %v3431_v38 = vld [vmem:[#allocation19 + $0xa0] sm:$0xff] }
0x11fe   : > { %6087 = vmatprep.subr.mxu1 %v3395_v40  ;;  %v3447_v40 = vld [vmem:[#allocation19 + $0x120] sm:$0xff] }
0x11ff   : > { %6088 = vmatpush3.msra.mxu1 %v3379_v41  ;;  %v3415_v41 = vld [vmem:[#allocation19 + $0x20] sm:$0xff] }
0x1200   : > { %6089 = vmatprep.subr.mxu1 %v3394_v63 }
0x1201   : > { %6090 = vmatpush3.msra.mxu1 %v3378_v42 }
0x1202   : > { %6091 = vmatprep.subr.mxu1 %v3393_v43 }
0x1203   : > { %6092 = vmatpush3.msra.mxu1 %v3377_v44  ;;  %v5881_v44 = vld [vmem:[%s9205_s18] ss:$0 sm:$0xff]  ;;  %s5535_s18 = scalar_lea.hbm %s8050_s19, %s5899_s7 }
0x1204   : > { %6093 = vmatprep.subr.mxu1 %v3392_v45 }
0x1205   : > { %6094 = vmatpush3.msra.mxu1 %v3376_v46 }
0x1206   : > { %6095 = vmatprep.subr.mxu1 %v3391_v47  ;;  %v3430_v47 = vld [vmem:[#allocation19 + $0x98] sm:$0xff] }
0x1207   : > { %6096 = vmatpush3.msra.mxu1 %v3375_v48  ;;  %v3414_v48 = vld [vmem:[#allocation19 + $0x18] sm:$0xff] }
0x1208   : > { %6097 = vmatprep.subr.mxu1 %v3390_v49  ;;  %v3446_v49 = vld [vmem:[#allocation19 + $0x118] sm:$0xff] }
0x1209   : > { %6098 = vmatpush3.msra.mxu1 %v3374_v50 }
0x120a   : > { %6633 = vmatprep.subr.mxu1 %v7821_v3 }
0x1268   : > { %v3365_v51 = vpop.permute.xlu1 %3364 }
0x1269   : > { %v3367_v52 = vsel %vm2678_vm10, 0.0, %v3365_v51  ;;  %v3429_v51 = vld [vmem:[#allocation19 + $0x90] sm:$0xff] }
0x126a   : > { %v3368_v53 = vsel %vm2014_vm2, %v3367_v52, 0.0  ;;  %v3413_v52 = vld [vmem:[#allocation19 + $0x10] sm:$0xff] }
0x126b   : > { %v3370_v54 = vrot.slane %v3368_v53, 7  ;;  %v3445_v53 = vld [vmem:[#allocation19 + $0x110] sm:$0xff] }
0x126d   : > { %v3372_v55 = vsel %vm1613_vm4, 0.0, %v3370_v54  ;;  %v3428_v54 = vld [vmem:[#allocation19 + $0x88] sm:$0xff] }
0x126e   : > { %v3373_v57 = vsel %vm1620_vm7, %v3372_v55, 0.0  ;;  %v3444_v55 = vld [vmem:[#allocation19 + $0x108] sm:$0xff] }
0x126f   : > { %v3464_v58 = vrot.slane %v3373_v57, 2  ;;  %v3467_v56 = vrot.slane %v3373_v57, 3  ;;  %v3461_v59 = vrot.slane %v3373_v57, 1 }
0x1271   : > { %v3469_v60 = vsel %vm1613_vm4, %v3464_v58, %v3467_v56  ;;  %v3466_v0 = vsel %vm1613_vm4, %v3461_v59, %v3464_v58  ;;  %v3463_v1 = vsel %vm1613_vm4, %v3373_v57, %v3461_v59  ;;  %v3412_v58 = vld [vmem:[#allocation19 + $0x8] sm:$0xff]  ;;  %v3427_v56 = vld [vmem:[#allocation19 + $0x80] sm:$0xff] }
0x1272   : > { %3475 = vrot.lane.b32.xlu1 %v3469_v60, %s7834_s1  ;;  %3471 = vrot.lane.b32.xlu0 %v3466_v0, %s7835_s16  ;;  %v3411_v60 = vld [vmem:[#allocation19] sm:$0xff]  ;;  %s9210_s16 = sld [smem:[#allocation67_spill]] }
0x1273   : > { %v3443_v0 = vld [vmem:[#allocation19 + $0x100] sm:$0xff] }
0x12e4   : > { %v3476_v2 = vpop.permute.xlu1 %3475  ;;  %v3472_v5 = vpop.permute.xlu0 %3471 }
0x12e5   : > { %v3478_v6 = vsel %vm2695_vm11, %v3463_v1, %v3472_v5  ;;  %6631 = vmatmul.mubr.msk.f32.vlgmr.msra.gmra.mxu0 %vm2016_vm6, %v3476_v2  ;;  %v3479_v7 = vsel %vm2697_vm8, %v3472_v5, %v3476_v2 }
0x12e6   : > { %3552 = vmatprep.mubr.f32.mxu1 %v3479_v7  ;;  %6108 = vmatpush3.msra.mxu0 %v3426_v9 }
0x12e7   : > { %3553 = vmatmul.mubr.f32.vlgmr.msra.gmra.mxu1 %v3478_v6  ;;  %6109 = vmatprep.subr.mxu0 %v3441_v4  ;;  %v3798_v4 = vld [vmem:[#allocation20 + $0x38] sm:$0xff] }
0x12e8   : > { %6665 = vmatprep.mubr.msk.f32.mxu1 %vm7832_vm0, %v7821_v3  ;;  %6634 = vmatpush3.msra.mxu1 %v3458_v61 }
0x12e9   : > { %6635 = vmatprep.subr.mxu1 %v7821_v3  ;;  %6110 = vmatpush3.msra.mxu0 %v3425_v10  ;;  %v3797_v10 = vld [vmem:[#allocation20 + $0x30] sm:$0xff] }
0x12ea   : > { %6636 = vmatpush3.msra.mxu1 %v3457_v62  ;;  %6111 = vmatprep.subr.mxu0 %v3440_v11  ;;  %v3796_v62 = vld [vmem:[#allocation20 + $0x28] sm:$0xff]  ;;  %v3795_v11 = vld [vmem:[#allocation20 + $0x20] sm:$0xff] }
0x12eb   : > { %6637 = vmatprep.subr.mxu1 %v7821_v3  ;;  %6112 = vmatpush3.msra.mxu0 %v3424_v13  ;;  %v3793_v13 = vld [vmem:[#allocation20 + $0x10] sm:$0xff] }
0x12ec   : > { %6638 = vmatpush3.msra.mxu1 %v3456_v12  ;;  %6113 = vmatprep.subr.mxu0 %v3439_v14  ;;  %v3794_v12 = vld [vmem:[#allocation20 + $0x18] sm:$0xff]  ;;  %v3792_v14 = vld [vmem:[#allocation20 + $0x8] sm:$0xff] }
0x12ed   : > { %6639 = vmatprep.subr.mxu1 %v7821_v3  ;;  %6114 = vmatpush3.msra.mxu0 %v3423_v17  ;;  %v3791_v17 = vld [vmem:[#allocation20] sm:$0xff] }
0x12ee   : > { %6640 = vmatpush3.msra.mxu1 %v3455_v16  ;;  %6115 = vmatprep.subr.mxu0 %v3438_v15  ;;  %v3800_v16 = vrot.slane %v8842_v37, 1 }
0x12ef   : > { %6641 = vmatprep.subr.mxu1 %v7821_v3  ;;  %6116 = vmatpush3.msra.mxu0 %v3422_v39  ;;  %v3942_v39 = vld [vmem:[#allocation22 + $0x178] sm:$0xff] }
0x12f0   : > { %6642 = vmatpush3.msra.mxu1 %v3454_v19  ;;  %6117 = vmatprep.subr.mxu0 %v3437_v20  ;;  %v3802_v15 = vsel %vm1613_vm4, %v8842_v37, %v3800_v16  ;;  %v3926_v19 = vld [vmem:[#allocation22 + $0xf8] sm:$0xff]  ;;  %v3940_v37 = vld [vmem:[#allocation22 + $0x168] sm:$0xff]  ;;  %v3927_v16 = vld [vmem:[#allocation22 + $0x100] sm:$0xff] }
0x12f1   : > { %6643 = vmatprep.subr.mxu1 %v7821_v3  ;;  %6118 = vmatpush3.msra.mxu0 %v3421_v22  ;;  %v3910_v20 = vld [vmem:[#allocation22 + $0x78] sm:$0xff]  ;;  %v3941_v22 = vld [vmem:[#allocation22 + $0x170] sm:$0xff] }
0x12f2   : > { %6644 = vmatpush3.msra.mxu1 %v3453_v21  ;;  %6119 = vmatprep.subr.mxu0 %v3436_v24  ;;  %v3925_v21 = vld [vmem:[#allocation22 + $0xf0] sm:$0xff] }
0x12f3   : > { %6645 = vmatprep.subr.mxu1 %v7821_v3  ;;  %6120 = vmatpush3.msra.mxu0 %v3420_v23  ;;  %v3909_v24 = vld [vmem:[#allocation22 + $0x70] sm:$0xff]  ;;  %v3908_v23 = vld [vmem:[#allocation22 + $0x68] sm:$0xff] }
0x12f4   : > { %6646 = vmatpush3.msra.mxu1 %v3452_v27  ;;  %6121 = vmatprep.subr.mxu0 %v3435_v18  ;;  %v3924_v27 = vld [vmem:[#allocation22 + $0xe8] sm:$0xff]  ;;  %v3923_v18 = vld [vmem:[#allocation22 + $0xe0] sm:$0xff] }
0x12f5   : > { %6647 = vmatprep.subr.mxu1 %v7821_v3  ;;  %6122 = vmatpush3.msra.mxu0 %v3419_v26  ;;  %v3907_v26 = vld [vmem:[#allocation22 + $0x60] sm:$0xff] }
0x12f6   : > { %6648 = vmatpush3.msra.mxu1 %v3451_v25  ;;  %6123 = vmatprep.subr.mxu0 %v3434_v28  ;;  %v3939_v25 = vld [vmem:[#allocation22 + $0x160] sm:$0xff]  ;;  %v3922_v28 = vld [vmem:[#allocation22 + $0xd8] sm:$0xff] }
0x12f7   : > { %6649 = vmatprep.subr.mxu1 %v7821_v3  ;;  %6124 = vmatpush3.msra.mxu0 %v3418_v30  ;;  %v3906_v30 = vld [vmem:[#allocation22 + $0x58] sm:$0xff] }
0x12f8   : > { %6650 = vmatpush3.msra.mxu1 %v3450_v29  ;;  %6125 = vmatprep.subr.mxu0 %v3433_v31  ;;  %v3938_v29 = vld [vmem:[#allocation22 + $0x158] sm:$0xff]  ;;  %v3921_v31 = vld [vmem:[#allocation22 + $0xd0] sm:$0xff] }
0x12f9   : > { %6651 = vmatprep.subr.mxu1 %v7821_v3  ;;  %6126 = vmatpush3.msra.mxu0 %v3417_v33  ;;  %v3905_v33 = vld [vmem:[#allocation22 + $0x50] sm:$0xff] }
0x12fa   : > { %6652 = vmatpush3.msra.mxu1 %v3449_v32  ;;  %6127 = vmatprep.subr.mxu0 %v3432_v34  ;;  %v3937_v32 = vld [vmem:[#allocation22 + $0x150] sm:$0xff]  ;;  %v3920_v34 = vld [vmem:[#allocation22 + $0xc8] sm:$0xff] }
0x12fb   : > { %6653 = vmatprep.subr.mxu1 %v7821_v3  ;;  %6128 = vmatpush3.msra.mxu0 %v3416_v36  ;;  %v3904_v36 = vld [vmem:[#allocation22 + $0x48] sm:$0xff] }
0x12fc   : > { %6654 = vmatpush3.msra.mxu1 %v3448_v35  ;;  %6129 = vmatprep.subr.mxu0 %v3431_v38  ;;  %v3936_v35 = vld [vmem:[#allocation22 + $0x148] sm:$0xff]  ;;  %v3919_v38 = vld [vmem:[#allocation22 + $0xc0] sm:$0xff] }
0x12fd   : > { %6655 = vmatprep.subr.mxu1 %v7821_v3  ;;  %6130 = vmatpush3.msra.mxu0 %v3415_v41  ;;  %v3903_v41 = vld [vmem:[#allocation22 + $0x40] sm:$0xff] }
0x12fe   : > { %6656 = vmatpush3.msra.mxu1 %v3447_v40  ;;  %6131 = vmatprep.subr.mxu0 %v3430_v47  ;;  %v3935_v40 = vld [vmem:[#allocation22 + $0x140] sm:$0xff]  ;;  %v3916_v47 = vld [vmem:[#allocation22 + $0xa8] sm:$0xff] }
0x12ff   : > { %6657 = vmatprep.subr.mxu1 %v7821_v3  ;;  %6132 = vmatpush3.msra.mxu0 %v3414_v48  ;;  %v3932_v48 = vld [vmem:[#allocation22 + $0x128] sm:$0xff] }
0x1300   : > { %6658 = vmatpush3.msra.mxu1 %v3446_v49  ;;  %6133 = vmatprep.subr.mxu0 %v3429_v51  ;;  %v3900_v49 = vld [vmem:[#allocation22 + $0x28] sm:$0xff]  ;;  %v3931_v51 = vld [vmem:[#allocation22 + $0x120] sm:$0xff] }
0x1301   : > { %6659 = vmatprep.subr.mxu1 %v7821_v3  ;;  %6134 = vmatpush3.msra.mxu0 %v3413_v52 }
0x1302   : > { %6660 = vmatpush3.msra.mxu1 %v3445_v53  ;;  %6135 = vmatprep.subr.mxu0 %v3428_v54 }
0x1303   : > { %6661 = vmatprep.subr.mxu1 %v7821_v3  ;;  %6136 = vmatpush3.msra.mxu0 %v3412_v58  ;;  %v5883_v58 = vld [vmem:[%s9206_s4] ss:$0 sm:$0xff] }
0x1304   : > { %6662 = vmatpush3.msra.mxu1 %v3444_v55  ;;  %6137 = vmatprep.subr.mxu0 %v3427_v56 }
0x1305   : > { %6663 = vmatprep.subr.mxu1 %v7821_v3  ;;  %6138 = vmatpush3.msra.mxu0 %v3411_v60 }
0x1306   : > { %6664 = vmatpush3.msra.mxu1 %v3443_v0  ;;  %6668 = vmatprep.subr.mxu0 %v7821_v3  ;;  %v3899_v0 = vld [vmem:[#allocation22 + $0x20] sm:$0xff] }
0x1307   : > { %6168 = vmatprep.subr.mxu1 %v3926_v19 }
0x13a5   : > { %v3624_v63 = vpop.f32.mrf.mxu0 }
0x13a7   : > { %v6099_v42 = vpop.f32.mrf.mxu1  ;;  %v6632_v43 = vpop.f32.mrf.mxu0 }
0x13a8   : > { %v3902_v43 = vld [vmem:[#allocation22 + $0x38] sm:$0xff] }
0x13a9   : > { %v6100_v45 = vpop.f32.mrf.mxu1 }
0x13aa   : > { %v6101_v46 = vadd.f32 %v6100_v45, %v6099_v42  ;;  %v3934_v42 = vld [vmem:[#allocation22 + $0x138] sm:$0xff]  ;;  %v3933_v45 = vld [vmem:[#allocation22 + $0x130] sm:$0xff] }
0x13ac   : > { %v3555_v50 = vadd.f32 %v6101_v46, %v5881_v44  ;;  %v3917_v44 = vld [vmem:[#allocation22 + $0xb0] sm:$0xff] }
0x13ad   : > { %v3901_v46 = vld [vmem:[#allocation22 + $0x30] sm:$0xff] }
0x13ae   : > { %v3625_v57 = vadd.f32 %v3624_v63, %v3555_v50  ;;  %v3918_v63 = vld [vmem:[#allocation22 + $0xb8] sm:$0xff]  ;;  %v3915_v50 = vld [vmem:[#allocation22 + $0xa0] sm:$0xff] }
0x13b0   : > { %v3628_v59 = vmax.f32 %v3625_v57, 0.0 }
0x13b2   : > { %3630 = vrot.lane.b32.xlu0 %v3628_v59, %s7830_s23  ;;  %v5885_v59 = vld [vmem:[%s9207_s0] ss:$0 sm:$0xff] }
0x1424   : > { %v3631_v1 = vpop.permute.xlu0 %3630 }
0x1425   : > { %v3633_v2 = vsel %vm2016_vm6, 0.0, %v3631_v1  ;;  %v3914_v1 = vld [vmem:[#allocation22 + $0x98] sm:$0xff] }
0x1426   : > { %v3634_v5 = vsel %vm2695_vm11, %v3633_v2, 0.0  ;;  %v3930_v2 = vld [vmem:[#allocation22 + $0x118] sm:$0xff] }
0x1427   : > { %v3636_v6 = vrot.slane %v3634_v5, 7 }
0x1429   : > { %v3638_v7 = vsel %vm1613_vm4, 0.0, %v3636_v6 }
0x142a   : > { %v3639_v8 = vsel %vm1530_vm3, %v3638_v7, 0.0 }
0x142b   : > { %v3643_v9 = vrot.slane %v3639_v8, 2  ;;  %v3641_v61 = vrot.slane %v3639_v8, 1  ;;  %v3913_v8 = vld [vmem:[#allocation22 + $0x90] sm:$0xff] }
0x142d   : > { %3715 = vmatprep.mubr.f32.mxu0 %v3641_v61  ;;  %6666 = vmatmul.mubr.f32.vlgmr.msra.gmra.mxu1 %v3643_v9  ;;  %v3929_v9 = vld [vmem:[#allocation22 + $0x110] sm:$0xff] }
0x142e   : > { %5884 = vmatmul.mubr.msk.f32.vlgmr.msra.gmra.mxu0 %vm1530_vm3, %v3638_v7  ;;  %6169 = vmatpush3.msra.mxu1 %v3910_v20  ;;  %v3898_v7 = vld [vmem:[#allocation22 + $0x18] sm:$0xff] }
0x142f   : > { %6669 = vmatpush3.msra.mxu0 %v3798_v4  ;;  %6684 = vmatprep.mubr.msk.f32.mxu0 %vm7832_vm0, %v7821_v3  ;;  %v3897_v4 = vld [vmem:[#allocation22 + $0x10] sm:$0xff] }
0x1430   : > { %6670 = vmatprep.subr.mxu0 %v7821_v3  ;;  %6170 = vmatprep.subr.mxu1 %v3925_v21 }
0x1431   : > { %6671 = vmatpush3.msra.mxu0 %v3797_v10  ;;  %6171 = vmatpush3.msra.mxu1 %v3909_v24  ;;  %v3928_v10 = vld [vmem:[#allocation22 + $0x108] sm:$0xff] }
0x1432   : > { %6672 = vmatprep.subr.mxu0 %v7821_v3  ;;  %6172 = vmatprep.subr.mxu1 %v3924_v27 }
0x1433   : > { %6673 = vmatpush3.msra.mxu0 %v3796_v62  ;;  %6173 = vmatpush3.msra.mxu1 %v3908_v23  ;;  %v3991_v23 = vld [vmem:[#allocation23 + $0x178] sm:$0xff] }
0x1434   : > { %6674 = vmatprep.subr.mxu0 %v7821_v3  ;;  %6174 = vmatprep.subr.mxu1 %v3923_v18  ;;  %v3959_v18 = vld [vmem:[#allocation23 + $0x78] sm:$0xff] }
0x1435   : > { %6675 = vmatpush3.msra.mxu0 %v3795_v11  ;;  %6175 = vmatpush3.msra.mxu1 %v3907_v26  ;;  %v3912_v11 = vld [vmem:[#allocation22 + $0x88] sm:$0xff]  ;;  %v3990_v26 = vld [vmem:[#allocation23 + $0x170] sm:$0xff] }
0x1436   : > { %6676 = vmatprep.subr.mxu0 %v7821_v3  ;;  %6176 = vmatprep.subr.mxu1 %v3922_v28  ;;  %v3958_v28 = vld [vmem:[#allocation23 + $0x70] sm:$0xff] }
0x1437   : > { %6677 = vmatpush3.msra.mxu0 %v3794_v12  ;;  %6177 = vmatpush3.msra.mxu1 %v3906_v30  ;;  %v3896_v12 = vld [vmem:[#allocation22 + $0x8] sm:$0xff] }
0x1438   : > { %6678 = vmatprep.subr.mxu0 %v7821_v3  ;;  %6178 = vmatprep.subr.mxu1 %v3921_v31  ;;  %v3989_v30 = vld [vmem:[#allocation23 + $0x168] sm:$0xff] }
0x1439   : > { %6679 = vmatpush3.msra.mxu0 %v3793_v13  ;;  %6179 = vmatpush3.msra.mxu1 %v3905_v33  ;;  %v3957_v31 = vld [vmem:[#allocation23 + $0x68] sm:$0xff]  ;;  %v3988_v33 = vld [vmem:[#allocation23 + $0x160] sm:$0xff] }
0x143a   : > { %6680 = vmatprep.subr.mxu0 %v7821_v3  ;;  %6180 = vmatprep.subr.mxu1 %v3920_v34  ;;  %v3956_v34 = vld [vmem:[#allocation23 + $0x60] sm:$0xff] }
0x143b   : > { %6681 = vmatpush3.msra.mxu0 %v3792_v14  ;;  %6181 = vmatpush3.msra.mxu1 %v3904_v36  ;;  %v3911_v14 = vld [vmem:[#allocation22 + $0x80] sm:$0xff]  ;;  %v3987_v36 = vld [vmem:[#allocation23 + $0x158] sm:$0xff] }
0x143c   : > { %6682 = vmatprep.subr.mxu0 %v7821_v3  ;;  %6182 = vmatprep.subr.mxu1 %v3919_v38  ;;  %v3955_v38 = vld [vmem:[#allocation23 + $0x58] sm:$0xff] }
0x143d   : > { %6683 = vmatpush3.msra.mxu0 %v3791_v17  ;;  %6183 = vmatpush3.msra.mxu1 %v3903_v41  ;;  %v3895_v17 = vld [vmem:[#allocation22] sm:$0xff]  ;;  %v3986_v41 = vld [vmem:[#allocation23 + $0x150] sm:$0xff] }
0x143e   : > { %6685 = vmatmul.mubr.msk.f32.vlgmr.msra.gmra.mxu0 %vm2697_vm8, %v3802_v15  ;;  %6687 = vmatprep.subr.mxu0 %v7821_v3 }
0x143f   : > { %6719 = vmatprep.mubr.msk.f32.mxu0 %vm7832_vm0, %v7821_v3  ;;  %6688 = vmatpush3.msra.mxu0 %v3942_v39 }
0x1440   : > { %6689 = vmatprep.subr.mxu0 %v7821_v3  ;;  %6184 = vmatprep.subr.mxu1 %v3918_v63  ;;  %v3954_v63 = vld [vmem:[#allocation23 + $0x50] sm:$0xff] }
0x1441   : > { %6690 = vmatpush3.msra.mxu0 %v3941_v22  ;;  %6185 = vmatpush3.msra.mxu1 %v3902_v43  ;;  %v3985_v43 = vld [vmem:[#allocation23 + $0x148] sm:$0xff] }
0x1442   : > { %6691 = vmatprep.subr.mxu0 %v7821_v3  ;;  %6186 = vmatprep.subr.mxu1 %v3917_v44  ;;  %v3953_v44 = vld [vmem:[#allocation23 + $0x48] sm:$0xff] }
0x1443   : > { %6692 = vmatpush3.msra.mxu0 %v3940_v37  ;;  %6187 = vmatpush3.msra.mxu1 %v3901_v46  ;;  %v3975_v37 = vld [vmem:[#allocation23 + $0xf8] sm:$0xff]  ;;  %v3984_v46 = vld [vmem:[#allocation23 + $0x140] sm:$0xff] }
0x1444   : > { %6693 = vmatprep.subr.mxu0 %v7821_v3  ;;  %6188 = vmatprep.subr.mxu1 %v3916_v47  ;;  %v3952_v47 = vld [vmem:[#allocation23 + $0x40] sm:$0xff] }
0x1445   : > { %6694 = vmatpush3.msra.mxu0 %v3939_v25  ;;  %6189 = vmatpush3.msra.mxu1 %v3900_v49  ;;  %v3974_v25 = vld [vmem:[#allocation23 + $0xf0] sm:$0xff]  ;;  %v3983_v49 = vld [vmem:[#allocation23 + $0x138] sm:$0xff] }
0x1446   : > { %6695 = vmatprep.subr.mxu0 %v7821_v3  ;;  %6190 = vmatprep.subr.mxu1 %v3915_v50  ;;  %v3951_v50 = vld [vmem:[#allocation23 + $0x38] sm:$0xff] }
0x1447   : > { %6696 = vmatpush3.msra.mxu0 %v3938_v29  ;;  %6191 = vmatpush3.msra.mxu1 %v3899_v0  ;;  %v3973_v29 = vld [vmem:[#allocation23 + $0xe8] sm:$0xff] }
0x1448   : > { %6697 = vmatprep.subr.mxu0 %v7821_v3  ;;  %6192 = vmatprep.subr.mxu1 %v3914_v1  ;;  %v5887_v1 = vld [vmem:[%s9208_s11] ss:$0 sm:$0xff]  ;;  %s7836_s11 = smov [#allocation32]  }
0x1449   : > { %6698 = vmatpush3.msra.mxu0 %v3937_v32  ;;  %6193 = vmatpush3.msra.mxu1 %v3898_v7  ;;  %v3972_v32 = vld [vmem:[#allocation23 + $0xe0] sm:$0xff]  ;;  %v3963_v7 = vld [vmem:[#allocation23 + $0x98] sm:$0xff] }
0x144a   : > { %6699 = vmatprep.subr.mxu0 %v7821_v3  ;;  %6194 = vmatprep.subr.mxu1 %v3913_v8  ;;  %v3979_v8 = vld [vmem:[#allocation23 + $0x118] sm:$0xff] }
0x144b   : > { %6700 = vmatpush3.msra.mxu0 %v3936_v35  ;;  %6195 = vmatpush3.msra.mxu1 %v3897_v4  ;;  %v3971_v35 = vld [vmem:[#allocation23 + $0xd8] sm:$0xff]  ;;  %v3962_v4 = vld [vmem:[#allocation23 + $0x90] sm:$0xff] }
0x144c   : > { %6701 = vmatprep.subr.mxu0 %v7821_v3  ;;  %6196 = vmatprep.subr.mxu1 %v3912_v11  ;;  %v3946_v11 = vld [vmem:[#allocation23 + $0x10] sm:$0xff] }
0x144d   : > { %6702 = vmatpush3.msra.mxu0 %v3935_v40  ;;  %6197 = vmatpush3.msra.mxu1 %v3896_v12  ;;  %v3970_v40 = vld [vmem:[#allocation23 + $0xd0] sm:$0xff]  ;;  %v3977_v12 = vld [vmem:[#allocation23 + $0x108] sm:$0xff] }
0x144e   : > { %6703 = vmatprep.subr.mxu0 %v7821_v3  ;;  %6198 = vmatprep.subr.mxu1 %v3911_v14 }
0x144f   : > { %6704 = vmatpush3.msra.mxu0 %v3934_v42  ;;  %6199 = vmatpush3.msra.mxu1 %v3895_v17  ;;  %v3969_v42 = vld [vmem:[#allocation23 + $0xc8] sm:$0xff] }
0x1450   : > { %6705 = vmatprep.subr.mxu0 %v7821_v3  ;;  %6220 = vmatprep.subr.mxu1 %v3975_v37  ;;  %v3945_v17 = vld [vmem:[#allocation23 + $0x8] sm:$0xff] }
0x1451   : > { %6706 = vmatpush3.msra.mxu0 %v3933_v45  ;;  %v3968_v45 = vld [vmem:[#allocation23 + $0xc0] sm:$0xff] }
0x1452   : > { %6707 = vmatprep.subr.mxu0 %v7821_v3 }
0x1453   : > { %6708 = vmatpush3.msra.mxu0 %v3932_v48  ;;  %v3967_v48 = vld [vmem:[#allocation23 + $0xb8] sm:$0xff] }
0x1454   : > { %6709 = vmatprep.subr.mxu0 %v7821_v3 }
0x1455   : > { %6710 = vmatpush3.msra.mxu0 %v3931_v51  ;;  %v3966_v51 = vld [vmem:[#allocation23 + $0xb0] sm:$0xff] }
0x1456   : > { %6711 = vmatprep.subr.mxu0 %v7821_v3 }
0x1457   : > { %6712 = vmatpush3.msra.mxu0 %v3930_v2 }
0x1458   : > { %6713 = vmatprep.subr.mxu0 %v7821_v3 }
0x1459   : > { %6714 = vmatpush3.msra.mxu0 %v3929_v9 }
0x145a   : > { %6715 = vmatprep.subr.mxu0 %v7821_v3 }
0x145b   : > { %6716 = vmatpush3.msra.mxu0 %v3928_v10  ;;  %v3978_v10 = vld [vmem:[#allocation23 + $0x110] sm:$0xff] }
0x145c   : > { %6717 = vmatprep.subr.mxu0 %v7821_v3 }
0x145d   : > { %6718 = vmatpush3.msra.mxu0 %v3927_v16  ;;  %v3961_v16 = vld [vmem:[#allocation23 + $0x88] sm:$0xff] }
0x145e   : > { %6722 = vmatprep.subr.mxu0 %v7821_v3 }
0x14ed   : > { %v3787_v52 = vpop.f32.mrf.mxu1 }
0x14ee   : > { %v6139_v54 = vpop.f32.mrf.mxu0 }
0x14ef   : > { %v6667_v53 = vpop.f32.mrf.mxu1 }
0x14f0   : > { %v6140_v55 = vpop.f32.mrf.mxu0  ;;  %v3950_v53 = vld [vmem:[#allocation23 + $0x30] sm:$0xff] }
0x14f1   : > { %v6141_v57 = vadd.f32 %v6140_v55, %v6139_v54  ;;  %v3965_v54 = vld [vmem:[#allocation23 + $0xa8] sm:$0xff] }
0x14f2   : > { %v3981_v55 = vld [vmem:[#allocation23 + $0x128] sm:$0xff] }
0x14f3   : > { %v3718_v56 = vadd.f32 %v6141_v57, %v5883_v58  ;;  %v3949_v57 = vld [vmem:[#allocation23 + $0x28] sm:$0xff]  ;;  %v3964_v58 = vld [vmem:[#allocation23 + $0xa0] sm:$0xff] }
0x14f5   : > { %v3788_v5 = vadd.f32 %v3787_v52, %v3718_v56  ;;  %v3982_v52 = vld [vmem:[#allocation23 + $0x130] sm:$0xff]  ;;  %v3980_v56 = vld [vmem:[#allocation23 + $0x120] sm:$0xff] }
0x14fe   : > { %v3878_v60 = vpop.f32.mrf.mxu0 }
0x14ff   : > { %v3879_v6 = vadd.f32 %v5885_v59, %v3878_v60 }
0x1500   : > { %v6686_v61 = vpop.f32.mrf.mxu0 }
0x1501   : > { %v8918_v62 = vadd.f32 %v3879_v6, %v3788_v5  ;;  %v3948_v6 = vld [vmem:[#allocation23 + $0x20] sm:$0xff]  ;;  %v3947_v61 = vld [vmem:[#allocation23 + $0x18] sm:$0xff] }
0x1503   : > { %v3883_v13 = vmax.f32 %v8918_v62, 0.0 }
0x1505   : > { %3885 = vrot.lane.b32.xlu1 %v3883_v13, %s7830_s23 }
0x1577   : > { %v3886_v15 = vpop.permute.xlu1 %3885 }
0x1578   : > { %v3888_v19 = vsel %vm2016_vm6, 0.0, %v3886_v15 }
0x1579   : > { %v3889_v39 = vsel %vm2695_vm11, %v3888_v19, 0.0  ;;  %v3960_v19 = vld [vmem:[#allocation23 + $0x80] sm:$0xff] }
0x157a   : > { %v3891_v20 = vrot.slane %v3889_v39, 7  ;;  %v3976_v39 = vld [vmem:[#allocation23 + $0x100] sm:$0xff] }
0x157c   : > { %v3893_v21 = vsel %vm1613_vm4, 0.0, %v3891_v20  ;;  %v3944_v20 = vld [vmem:[#allocation23] sm:$0xff] }
0x157d   : > { %v3894_v22 = vsel %vm1530_vm3, %v3893_v21, 0.0 }
0x157e   : > { %v3996_v24 = vrot.slane %v3894_v22, 2  ;;  %v3994_v27 = vrot.slane %v3894_v22, 1 }
0x1580   : > { %4068 = vmatprep.mubr.f32.mxu1 %v3994_v27  ;;  %6720 = vmatmul.mubr.f32.vlgmr.msra.gmra.mxu0 %v3996_v24 }
0x1581   : > { %5888 = vmatmul.mubr.msk.f32.vlgmr.msra.gmra.mxu1 %vm1530_vm3, %v3893_v21  ;;  %6754 = vmatprep.mubr.msk.f32.mxu0 %vm7832_vm0, %v7821_v3 }
0x1582   : > { %6723 = vmatpush3.msra.mxu0 %v3991_v23  ;;  %6221 = vmatpush3.msra.mxu1 %v3959_v18 }
0x1583   : > { %6724 = vmatprep.subr.mxu0 %v7821_v3  ;;  %6222 = vmatprep.subr.mxu1 %v3974_v25 }
0x1584   : > { %6725 = vmatpush3.msra.mxu0 %v3990_v26  ;;  %6223 = vmatpush3.msra.mxu1 %v3958_v28  ;;  %v4351_v26 = vld [vmem:[#allocation25 + $0xf8] sm:$0xff] }
0x1585   : > { %6726 = vmatprep.subr.mxu0 %v7821_v3  ;;  %6224 = vmatprep.subr.mxu1 %v3973_v29  ;;  %v4367_v28 = vld [vmem:[#allocation25 + $0x178] sm:$0xff] }
0x1586   : > { %6727 = vmatpush3.msra.mxu0 %v3989_v30  ;;  %6225 = vmatpush3.msra.mxu1 %v3957_v31  ;;  %v4335_v29 = vld [vmem:[#allocation25 + $0x78] sm:$0xff]  ;;  %v4350_v30 = vld [vmem:[#allocation25 + $0xf0] sm:$0xff] }
0x1587   : > { %6728 = vmatprep.subr.mxu0 %v7821_v3  ;;  %6226 = vmatprep.subr.mxu1 %v3972_v32  ;;  %v4366_v31 = vld [vmem:[#allocation25 + $0x170] sm:$0xff] }
0x1588   : > { %6729 = vmatpush3.msra.mxu0 %v3988_v33  ;;  %6227 = vmatpush3.msra.mxu1 %v3956_v34  ;;  %v4334_v32 = vld [vmem:[#allocation25 + $0x70] sm:$0xff]  ;;  %v4349_v33 = vld [vmem:[#allocation25 + $0xe8] sm:$0xff] }
0x1589   : > { %6730 = vmatprep.subr.mxu0 %v7821_v3  ;;  %6228 = vmatprep.subr.mxu1 %v3971_v35  ;;  %v4365_v34 = vld [vmem:[#allocation25 + $0x168] sm:$0xff] }
0x158a   : > { %6731 = vmatpush3.msra.mxu0 %v3987_v36  ;;  %6229 = vmatpush3.msra.mxu1 %v3955_v38  ;;  %v4333_v35 = vld [vmem:[#allocation25 + $0x68] sm:$0xff]  ;;  %v4348_v36 = vld [vmem:[#allocation25 + $0xe0] sm:$0xff] }
0x158b   : > { %6732 = vmatprep.subr.mxu0 %v7821_v3  ;;  %6230 = vmatprep.subr.mxu1 %v3970_v40  ;;  %v4364_v38 = vld [vmem:[#allocation25 + $0x160] sm:$0xff] }
0x158c   : > { %6733 = vmatpush3.msra.mxu0 %v3986_v41  ;;  %6231 = vmatpush3.msra.mxu1 %v3954_v63  ;;  %v4332_v40 = vld [vmem:[#allocation25 + $0x60] sm:$0xff]  ;;  %v4347_v41 = vld [vmem:[#allocation25 + $0xd8] sm:$0xff] }
0x158d   : > { %6734 = vmatprep.subr.mxu0 %v7821_v3  ;;  %6232 = vmatprep.subr.mxu1 %v3969_v42  ;;  %v4363_v63 = vld [vmem:[#allocation25 + $0x158] sm:$0xff] }
0x158e   : > { %6735 = vmatpush3.msra.mxu0 %v3985_v43  ;;  %6233 = vmatpush3.msra.mxu1 %v3953_v44  ;;  %v4331_v42 = vld [vmem:[#allocation25 + $0x58] sm:$0xff]  ;;  %v4346_v43 = vld [vmem:[#allocation25 + $0xd0] sm:$0xff] }
0x158f   : > { %6736 = vmatprep.subr.mxu0 %v7821_v3  ;;  %6234 = vmatprep.subr.mxu1 %v3968_v45  ;;  %v4362_v44 = vld [vmem:[#allocation25 + $0x150] sm:$0xff] }
0x1590   : > { %6737 = vmatpush3.msra.mxu0 %v3984_v46  ;;  %6235 = vmatpush3.msra.mxu1 %v3952_v47  ;;  %v4330_v45 = vld [vmem:[#allocation25 + $0x50] sm:$0xff]  ;;  %v4345_v46 = vld [vmem:[#allocation25 + $0xc8] sm:$0xff] }
0x1591   : > { %6738 = vmatprep.subr.mxu0 %v7821_v3  ;;  %6236 = vmatprep.subr.mxu1 %v3967_v48  ;;  %v4361_v47 = vld [vmem:[#allocation25 + $0x148] sm:$0xff] }
0x1592   : > { %6739 = vmatpush3.msra.mxu0 %v3983_v49  ;;  %6237 = vmatpush3.msra.mxu1 %v3951_v50  ;;  %v4329_v48 = vld [vmem:[#allocation25 + $0x48] sm:$0xff]  ;;  %v4344_v49 = vld [vmem:[#allocation25 + $0xc0] sm:$0xff] }
0x1593   : > { %6740 = vmatprep.subr.mxu0 %v7821_v3  ;;  %6238 = vmatprep.subr.mxu1 %v3966_v51  ;;  %v4360_v50 = vld [vmem:[#allocation25 + $0x140] sm:$0xff] }
0x1594   : > { %6741 = vmatpush3.msra.mxu0 %v3982_v52  ;;  %6239 = vmatpush3.msra.mxu1 %v3950_v53  ;;  %v4328_v51 = vld [vmem:[#allocation25 + $0x40] sm:$0xff]  ;;  %v4343_v52 = vld [vmem:[#allocation25 + $0xb8] sm:$0xff] }
0x1595   : > { %6742 = vmatprep.subr.mxu0 %v7821_v3  ;;  %6240 = vmatprep.subr.mxu1 %v3965_v54  ;;  %v4359_v53 = vld [vmem:[#allocation25 + $0x138] sm:$0xff] }
0x1596   : > { %6743 = vmatpush3.msra.mxu0 %v3981_v55  ;;  %6241 = vmatpush3.msra.mxu1 %v3949_v57  ;;  %v4327_v54 = vld [vmem:[#allocation25 + $0x38] sm:$0xff]  ;;  %v4342_v55 = vld [vmem:[#allocation25 + $0xb0] sm:$0xff] }
0x1597   : > { %6744 = vmatprep.subr.mxu0 %v7821_v3  ;;  %6242 = vmatprep.subr.mxu1 %v3964_v58  ;;  %v4358_v57 = vld [vmem:[#allocation25 + $0x130] sm:$0xff] }
0x1598   : > { %6745 = vmatpush3.msra.mxu0 %v3980_v56  ;;  %6243 = vmatpush3.msra.mxu1 %v3948_v6  ;;  %v4326_v58 = vld [vmem:[#allocation25 + $0x30] sm:$0xff]  ;;  %v4341_v56 = vld [vmem:[#allocation25 + $0xa8] sm:$0xff] }
0x1599   : > { %6746 = vmatprep.subr.mxu0 %v7821_v3  ;;  %6244 = vmatprep.subr.mxu1 %v3963_v7  ;;  %v5889_v7 = vld [vmem:[%s9209_s3] ss:$0 sm:$0xff]  ;;  %s7660_s3 = sshll.u32 %s7836_s11, 4  ;;  %s7661_s3 = int_to_ptr.vmem [resolvable:$false] %s7660_s3 }
0x159a   : > { %6747 = vmatpush3.msra.mxu0 %v3979_v8  ;;  %6245 = vmatpush3.msra.mxu1 %v3947_v61  ;;  %s7662_s15 = scalar_lea.vmem %s7661_s3, 32 }
0x159b   : > { %6748 = vmatprep.subr.mxu0 %v7821_v3  ;;  %6246 = vmatprep.subr.mxu1 %v3962_v4  ;;  %v4324_v4 = vld [vmem:[#allocation25 + $0x20] sm:$0xff] }
0x159c   : > { %6749 = vmatpush3.msra.mxu0 %v3978_v10  ;;  %6247 = vmatpush3.msra.mxu1 %v3946_v11  ;;  %v4339_v10 = vld [vmem:[#allocation25 + $0x98] sm:$0xff] }
0x159d   : > { %6750 = vmatprep.subr.mxu0 %v7821_v3  ;;  %6248 = vmatprep.subr.mxu1 %v3961_v16  ;;  %v4355_v11 = vld [vmem:[#allocation25 + $0x118] sm:$0xff]  ;;  %v4338_v16 = vld [vmem:[#allocation25 + $0x90] sm:$0xff] }
0x159e   : > { %6751 = vmatpush3.msra.mxu0 %v3977_v12  ;;  %6249 = vmatpush3.msra.mxu1 %v3945_v17  ;;  %v4354_v17 = vld [vmem:[#allocation25 + $0x110] sm:$0xff] }
0x159f   : > { %6752 = vmatprep.subr.mxu0 %v7821_v3  ;;  %6250 = vmatprep.subr.mxu1 %v3960_v19  ;;  %v4353_v19 = vld [vmem:[#allocation25 + $0x108] sm:$0xff] }
0x15a0   : > { %6753 = vmatpush3.msra.mxu0 %v3976_v39  ;;  %6251 = vmatpush3.msra.mxu1 %v3944_v20  ;;  %v4337_v20 = vld [vmem:[#allocation25 + $0x88] sm:$0xff] }
0x15a1   : > { %6757 = vmatprep.subr.mxu0 %v7821_v3  ;;  %6272 = vmatprep.subr.mxu1 %v4351_v26 }
0x1640   : > { %v4140_v59 = vpop.f32.mrf.mxu0 }
0x1641   : > { %v6200_v60 = vpop.f32.mrf.mxu1 }
0x1642   : > { %v6721_v0 = vpop.f32.mrf.mxu0 }
0x1643   : > { %v6201_v2 = vpop.f32.mrf.mxu1  ;;  %v4340_v0 = vld [vmem:[#allocation25 + $0xa0] sm:$0xff] }
0x1644   : > { %v6202_v5 = vadd.f32 %v6201_v2, %v6200_v60  ;;  %v4325_v60 = vld [vmem:[#allocation25 + $0x28] sm:$0xff] }
0x1646   : > { %v4071_v9 = vadd.f32 %v6202_v5, %v5887_v1  ;;  %v4356_v1 = vld [vmem:[#allocation25 + $0x120] sm:$0xff] }
0x1648   : > { %v4141_v14 = vadd.f32 %v4140_v59, %v4071_v9  ;;  %v4357_v59 = vld [vmem:[#allocation25 + $0x128] sm:$0xff] }
0x164a   : > { %v4144_v15 = vmax.f32 %v4141_v14, 0.0  ;;  %v4323_v14 = vld [vmem:[#allocation25 + $0x18] sm:$0xff] }
0x164c   : > { %4146 = vrot.lane.b32.xlu0 %v4144_v15, %s7830_s23  ;;  %v4322_v15 = vld [vmem:[#allocation25 + $0x10] sm:$0xff] }
0x16be   : > { %v4147_v21 = vpop.permute.xlu0 %4146 }
0x16bf   : > { %v4149_v22 = vsel %vm2016_vm6, 0.0, %v4147_v21  ;;  %v4321_v21 = vld [vmem:[#allocation25 + $0x8] sm:$0xff] }
0x16c0   : > { %v4150_v24 = vsel %vm2695_vm11, %v4149_v22, 0.0 }
0x16c1   : > { %v4152_v27 = vrot.slane %v4150_v24, 7  ;;  %v4336_v24 = vld [vmem:[#allocation25 + $0x80] sm:$0xff] }
0x16c3   : > { %v4154_v37 = vsel %vm1613_vm4, 0.0, %v4152_v27  ;;  %v4352_v27 = vld [vmem:[#allocation25 + $0x100] sm:$0xff] }
0x16c4   : > { %v4155_v23 = vsel %vm1530_vm3, %v4154_v37, 0.0 }
0x16c5   : > { %v4159_v18 = vrot.slane %v4155_v23, 2  ;;  %v4157_v25 = vrot.slane %v4155_v23, 1 }
0x16c7   : > { %4231 = vmatprep.mubr.f32.mxu1 %v4157_v25  ;;  %6755 = vmatmul.mubr.f32.vlgmr.msra.gmra.mxu0 %v4159_v18 }
0x16c8   : > { %5890 = vmatmul.mubr.msk.f32.vlgmr.msra.gmra.mxu1 %vm1530_vm3, %v4154_v37  ;;  %6789 = vmatprep.mubr.msk.f32.mxu0 %vm7832_vm0, %v7821_v3  ;;  %v4320_v37 = vld [vmem:[#allocation25] sm:$0xff] }
0x16c9   : > { %6758 = vmatpush3.msra.mxu0 %v4367_v28  ;;  %6273 = vmatpush3.msra.mxu1 %v4335_v29 }
0x16ca   : > { %6759 = vmatprep.subr.mxu0 %v7821_v3  ;;  %6274 = vmatprep.subr.mxu1 %v4350_v30 }
0x16cb   : > { %6760 = vmatpush3.msra.mxu0 %v4366_v31  ;;  %6275 = vmatpush3.msra.mxu1 %v4334_v32 }
0x16cc   : > { %6761 = vmatprep.subr.mxu0 %v7821_v3  ;;  %6276 = vmatprep.subr.mxu1 %v4349_v33  ;;  %v4368_v33 = vld [vmem:[%s9210_s16] sm:$0x1] }
0x16cd   : > { %6762 = vmatpush3.msra.mxu0 %v4365_v34  ;;  %6277 = vmatpush3.msra.mxu1 %v4333_v35 }
0x16ce   : > { %6763 = vmatprep.subr.mxu0 %v7821_v3  ;;  %6278 = vmatprep.subr.mxu1 %v4348_v36 }
0x16cf   : > { %6764 = vmatpush3.msra.mxu0 %v4364_v38  ;;  %6279 = vmatpush3.msra.mxu1 %v4332_v40  ;;  %v4432_v40 = vld [vmem:[#allocation26 + $0x1f8] sm:$0xff] }
0x16d0   : > { %6765 = vmatprep.subr.mxu0 %v7821_v3  ;;  %6280 = vmatprep.subr.mxu1 %v4347_v41  ;;  %v4400_v41 = vld [vmem:[#allocation26 + $0xf8] sm:$0xff] }
0x16d1   : > { %6766 = vmatpush3.msra.mxu0 %v4363_v63  ;;  %6281 = vmatpush3.msra.mxu1 %v4331_v42  ;;  %v4416_v63 = vld [vmem:[#allocation26 + $0x178] sm:$0xff] }
0x16d2   : > { %6767 = vmatprep.subr.mxu0 %v7821_v3  ;;  %6282 = vmatprep.subr.mxu1 %v4346_v43  ;;  %v4384_v42 = vld [vmem:[#allocation26 + $0x78] sm:$0xff]  ;;  %v4431_v43 = vld [vmem:[#allocation26 + $0x1f0] sm:$0xff] }
0x16d3   : > { %6768 = vmatpush3.msra.mxu0 %v4362_v44  ;;  %6283 = vmatpush3.msra.mxu1 %v4330_v45  ;;  %v4399_v44 = vld [vmem:[#allocation26 + $0xf0] sm:$0xff] }
0x16d4   : > { %6769 = vmatprep.subr.mxu0 %v7821_v3  ;;  %6284 = vmatprep.subr.mxu1 %v4345_v46  ;;  %v4415_v46 = vld [vmem:[#allocation26 + $0x170] sm:$0xff] }
0x16d5   : > { %6770 = vmatpush3.msra.mxu0 %v4361_v47  ;;  %6285 = vmatpush3.msra.mxu1 %v4329_v48  ;;  %v4383_v47 = vld [vmem:[#allocation26 + $0x70] sm:$0xff]  ;;  %v4430_v48 = vld [vmem:[#allocation26 + $0x1e8] sm:$0xff] }
0x16d6   : > { %6771 = vmatprep.subr.mxu0 %v7821_v3  ;;  %6286 = vmatprep.subr.mxu1 %v4344_v49  ;;  %v4398_v49 = vld [vmem:[#allocation26 + $0xe8] sm:$0xff] }
0x16d7   : > { %6772 = vmatpush3.msra.mxu0 %v4360_v50  ;;  %6287 = vmatpush3.msra.mxu1 %v4328_v51  ;;  %v4414_v50 = vld [vmem:[#allocation26 + $0x168] sm:$0xff] }
0x16d8   : > { %6773 = vmatprep.subr.mxu0 %v7821_v3  ;;  %6288 = vmatprep.subr.mxu1 %v4343_v52  ;;  %v4382_v51 = vld [vmem:[#allocation26 + $0x68] sm:$0xff]  ;;  %v4429_v52 = vld [vmem:[#allocation26 + $0x1e0] sm:$0xff] }
0x16d9   : > { %6774 = vmatpush3.msra.mxu0 %v4359_v53  ;;  %6289 = vmatpush3.msra.mxu1 %v4327_v54  ;;  %v4397_v53 = vld [vmem:[#allocation26 + $0xe0] sm:$0xff] }
0x16da   : > { %6775 = vmatprep.subr.mxu0 %v7821_v3  ;;  %6290 = vmatprep.subr.mxu1 %v4342_v55  ;;  %v4413_v54 = vld [vmem:[#allocation26 + $0x160] sm:$0xff] }
0x16db   : > { %6776 = vmatpush3.msra.mxu0 %v4358_v57  ;;  %6291 = vmatpush3.msra.mxu1 %v4326_v58  ;;  %v4381_v55 = vld [vmem:[#allocation26 + $0x60] sm:$0xff]  ;;  %v4428_v57 = vld [vmem:[#allocation26 + $0x1d8] sm:$0xff] }
0x16dc   : > { %6777 = vmatprep.subr.mxu0 %v7821_v3  ;;  %6292 = vmatprep.subr.mxu1 %v4341_v56  ;;  %v4396_v58 = vld [vmem:[#allocation26 + $0xd8] sm:$0xff] }
0x16dd   : > { %6778 = vmatpush3.msra.mxu0 %v4357_v59  ;;  %6293 = vmatpush3.msra.mxu1 %v4325_v60  ;;  %v4412_v56 = vld [vmem:[#allocation26 + $0x158] sm:$0xff]  ;;  %v4427_v60 = vld [vmem:[#allocation26 + $0x1d0] sm:$0xff] }
0x16de   : > { %6779 = vmatprep.subr.mxu0 %v7821_v3  ;;  %6294 = vmatprep.subr.mxu1 %v4340_v0  ;;  %v4380_v59 = vld [vmem:[#allocation26 + $0x58] sm:$0xff]  ;;  %v4395_v0 = vld [vmem:[#allocation26 + $0xd0] sm:$0xff] }
0x16df   : > { %6780 = vmatpush3.msra.mxu0 %v4356_v1  ;;  %6295 = vmatpush3.msra.mxu1 %v4324_v4  ;;  %v4411_v1 = vld [vmem:[#allocation26 + $0x150] sm:$0xff]  ;;  %v4409_v4 = vld [vmem:[#allocation26 + $0x140] sm:$0xff] }
0x16e0   : > { %6781 = vmatprep.subr.mxu0 %v7821_v3  ;;  %6296 = vmatprep.subr.mxu1 %v4339_v10  ;;  %v4377_v10 = vld [vmem:[#allocation26 + $0x40] sm:$0xff] }
0x16e1   : > { %6782 = vmatpush3.msra.mxu0 %v4355_v11  ;;  %6297 = vmatpush3.msra.mxu1 %v4323_v14  ;;  %v4424_v11 = vld [vmem:[#allocation26 + $0x1b8] sm:$0xff] }
0x16e2   : > { %6783 = vmatprep.subr.mxu0 %v7821_v3  ;;  %6298 = vmatprep.subr.mxu1 %v4338_v16  ;;  %v4408_v14 = vld [vmem:[#allocation26 + $0x138] sm:$0xff] }
0x16e3   : > { %6784 = vmatpush3.msra.mxu0 %v4354_v17  ;;  %6299 = vmatpush3.msra.mxu1 %v4322_v15  ;;  %v4376_v16 = vld [vmem:[#allocation26 + $0x38] sm:$0xff]  ;;  %v4423_v17 = vld [vmem:[#allocation26 + $0x1b0] sm:$0xff] }
0x16e4   : > { %6785 = vmatprep.subr.mxu0 %v7821_v3  ;;  %6300 = vmatprep.subr.mxu1 %v4337_v20  ;;  %v4391_v15 = vld [vmem:[#allocation26 + $0xb0] sm:$0xff] }
0x16e5   : > { %6786 = vmatpush3.msra.mxu0 %v4353_v19  ;;  %6301 = vmatpush3.msra.mxu1 %v4321_v21  ;;  %v4407_v19 = vld [vmem:[#allocation26 + $0x130] sm:$0xff]  ;;  %v4422_v21 = vld [vmem:[#allocation26 + $0x1a8] sm:$0xff] }
0x16e6   : > { %6787 = vmatprep.subr.mxu0 %v7821_v3  ;;  %6302 = vmatprep.subr.mxu1 %v4336_v24  ;;  %v4375_v20 = vld [vmem:[#allocation26 + $0x30] sm:$0xff]  ;;  %v4390_v24 = vld [vmem:[#allocation26 + $0xa8] sm:$0xff] }
0x16e7   : > { %6788 = vmatpush3.msra.mxu0 %v4352_v27  ;;  %6303 = vmatpush3.msra.mxu1 %v4320_v37  ;;  %v4406_v27 = vld [vmem:[#allocation26 + $0x128] sm:$0xff] }
0x16e8   : > { %6359 = vmatprep.subr.mxu0 %v4432_v40  ;;  %6324 = vmatprep.subr.mxu1 %v4400_v41  ;;  %v4374_v37 = vld [vmem:[#allocation26 + $0x28] sm:$0xff]  ;;  %v4417_v41 = vld [vmem:[#allocation26 + $0x180] sm:$0xff] }
0x16e9   : > { %v4370_v40 = vld [vmem:[#allocation26 + $0x8] sm:$0xff] }
0x1787   : > { %v4303_v2 = vpop.f32.mrf.mxu0 }
0x1788   : > { %v6252_v5 = vpop.f32.mrf.mxu1 }
0x1789   : > { %v6756_v6 = vpop.f32.mrf.mxu0 }
0x178a   : > { %v6253_v8 = vpop.f32.mrf.mxu1  ;;  %v4394_v6 = vld [vmem:[#allocation26 + $0xc8] sm:$0xff] }
0x178b   : > { %v6254_v9 = vadd.f32 %v6253_v8, %v6252_v5  ;;  %v4426_v5 = vld [vmem:[#allocation26 + $0x1c8] sm:$0xff] }
0x178c   : > { %v4378_v8 = vld [vmem:[#allocation26 + $0x48] sm:$0xff] }
0x178d   : > { %v4234_v61 = vadd.f32 %v6254_v9, %v5889_v7  ;;  %v4410_v7 = vld [vmem:[#allocation26 + $0x148] sm:$0xff]  ;;  %v4425_v9 = vld [vmem:[#allocation26 + $0x1c0] sm:$0xff] }
0x178f   : > { %v4304_v12 = vadd.f32 %v4303_v2, %v4234_v61  ;;  %v4379_v2 = vld [vmem:[#allocation26 + $0x50] sm:$0xff]  ;;  %v4393_v61 = vld [vmem:[#allocation26 + $0xc0] sm:$0xff] }
0x1791   : > { %v8975_v39 = vadd.f32 %v4304_v12, %v3883_v13  ;;  %v4392_v12 = vld [vmem:[#allocation26 + $0xb8] sm:$0xff] }
0x1793   : > { %v4308_v22 = vmax.f32 %v8975_v39, 0.0 }
0x1795   : > { %4310 = vrot.lane.b32.xlu1 %v4308_v22, %s7830_s23  ;;  %s9211_s23 = sld [smem:[#allocation68_spill]] }
0x1807   : > { %v4311_v62 = vpop.permute.xlu1 %4310 }
0x1808   : > { %v4313_v13 = vsel %vm2016_vm6, 0.0, %v4311_v62  ;;  %v4421_v62 = vld [vmem:[#allocation26 + $0x1a0] sm:$0xff] }
0x1809   : > { %v4314_v23 = vsel %vm2695_vm11, %v4313_v13, 0.0  ;;  %v4389_v13 = vld [vmem:[#allocation26 + $0xa0] sm:$0xff] }
0x180a   : > { %v4316_v18 = vrot.slane %v4314_v23, 7  ;;  %v4405_v23 = vld [vmem:[#allocation26 + $0x120] sm:$0xff] }
0x180c   : > { %v4318_v25 = vsel %vm1613_vm4, 0.0, %v4316_v18  ;;  %v4373_v18 = vld [vmem:[#allocation26 + $0x20] sm:$0xff] }
0x180d   : > { %v4319_v26 = vsel %vm1530_vm3, %v4318_v25, 0.0 }
0x180e   : > { %v4445_v28 = vrot.slane %v4319_v26, 2  ;;  %v4443_v29 = vrot.slane %v4319_v26, 1  ;;  %v4388_v26 = vld [vmem:[#allocation26 + $0x98] sm:$0xff] }
0x1810   : > { %4511 = vmatprep.mubr.f32.mxu1 %v4443_v29  ;;  %6790 = vmatmul.mubr.f32.vlgmr.msra.gmra.mxu0 %v4445_v28  ;;  %v4404_v28 = vld [vmem:[#allocation26 + $0x118] sm:$0xff] }
0x1811   : > { %5891 = vmatmul.mubr.msk.f32.vlgmr.msra.gmra.mxu1 %vm1530_vm3, %v4318_v25  ;;  %6360 = vmatpush3.msra.mxu0 %v4416_v63  ;;  %v4420_v25 = vld [vmem:[#allocation26 + $0x198] sm:$0xff]  ;;  %v4385_v63 = vld [vmem:[#allocation26 + $0x80] sm:$0xff]  ;;  %vm5522_vm3 = vcmask 516096  }
0x1812   : > { %6325 = vmatpush3.msra.mxu1 %v4384_v42  ;;  %6361 = vmatprep.subr.mxu0 %v4431_v43  ;;  %v4372_v29 = vld [vmem:[#allocation26 + $0x18] sm:$0xff]  ;;  %v4401_v43 = vld [vmem:[#allocation26 + $0x100] sm:$0xff] }
0x1813   : > { %6326 = vmatprep.subr.mxu1 %v4399_v44  ;;  %6362 = vmatpush3.msra.mxu0 %v4415_v46  ;;  %v4369_v44 = vld [vmem:[#allocation26] sm:$0xff] }
0x1814   : > { %6327 = vmatpush3.msra.mxu1 %v4383_v47  ;;  %6363 = vmatprep.subr.mxu0 %v4430_v48 }
0x1815   : > { %6328 = vmatprep.subr.mxu1 %v4398_v49  ;;  %6364 = vmatpush3.msra.mxu0 %v4414_v50 }
0x1816   : > { %6329 = vmatpush3.msra.mxu1 %v4382_v51  ;;  %6365 = vmatprep.subr.mxu0 %v4429_v52 }
0x1817   : > { %6330 = vmatprep.subr.mxu1 %v4397_v53  ;;  %6366 = vmatpush3.msra.mxu0 %v4413_v54 }
0x1818   : > { %6331 = vmatpush3.msra.mxu1 %v4381_v55  ;;  %6367 = vmatprep.subr.mxu0 %v4428_v57 }
0x1819   : > { %6332 = vmatprep.subr.mxu1 %v4396_v58  ;;  %6368 = vmatpush3.msra.mxu0 %v4412_v56  ;;  %v4837_v56 = vld [vmem:[#allocation28 + $0x38] sm:$0xff] }
0x181a   : > { %6333 = vmatpush3.msra.mxu1 %v4380_v59  ;;  %6369 = vmatprep.subr.mxu0 %v4427_v60 }
0x181b   : > { %6334 = vmatprep.subr.mxu1 %v4395_v0  ;;  %6370 = vmatpush3.msra.mxu0 %v4411_v1  ;;  %v4440_v0 = vld [vmem:[#allocation26 + $0x238] sm:$0xff]  ;;  %v4836_v1 = vld [vmem:[#allocation28 + $0x30] sm:$0xff] }
0x181c   : > { %6335 = vmatpush3.msra.mxu1 %v4379_v2  ;;  %6371 = vmatprep.subr.mxu0 %v4426_v5  ;;  %v4439_v2 = vld [vmem:[#allocation26 + $0x230] sm:$0xff]  ;;  %v4835_v5 = vld [vmem:[#allocation28 + $0x28] sm:$0xff] }
0x181d   : > { %6336 = vmatprep.subr.mxu1 %v4394_v6  ;;  %6372 = vmatpush3.msra.mxu0 %v4410_v7  ;;  %v4438_v6 = vld [vmem:[#allocation26 + $0x228] sm:$0xff]  ;;  %v4834_v7 = vld [vmem:[#allocation28 + $0x20] sm:$0xff] }
0x181e   : > { %6337 = vmatpush3.msra.mxu1 %v4378_v8  ;;  %6373 = vmatprep.subr.mxu0 %v4425_v9  ;;  %v4437_v8 = vld [vmem:[#allocation26 + $0x220] sm:$0xff]  ;;  %v4833_v9 = vld [vmem:[#allocation28 + $0x18] sm:$0xff] }
0x181f   : > { %6338 = vmatprep.subr.mxu1 %v4393_v61  ;;  %6374 = vmatpush3.msra.mxu0 %v4409_v4  ;;  %v4436_v61 = vld [vmem:[#allocation26 + $0x218] sm:$0xff]  ;;  %v4832_v4 = vld [vmem:[#allocation28 + $0x10] sm:$0xff] }
0x1820   : > { %6339 = vmatpush3.msra.mxu1 %v4377_v10  ;;  %6375 = vmatprep.subr.mxu0 %v4424_v11  ;;  %v4435_v10 = vld [vmem:[#allocation26 + $0x210] sm:$0xff]  ;;  %v4831_v11 = vld [vmem:[#allocation28 + $0x8] sm:$0xff] }
0x1821   : > { %6340 = vmatprep.subr.mxu1 %v4392_v12  ;;  %6376 = vmatpush3.msra.mxu0 %v4408_v14  ;;  %v4434_v12 = vld [vmem:[#allocation26 + $0x208] sm:$0xff]  ;;  %v4830_v14 = vld [vmem:[#allocation28] sm:$0xff] }
0x1822   : > { %6341 = vmatpush3.msra.mxu1 %v4376_v16  ;;  %6377 = vmatprep.subr.mxu0 %v4423_v17  ;;  %v4433_v16 = vld [vmem:[#allocation26 + $0x200] sm:$0xff] }
0x1823   : > { %6342 = vmatprep.subr.mxu1 %v4391_v15  ;;  %6378 = vmatpush3.msra.mxu0 %v4407_v19 }
0x1824   : > { %6343 = vmatpush3.msra.mxu1 %v4375_v20  ;;  %6379 = vmatprep.subr.mxu0 %v4422_v21 }
0x1825   : > { %6344 = vmatprep.subr.mxu1 %v4390_v24  ;;  %6380 = vmatpush3.msra.mxu0 %v4406_v27  ;;  %v4441_v24 = vld [vmem:[%s9211_s23] sm:$0x1] }
0x1826   : > { %6345 = vmatpush3.msra.mxu1 %v4374_v37  ;;  %6381 = vmatprep.subr.mxu0 %v4421_v62 }
0x1827   : > { %6346 = vmatprep.subr.mxu1 %v4389_v13  ;;  %6382 = vmatpush3.msra.mxu0 %v4405_v23  ;;  %v4838_v13 = vld [vmem:[%s9212_s17] sm:$0x1] }
0x1828   : > { %6347 = vmatpush3.msra.mxu1 %v4373_v18  ;;  %6383 = vmatprep.subr.mxu0 %v4420_v25 }
0x1829   : > { %6348 = vmatprep.subr.mxu1 %v4388_v26  ;;  %6384 = vmatpush3.msra.mxu0 %v4404_v28 }
0x182a   : > { %6349 = vmatpush3.msra.mxu1 %v4372_v29  ;;  %v4954_v29 = vld [vmem:[#allocation29 + $0xf8] sm:$0xff] }
0x18d0   : > { %v4583_v30 = vpop.f32.mrf.mxu0 }
0x18d1   : > { %v6304_v31 = vpop.f32.mrf.mxu1 }
0x18d2   : > { %v6791_v32 = vpop.f32.mrf.mxu0 }
0x18d3   : > { %v6305_v34 = vpop.f32.mrf.mxu1  ;;  %v4403_v32 = vld [vmem:[#allocation26 + $0x110] sm:$0xff] }
0x18d4   : > { %v6306_v35 = vadd.f32 %v6305_v34, %v6304_v31  ;;  %v4387_v31 = vld [vmem:[#allocation26 + $0x90] sm:$0xff]  ;;  %v4418_v34 = vld [vmem:[#allocation26 + $0x188] sm:$0xff] }
0x18d5   : > { %6350 = vmatprep.subr.mxu1 %v4387_v31 }
0x18d6   : > { %v4514_v36 = vadd.f32 %v6306_v35, %v4368_v33  ;;  %v4371_v33 = vld [vmem:[#allocation26 + $0x10] sm:$0xff]  ;;  %v4386_v35 = vld [vmem:[#allocation26 + $0x88] sm:$0xff] }
0x18d7   : > { %6351 = vmatpush3.msra.mxu1 %v4371_v33  ;;  %v4953_v33 = vld [vmem:[#allocation29 + $0xf0] sm:$0xff] }
0x18d8   : > { %v4584_v38 = vadd.f32 %v4583_v30, %v4514_v36  ;;  %v4419_v30 = vld [vmem:[#allocation26 + $0x190] sm:$0xff]  ;;  %v4402_v36 = vld [vmem:[#allocation26 + $0x108] sm:$0xff]  ;;  %6352 = vmatprep.subr.mxu1 %v4386_v35 }
0x18d9   : > { %6385 = vmatprep.subr.mxu0 %v4419_v30  ;;  %6353 = vmatpush3.msra.mxu1 %v4370_v40  ;;  %v4938_v30 = vld [vmem:[#allocation29 + $0x78] sm:$0xff]  ;;  %v4952_v40 = vld [vmem:[#allocation29 + $0xe8] sm:$0xff] }
0x18da   : > { %v4587_v45 = vmax.f32 %v4584_v38, 0.0  ;;  %6386 = vmatpush3.msra.mxu0 %v4403_v32  ;;  %v4596_v38 = vrot.slane %v7821_v3, 7  ;;  %6354 = vmatprep.subr.mxu1 %v4385_v63  ;;  %v4970_v32 = vld [vmem:[#allocation29 + $0x178] sm:$0xff]  ;;  %v4936_v63 = vld [vmem:[#allocation29 + $0x68] sm:$0xff] }
0x18db   : > { %6387 = vmatprep.subr.mxu0 %v4418_v34  ;;  %6355 = vmatpush3.msra.mxu1 %v4369_v44  ;;  %v4985_v34 = vld [vmem:[#allocation29 + $0x1f0] sm:$0xff]  ;;  %v4951_v44 = vld [vmem:[#allocation29 + $0xe0] sm:$0xff] }
0x18dc   : > { %4589 = vrot.lane.b32.xlu0 %v4587_v45, %s7834_s1  ;;  %6388 = vmatpush3.msra.mxu0 %v4402_v36  ;;  %v4600_v42 = vsel %vm1613_vm4, 0.0, %v4596_v38  ;;  %v4937_v36 = vld [vmem:[#allocation29 + $0x70] sm:$0xff] }
0x18dd   : > { %6389 = vmatprep.subr.mxu0 %v4417_v41  ;;  %v8995_v47 = vsel %vm1615_vm5, %v4600_v42, 0.0  ;;  %6792 = vmatprep.subr.mxu1 %v7821_v3  ;;  %v4969_v38 = vld [vmem:[#allocation29 + $0x170] sm:$0xff]  ;;  %v4984_v41 = vld [vmem:[#allocation29 + $0x1e8] sm:$0xff] }
0x18de   : > { %6390 = vmatpush3.msra.mxu0 %v4401_v43  ;;  %v4606_v50 = vrot.slane %v8995_v47, 1  ;;  %v9023_v17 = vrot.slane %v8995_v47, 2  ;;  %v4968_v43 = vld [vmem:[#allocation29 + $0x168] sm:$0xff] }
0x18df   : > { %6811 = vmatprep.subr.mxu0 %v7821_v3 }
0x194e   : > { %v4590_v45 = vpop.permute.xlu0 %4589 }
0x194f   : > { %v4592_v46 = vsel %vm2697_vm8, 0.0, %v4590_v45  ;;  %v4983_v45 = vld [vmem:[#allocation29 + $0x1e0] sm:$0xff] }
0x1950   : > { %v4595_v48 = vrot.slane %v4592_v46, 7  ;;  %v4935_v46 = vld [vmem:[#allocation29 + $0x60] sm:$0xff] }
0x1952   : > { %v4599_v49 = vsel %vm1613_vm4, 0.0, %v4595_v48  ;;  %v4967_v48 = vld [vmem:[#allocation29 + $0x160] sm:$0xff] }
0x1953   : > { %v4601_v51 = vsel %vm1615_vm5, %v4599_v49, 0.0 }
0x1954   : > { %v4605_v52 = vrot.slane %v4601_v51, 1  ;;  %v4614_v53 = vrot.slane %v4601_v51, 2  ;;  %v4934_v51 = vld [vmem:[#allocation29 + $0x58] sm:$0xff] }
0x1956   : > { %4754 = vmatprep.mubr.f32.mxu0 %v4614_v53  ;;  %v7157_v54 = vpack.i.bf16 %v4606_v50, %v4605_v52  ;;  %v4982_v50 = vld [vmem:[#allocation29 + $0x1d8] sm:$0xff]  ;;  %v4949_v53 = vld [vmem:[#allocation29 + $0xd0] sm:$0xff] }
0x1957   : > { %v4966_v52 = vld [vmem:[#allocation29 + $0x158] sm:$0xff] }
0x1958   : > { %7158 = vrot.lane.b32.xlu1 %v7157_v54, %s7834_s1  ;;  %v4981_v54 = vld [vmem:[#allocation29 + $0x1d0] sm:$0xff] }
0x19ca   : > { %v7159_v55 = vpop.permute.xlu1 %7158 }
0x19cb   : > { %v9002_v57 = vunpack.i.h.bf16 %v7159_v55  ;;  %v7160_v58 = vunpack.i.l.bf16 %v7159_v55  ;;  %v4933_v55 = vld [vmem:[#allocation29 + $0x50] sm:$0xff] }
0x19cd   : > { %v4617_v59 = vsel %vm2697_vm8, %v8995_v47, %v7160_v58  ;;  %v4611_v60 = vsel %vm2697_vm8, %v7160_v58, %v9002_v57  ;;  %v4965_v58 = vld [vmem:[#allocation29 + $0x150] sm:$0xff] }
0x19ce   : > { %4684 = vmatprep.mubr.f32.mxu1 %v4617_v59  ;;  %4755 = vmatmul.mubr.f32.vlgmr.msra.gmra.mxu0 %v4611_v60  ;;  %v4980_v59 = vld [vmem:[#allocation29 + $0x1c8] sm:$0xff] }
0x19cf   : > { %6812 = vmatpush3.msra.mxu0 %v4837_v56  ;;  %5892 = vmatmul.mubr.msk.f32.vlgmr.msra.gmra.mxu1 %vm1615_vm5, %v4599_v49  ;;  %v4950_v49 = vld [vmem:[#allocation29 + $0xd8] sm:$0xff]  ;;  %v4948_v56 = vld [vmem:[#allocation29 + $0xc8] sm:$0xff] }
0x19d0   : > { %6793 = vmatpush3.msra.mxu1 %v4440_v0  ;;  %6813 = vmatprep.subr.mxu0 %v7821_v3  ;;  %v4932_v60 = vld [vmem:[#allocation29 + $0x48] sm:$0xff] }
0x19d1   : > { %6794 = vmatprep.subr.mxu1 %v7821_v3  ;;  %6814 = vmatpush3.msra.mxu0 %v4836_v1  ;;  %v4964_v0 = vld [vmem:[#allocation29 + $0x148] sm:$0xff]  ;;  %v4947_v1 = vld [vmem:[#allocation29 + $0xc0] sm:$0xff] }
0x19d2   : > { %6795 = vmatpush3.msra.mxu1 %v4439_v2  ;;  %6815 = vmatprep.subr.mxu0 %v7821_v3  ;;  %v4979_v2 = vld [vmem:[#allocation29 + $0x1c0] sm:$0xff] }
0x19d3   : > { %6796 = vmatprep.subr.mxu1 %v7821_v3  ;;  %6816 = vmatpush3.msra.mxu0 %v4835_v5  ;;  %v4931_v5 = vld [vmem:[#allocation29 + $0x40] sm:$0xff] }
0x19d4   : > { %6797 = vmatpush3.msra.mxu1 %v4438_v6  ;;  %6817 = vmatprep.subr.mxu0 %v7821_v3  ;;  %v4963_v6 = vld [vmem:[#allocation29 + $0x140] sm:$0xff] }
0x19d5   : > { %6798 = vmatprep.subr.mxu1 %v7821_v3  ;;  %6818 = vmatpush3.msra.mxu0 %v4834_v7  ;;  %v4946_v7 = vld [vmem:[#allocation29 + $0xb8] sm:$0xff] }
0x19d6   : > { %6799 = vmatpush3.msra.mxu1 %v4437_v8  ;;  %6819 = vmatprep.subr.mxu0 %v7821_v3  ;;  %v4978_v8 = vld [vmem:[#allocation29 + $0x1b8] sm:$0xff] }
0x19d7   : > { %6800 = vmatprep.subr.mxu1 %v7821_v3  ;;  %6820 = vmatpush3.msra.mxu0 %v4833_v9  ;;  %v4930_v9 = vld [vmem:[#allocation29 + $0x38] sm:$0xff] }
0x19d8   : > { %6801 = vmatpush3.msra.mxu1 %v4436_v61  ;;  %6821 = vmatprep.subr.mxu0 %v7821_v3  ;;  %v4962_v61 = vld [vmem:[#allocation29 + $0x138] sm:$0xff] }
0x19d9   : > { %6802 = vmatprep.subr.mxu1 %v7821_v3  ;;  %6822 = vmatpush3.msra.mxu0 %v4832_v4  ;;  %v4945_v4 = vld [vmem:[#allocation29 + $0xb0] sm:$0xff] }
0x19da   : > { %6803 = vmatpush3.msra.mxu1 %v4435_v10  ;;  %6823 = vmatprep.subr.mxu0 %v7821_v3  ;;  %v4977_v10 = vld [vmem:[#allocation29 + $0x1b0] sm:$0xff] }
0x19db   : > { %6804 = vmatprep.subr.mxu1 %v7821_v3  ;;  %6824 = vmatpush3.msra.mxu0 %v4831_v11  ;;  %v4929_v11 = vld [vmem:[#allocation29 + $0x30] sm:$0xff] }
0x19dc   : > { %6805 = vmatpush3.msra.mxu1 %v4434_v12  ;;  %6825 = vmatprep.subr.mxu0 %v7821_v3  ;;  %v4961_v12 = vld [vmem:[#allocation29 + $0x130] sm:$0xff] }
0x19dd   : > { %6806 = vmatprep.subr.mxu1 %v7821_v3  ;;  %6826 = vmatpush3.msra.mxu0 %v4830_v14  ;;  %v4944_v14 = vld [vmem:[#allocation29 + $0xa8] sm:$0xff] }
0x19de   : > { %6827 = vmatprep.mubr.msk.f32.mxu0 %vm7832_vm0, %v7821_v3  ;;  %6807 = vmatpush3.msra.mxu1 %v4433_v16  ;;  %v4976_v16 = vld [vmem:[#allocation29 + $0x1a8] sm:$0xff] }
0x19df   : > { %6808 = vmatprep.mubr.msk.f32.mxu1 %vm7832_vm0, %v7821_v3  ;;  %6828 = vmatmul.mubr.msk.f32.vlgmr.msra.gmra.mxu0 %vm2697_vm8, %v4308_v22  ;;  %v4986_v22 = vld [vmem:[#allocation29 + $0x1f8] sm:$0xff] }
0x19e0   : > { %6809 = vmatmul.mubr.msk.f32.vlgmr.msra.gmra.mxu1 %vm2697_vm8, %v9023_v17  ;;  %6412 = vmatprep.subr.mxu1 %v4954_v29  ;;  %v4972_v29 = vld [vmem:[#allocation29 + $0x188] sm:$0xff] }
0x19e1   : > { %6447 = vmatprep.subr.mxu0 %v4986_v22  ;;  %6413 = vmatpush3.msra.mxu1 %v4938_v30  ;;  %v4924_v22 = vld [vmem:[#allocation29 + $0x8] sm:$0xff] }
0x19e2   : > { %6448 = vmatpush3.msra.mxu0 %v4970_v32  ;;  %6414 = vmatprep.subr.mxu1 %v4953_v33  ;;  %v4956_v30 = vld [vmem:[#allocation29 + $0x108] sm:$0xff]  ;;  %v4971_v32 = vld [vmem:[#allocation29 + $0x180] sm:$0xff] }
0x19e3   : > { %6449 = vmatprep.subr.mxu0 %v4985_v34  ;;  %6415 = vmatpush3.msra.mxu1 %v4937_v36  ;;  %v4923_v33 = vld [vmem:[#allocation29] sm:$0xff] }
0x19e4   : > { %6450 = vmatpush3.msra.mxu0 %v4969_v38  ;;  %6416 = vmatprep.subr.mxu1 %v4952_v40  ;;  %v4955_v34 = vld [vmem:[#allocation29 + $0x100] sm:$0xff] }
0x19e5   : > { %6451 = vmatprep.subr.mxu0 %v4984_v41  ;;  %6417 = vmatpush3.msra.mxu1 %v4936_v63 }
0x19e6   : > { %6452 = vmatpush3.msra.mxu0 %v4968_v43  ;;  %6418 = vmatprep.subr.mxu1 %v4951_v44 }
0x19e7   : > { %6453 = vmatprep.subr.mxu0 %v4983_v45  ;;  %6419 = vmatpush3.msra.mxu1 %v4935_v46 }
0x19e8   : > { %6454 = vmatpush3.msra.mxu0 %v4967_v48  ;;  %6420 = vmatprep.subr.mxu1 %v4950_v49  ;;  %v4994_v49 = vld [vmem:[#allocation29 + $0x238] sm:$0xff] }
0x19e9   : > { %6455 = vmatprep.subr.mxu0 %v4982_v50  ;;  %6421 = vmatpush3.msra.mxu1 %v4934_v51  ;;  %v4993_v50 = vld [vmem:[#allocation29 + $0x230] sm:$0xff]  ;;  %v4992_v51 = vld [vmem:[#allocation29 + $0x228] sm:$0xff] }
0x19ea   : > { %6456 = vmatpush3.msra.mxu0 %v4966_v52  ;;  %6422 = vmatprep.subr.mxu1 %v4949_v53  ;;  %v4991_v52 = vld [vmem:[#allocation29 + $0x220] sm:$0xff]  ;;  %v4990_v53 = vld [vmem:[#allocation29 + $0x218] sm:$0xff] }
0x19eb   : > { %6457 = vmatprep.subr.mxu0 %v4981_v54  ;;  %6423 = vmatpush3.msra.mxu1 %v4933_v55  ;;  %v4989_v54 = vld [vmem:[#allocation29 + $0x210] sm:$0xff]  ;;  %v4988_v55 = vld [vmem:[#allocation29 + $0x208] sm:$0xff] }
0x19ec   : > { %6458 = vmatpush3.msra.mxu0 %v4965_v58  ;;  %6424 = vmatprep.subr.mxu1 %v4948_v56  ;;  %v4987_v58 = vld [vmem:[#allocation29 + $0x200] sm:$0xff] }
0x19ed   : > { %6459 = vmatprep.subr.mxu0 %v4980_v59  ;;  %6425 = vmatpush3.msra.mxu1 %v4932_v60 }
0x19ee   : > { %6460 = vmatpush3.msra.mxu0 %v4964_v0  ;;  %6426 = vmatprep.subr.mxu1 %v4947_v1  ;;  %v4995_v1 = vld [vmem:[%s8035_s12] sm:$0x1] }
0x19ef   : > { %6461 = vmatprep.subr.mxu0 %v4979_v2  ;;  %6427 = vmatpush3.msra.mxu1 %v4931_v5 }
0x19f0   : > { %6462 = vmatpush3.msra.mxu0 %v4963_v6  ;;  %6428 = vmatprep.subr.mxu1 %v4946_v7 }
0x19f1   : > { %6463 = vmatprep.subr.mxu0 %v4978_v8  ;;  %6429 = vmatpush3.msra.mxu1 %v4930_v9  ;;  %v5027_v8 = vld [vmem:[#allocation31 + $0xf8] sm:$0xff] }
0x19f2   : > { %6464 = vmatpush3.msra.mxu0 %v4962_v61  ;;  %6430 = vmatprep.subr.mxu1 %v4945_v4  ;;  %v5059_v9 = vld [vmem:[#allocation31 + $0x1f8] sm:$0xff] }
0x19f3   : > { %6465 = vmatprep.subr.mxu0 %v4977_v10  ;;  %6431 = vmatpush3.msra.mxu1 %v4929_v11  ;;  %v5011_v61 = vld [vmem:[#allocation31 + $0x78] sm:$0xff]  ;;  %v5026_v11 = vld [vmem:[#allocation31 + $0xf0] sm:$0xff] }
0x19f4   : > { %6466 = vmatpush3.msra.mxu0 %v4961_v12  ;;  %6432 = vmatprep.subr.mxu1 %v4944_v14  ;;  %v5043_v10 = vld [vmem:[#allocation31 + $0x178] sm:$0xff]  ;;  %v5058_v12 = vld [vmem:[#allocation31 + $0x1f0] sm:$0xff] }
0x19f5   : > { %6467 = vmatprep.subr.mxu0 %v4976_v16  ;;  %v5010_v16 = vld [vmem:[#allocation31 + $0x70] sm:$0xff] }
0x1a8e   : > { %v6391_v20 = vpop.f32.mrf.mxu0 }
0x1a8f   : > { %v6356_v15 = vpop.f32.mrf.mxu1 }
0x1a90   : > { %v6392_v27 = vpop.f32.mrf.mxu0 }
0x1a91   : > { %v6357_v19 = vpop.f32.mrf.mxu1  ;;  %v6393_v62 = vadd.f32 %v6392_v27, %v6391_v20  ;;  %v4943_v20 = vld [vmem:[#allocation29 + $0xa0] sm:$0xff] }
0x1a92   : > { %v6358_v21 = vadd.f32 %v6357_v19, %v6356_v15  ;;  %v4928_v15 = vld [vmem:[#allocation29 + $0x28] sm:$0xff]  ;;  %v4959_v27 = vld [vmem:[#allocation29 + $0x120] sm:$0xff] }
0x1a93   : > { %v4960_v19 = vld [vmem:[#allocation29 + $0x128] sm:$0xff]  ;;  %6433 = vmatpush3.msra.mxu1 %v4928_v15  ;;  %v5042_v15 = vld [vmem:[#allocation31 + $0x170] sm:$0xff] }
0x1a94   : > { %v4687_v37 = vadd.f32 %v6358_v21, %v4441_v24  ;;  %v4975_v21 = vld [vmem:[#allocation29 + $0x1a0] sm:$0xff]  ;;  %6468 = vmatpush3.msra.mxu0 %v4960_v19  ;;  %6434 = vmatprep.subr.mxu1 %v4943_v20  ;;  %v5025_v19 = vld [vmem:[#allocation31 + $0xe8] sm:$0xff] }
0x1a95   : > { %v4927_v24 = vld [vmem:[#allocation29 + $0x20] sm:$0xff]  ;;  %6469 = vmatprep.subr.mxu0 %v4975_v21  ;;  %v5057_v21 = vld [vmem:[#allocation31 + $0x1e8] sm:$0xff] }
0x1a96   : > { %v4757_v18 = vadd.f32 %v6393_v62, %v4687_v37  ;;  %v4942_v37 = vld [vmem:[#allocation29 + $0x98] sm:$0xff]  ;;  %6435 = vmatpush3.msra.mxu1 %v4927_v24  ;;  %6470 = vmatpush3.msra.mxu0 %v4959_v27  ;;  %v5009_v24 = vld [vmem:[#allocation31 + $0x68] sm:$0xff] }
0x1a97   : > { %v4974_v62 = vld [vmem:[#allocation29 + $0x198] sm:$0xff]  ;;  %6436 = vmatprep.subr.mxu1 %v4942_v37  ;;  %v5041_v37 = vld [vmem:[#allocation31 + $0x168] sm:$0xff] }
0x1a98   : > { %6471 = vmatprep.subr.mxu0 %v4974_v62  ;;  %v5024_v62 = vld [vmem:[#allocation31 + $0xe0] sm:$0xff] }
0x1a9f   : > { %v4907_v23 = vpop.f32.mrf.mxu0 }
0x1aa0   : > { %v4908_v25 = vadd.f32 %v4907_v23, %v4838_v13  ;;  %v4826_v26 = vpop.f32.mrf.mxu1  ;;  %v4926_v13 = vld [vmem:[#allocation29 + $0x18] sm:$0xff] }
0x1aa1   : > { %v4827_v28 = vadd.f32 %v4826_v26, %v4757_v18  ;;  %v6829_v39 = vpop.f32.mrf.mxu0  ;;  %v4958_v23 = vld [vmem:[#allocation29 + $0x118] sm:$0xff]  ;;  %v4941_v18 = vld [vmem:[#allocation29 + $0x90] sm:$0xff]  ;;  %6437 = vmatpush3.msra.mxu1 %v4926_v13  ;;  %v5056_v13 = vld [vmem:[#allocation31 + $0x1e0] sm:$0xff] }
0x1aa2   : > { %v6810_v31 = vpop.f32.mrf.mxu1  ;;  %v4925_v26 = vld [vmem:[#allocation29 + $0x10] sm:$0xff]  ;;  %v4940_v39 = vld [vmem:[#allocation29 + $0x88] sm:$0xff]  ;;  %6472 = vmatpush3.msra.mxu0 %v4958_v23  ;;  %6438 = vmatprep.subr.mxu1 %v4941_v18  ;;  %v5008_v23 = vld [vmem:[#allocation31 + $0x60] sm:$0xff] }
0x1aa3   : > { %v9037_v35 = vadd.f32 %v4908_v25, %v4827_v28  ;;  %v4973_v25 = vld [vmem:[#allocation29 + $0x190] sm:$0xff]  ;;  %6439 = vmatpush3.msra.mxu1 %v4925_v26  ;;  %v4939_v31 = vld [vmem:[#allocation29 + $0x80] sm:$0xff]  ;;  %v5055_v26 = vld [vmem:[#allocation31 + $0x1d8] sm:$0xff] }
0x1aa4   : > { %v4957_v28 = vld [vmem:[#allocation29 + $0x110] sm:$0xff]  ;;  %6473 = vmatprep.subr.mxu0 %v4973_v25  ;;  %6440 = vmatprep.subr.mxu1 %v4940_v39  ;;  %v5040_v18 = vld [vmem:[#allocation31 + $0x160] sm:$0xff]  ;;  %v5023_v25 = vld [vmem:[#allocation31 + $0xd8] sm:$0xff] }
0x1aa5   : > { %v4912_v42 = vmax.f32 %v9037_v35, 0.0  ;;  %6474 = vmatpush3.msra.mxu0 %v4957_v28  ;;  %6441 = vmatpush3.msra.mxu1 %v4924_v22  ;;  %v5007_v28 = vld [vmem:[#allocation31 + $0x58] sm:$0xff]  ;;  %v5054_v22 = vld [vmem:[#allocation31 + $0x1d0] sm:$0xff] }
0x1aa6   : > { %6475 = vmatprep.subr.mxu0 %v4972_v29  ;;  %6442 = vmatprep.subr.mxu1 %v4939_v31  ;;  %v5039_v39 = vld [vmem:[#allocation31 + $0x158] sm:$0xff]  ;;  %v5022_v29 = vld [vmem:[#allocation31 + $0xd0] sm:$0xff] }
0x1aa7   : > { %4914 = vrot.lane.b32.xlu0 %v4912_v42, %s7834_s1  ;;  %6476 = vmatpush3.msra.mxu0 %v4956_v30  ;;  %v5006_v30 = vld [vmem:[#allocation31 + $0x50] sm:$0xff] }
0x1aa8   : > { %6477 = vmatprep.subr.mxu0 %v4971_v32  ;;  %6443 = vmatpush3.msra.mxu1 %v4923_v33  ;;  %v5038_v31 = vld [vmem:[#allocation31 + $0x150] sm:$0xff]  ;;  %v5021_v32 = vld [vmem:[#allocation31 + $0xc8] sm:$0xff] }
0x1aa9   : > { %6478 = vmatpush3.msra.mxu0 %v4955_v34  ;;  %6830 = vmatprep.subr.mxu1 %v7821_v3  ;;  %v5053_v33 = vld [vmem:[#allocation31 + $0x1c8] sm:$0xff] }
0x1aaa   : > { %6491 = vmatprep.subr.mxu0 %v5027_v8  ;;  %v5005_v34 = vld [vmem:[#allocation31 + $0x48] sm:$0xff]  ;;  %v4998_v8 = vld [vmem:[#allocation31 + $0x10] sm:$0xff] }
0x1b19   : > { %v4915_v36 = vpop.permute.xlu0 %4914 }
0x1b1a   : > { %v4917_v38 = vsel %vm2697_vm8, 0.0, %v4915_v36  ;;  %v5037_v36 = vld [vmem:[#allocation31 + $0x148] sm:$0xff] }
0x1b1b   : > { %v4919_v40 = vrot.slane %v4917_v38, 7  ;;  %v5020_v38 = vld [vmem:[#allocation31 + $0xc0] sm:$0xff] }
0x1b1d   : > { %v4921_v41 = vsel %vm1613_vm4, 0.0, %v4919_v40  ;;  %v5052_v40 = vld [vmem:[#allocation31 + $0x1c0] sm:$0xff] }
0x1b1e   : > { %v4922_v63 = vsel %vm1615_vm5, %v4921_v41, 0.0 }
0x1b1f   : > { %v5076_v43 = vrot.slane %v4922_v63, 2  ;;  %v5070_v44 = vrot.slane %v4922_v63, 1  ;;  %v5036_v63 = vld [vmem:[#allocation31 + $0x140] sm:$0xff] }
0x1b21   : > { %5213 = vmatprep.mubr.f32.mxu0 %v5076_v43  ;;  %5071 = vrot.lane.b32.xlu1 %v5070_v44, %s7834_s1  ;;  %v5019_v43 = vld [vmem:[#allocation31 + $0xb8] sm:$0xff] }
0x1b22   : > { %v5051_v44 = vld [vmem:[#allocation31 + $0x1b8] sm:$0xff] }
0x1b93   : > { %v5072_v45 = vpop.permute.xlu1 %5071 }
0x1b94   : > { %v5073_v46 = vsel %vm2697_vm8, %v5072_v45, %v9002_v57  ;;  %v5078_v48 = vsel %vm2697_vm8, %v8995_v47, %v5072_v45  ;;  %v5003_v45 = vld [vmem:[#allocation31 + $0x38] sm:$0xff] }
0x1b95   : > { %5143 = vmatprep.mubr.f32.mxu1 %v5078_v48  ;;  %5214 = vmatmul.mubr.f32.vlgmr.msra.gmra.mxu0 %v5073_v46  ;;  %v5035_v46 = vld [vmem:[#allocation31 + $0x138] sm:$0xff]  ;;  %v5018_v48 = vld [vmem:[#allocation31 + $0xb0] sm:$0xff] }
0x1b96   : > { %5895 = vmatmul.mubr.msk.f32.vlgmr.msra.gmra.mxu1 %vm1615_vm5, %v4921_v41  ;;  %6492 = vmatpush3.msra.mxu0 %v5011_v61  ;;  %v5004_v41 = vld [vmem:[#allocation31 + $0x40] sm:$0xff]  ;;  %v5013_v61 = vld [vmem:[#allocation31 + $0x88] sm:$0xff] }
0x1b97   : > { %6831 = vmatpush3.msra.mxu1 %v4994_v49  ;;  %6846 = vmatprep.mubr.msk.f32.mxu1 %vm7832_vm0, %v7821_v3  ;;  %v5050_v49 = vld [vmem:[#allocation31 + $0x1b0] sm:$0xff] }
0x1b98   : > { %6832 = vmatprep.subr.mxu1 %v7821_v3  ;;  %6493 = vmatprep.subr.mxu0 %v5026_v11  ;;  %v5029_v11 = vld [vmem:[#allocation31 + $0x108] sm:$0xff] }
0x1b99   : > { %6833 = vmatpush3.msra.mxu1 %v4993_v50  ;;  %6494 = vmatpush3.msra.mxu0 %v5010_v16  ;;  %v5002_v50 = vld [vmem:[#allocation31 + $0x30] sm:$0xff]  ;;  %v4996_v16 = vld [vmem:[#allocation31] sm:$0xff] }
0x1b9a   : > { %6834 = vmatprep.subr.mxu1 %v7821_v3  ;;  %6495 = vmatprep.subr.mxu0 %v5025_v19 }
0x1b9b   : > { %6835 = vmatpush3.msra.mxu1 %v4992_v51  ;;  %6496 = vmatpush3.msra.mxu0 %v5009_v24  ;;  %v5034_v51 = vld [vmem:[#allocation31 + $0x130] sm:$0xff] }
0x1b9c   : > { %6836 = vmatprep.subr.mxu1 %v7821_v3  ;;  %6497 = vmatprep.subr.mxu0 %v5024_v62 }
0x1b9d   : > { %6837 = vmatpush3.msra.mxu1 %v4991_v52  ;;  %6498 = vmatpush3.msra.mxu0 %v5008_v23  ;;  %v5017_v52 = vld [vmem:[#allocation31 + $0xa8] sm:$0xff] }
0x1b9e   : > { %6838 = vmatprep.subr.mxu1 %v7821_v3  ;;  %6499 = vmatprep.subr.mxu0 %v5023_v25  ;;  %v5067_v25 = vld [vmem:[#allocation31 + $0x238] sm:$0xff] }
0x1b9f   : > { %6839 = vmatpush3.msra.mxu1 %v4990_v53  ;;  %6500 = vmatpush3.msra.mxu0 %v5007_v28  ;;  %v5049_v53 = vld [vmem:[#allocation31 + $0x1a8] sm:$0xff] }
0x1ba0   : > { %6840 = vmatprep.subr.mxu1 %v7821_v3  ;;  %6501 = vmatprep.subr.mxu0 %v5022_v29  ;;  %v5065_v28 = vld [vmem:[#allocation31 + $0x228] sm:$0xff] }
0x1ba1   : > { %6841 = vmatpush3.msra.mxu1 %v4989_v54  ;;  %6502 = vmatpush3.msra.mxu0 %v5006_v30  ;;  %v5001_v54 = vld [vmem:[#allocation31 + $0x28] sm:$0xff] }
0x1ba2   : > { %6842 = vmatprep.subr.mxu1 %v7821_v3  ;;  %6503 = vmatprep.subr.mxu0 %v5021_v32  ;;  %v5061_v29 = vld [vmem:[#allocation31 + $0x208] sm:$0xff] }
0x1ba3   : > { %6843 = vmatpush3.msra.mxu1 %v4988_v55  ;;  %6504 = vmatpush3.msra.mxu0 %v5005_v34  ;;  %v5033_v55 = vld [vmem:[#allocation31 + $0x128] sm:$0xff]  ;;  %v5068_v34 = vld [vmem:[%s8045_s27] sm:$0x1] }
0x1ba4   : > { %6844 = vmatprep.subr.mxu1 %v7821_v3  ;;  %6505 = vmatprep.subr.mxu0 %v5020_v38 }
0x1ba5   : > { %6845 = vmatpush3.msra.mxu1 %v4987_v58  ;;  %6506 = vmatpush3.msra.mxu0 %v5004_v41  ;;  %v5016_v58 = vld [vmem:[#allocation31 + $0xa0] sm:$0xff] }
0x1ba6   : > { %6847 = vmatmul.mubr.msk.f32.vlgmr.msra.gmra.mxu1 %vm2697_vm8, %v9023_v17  ;;  %6526 = vmatprep.subr.mxu1 %v5059_v9  ;;  %v5030_v9 = vld [vmem:[#allocation31 + $0x110] sm:$0xff] }
0x1ba7   : > { %6527 = vmatpush3.msra.mxu1 %v5043_v10  ;;  %6507 = vmatprep.subr.mxu0 %v5019_v43  ;;  %v4997_v10 = vld [vmem:[#allocation31 + $0x8] sm:$0xff] }
0x1ba8   : > { %6528 = vmatprep.subr.mxu1 %v5058_v12  ;;  %6508 = vmatpush3.msra.mxu0 %v5003_v45  ;;  %v5012_v12 = vld [vmem:[#allocation31 + $0x80] sm:$0xff] }
0x1ba9   : > { %6529 = vmatpush3.msra.mxu1 %v5042_v15  ;;  %6509 = vmatprep.subr.mxu0 %v5018_v48  ;;  %v5028_v15 = vld [vmem:[#allocation31 + $0x100] sm:$0xff] }
0x1baa   : > { %6530 = vmatprep.subr.mxu1 %v5057_v21  ;;  %6510 = vmatpush3.msra.mxu0 %v5002_v50 }
0x1bab   : > { %6531 = vmatpush3.msra.mxu1 %v5041_v37  ;;  %6511 = vmatprep.subr.mxu0 %v5017_v52 }
0x1bac   : > { %6532 = vmatprep.subr.mxu1 %v5056_v13  ;;  %6512 = vmatpush3.msra.mxu0 %v5001_v54 }
0x1bad   : > { %6533 = vmatpush3.msra.mxu1 %v5040_v18  ;;  %6513 = vmatprep.subr.mxu0 %v5016_v58 }
0x1bae   : > { %6534 = vmatprep.subr.mxu1 %v5055_v26  ;;  %v5066_v26 = vld [vmem:[#allocation31 + $0x230] sm:$0xff] }
0x1baf   : > { %6535 = vmatpush3.msra.mxu1 %v5039_v39  ;;  %v5062_v39 = vld [vmem:[#allocation31 + $0x210] sm:$0xff] }
0x1bb0   : > { %6536 = vmatprep.subr.mxu1 %v5054_v22  ;;  %v5060_v22 = vld [vmem:[#allocation31 + $0x200] sm:$0xff] }
0x1bb1   : > { %6537 = vmatpush3.msra.mxu1 %v5038_v31 }
0x1bb2   : > { %6538 = vmatprep.subr.mxu1 %v5053_v33 }
0x1bb3   : > { %6539 = vmatpush3.msra.mxu1 %v5037_v36 }
0x1bb4   : > { %6540 = vmatprep.subr.mxu1 %v5052_v40 }
0x1bb5   : > { %6541 = vmatpush3.msra.mxu1 %v5036_v63 }
0x1bb6   : > { %6542 = vmatprep.subr.mxu1 %v5051_v44 }
0x1bb7   : > { %6543 = vmatpush3.msra.mxu1 %v5035_v46 }
0x1bb8   : > { %6544 = vmatprep.subr.mxu1 %v5050_v49 }
0x1bb9   : > { %6545 = vmatpush3.msra.mxu1 %v5034_v51 }
0x1bba   : > { %6546 = vmatprep.subr.mxu1 %v5049_v53 }
0x1bbb   : > { %6547 = vmatpush3.msra.mxu1 %v5033_v55 }
0x1c55   : > { %v6479_v60 = vpop.f32.mrf.mxu0 }
0x1c56   : > { %v6444_v56 = vpop.f32.mrf.mxu1 }
0x1c57   : > { %v6480_v2 = vpop.f32.mrf.mxu0 }
0x1c58   : > { %v6445_v59 = vpop.f32.mrf.mxu1  ;;  %v6481_v6 = vadd.f32 %v6480_v2, %v6479_v60  ;;  %v5032_v60 = vld [vmem:[#allocation31 + $0x120] sm:$0xff]  ;;  %v4999_v2 = vld [vmem:[#allocation31 + $0x18] sm:$0xff] }
0x1c59   : > { %v6446_v0 = vadd.f32 %v6445_v59, %v6444_v56  ;;  %v5048_v56 = vld [vmem:[#allocation31 + $0x1a0] sm:$0xff] }
0x1c5a   : > { %v5000_v59 = vld [vmem:[#allocation31 + $0x20] sm:$0xff]  ;;  %6548 = vmatprep.subr.mxu1 %v5048_v56 }
0x1c5b   : > { %v5146_v5 = vadd.f32 %v6446_v0, %v4995_v1  ;;  %v5015_v0 = vld [vmem:[#allocation31 + $0x98] sm:$0xff]  ;;  %6514 = vmatpush3.msra.mxu0 %v5000_v59  ;;  %6549 = vmatpush3.msra.mxu1 %v5032_v60 }
0x1c5c   : > { %v5047_v1 = vld [vmem:[#allocation31 + $0x198] sm:$0xff]  ;;  %6515 = vmatprep.subr.mxu0 %v5015_v0 }
0x1c5d   : > { %v5216_v7 = vadd.f32 %v6481_v6, %v5146_v5  ;;  %v5031_v5 = vld [vmem:[#allocation31 + $0x118] sm:$0xff]  ;;  %v5014_v6 = vld [vmem:[#allocation31 + $0x90] sm:$0xff]  ;;  %6550 = vmatprep.subr.mxu1 %v5047_v1  ;;  %6516 = vmatpush3.msra.mxu0 %v4999_v2 }
0x1c5e   : > { %6551 = vmatpush3.msra.mxu1 %v5031_v5  ;;  %6517 = vmatprep.subr.mxu0 %v5014_v6 }
0x1c5f   : > { %6518 = vmatpush3.msra.mxu0 %v4998_v8 }
0x1c60   : > { %6519 = vmatprep.subr.mxu0 %v5013_v61 }
0x1c61   : > { %6520 = vmatpush3.msra.mxu0 %v4997_v10 }
0x1c62   : > { %6521 = vmatprep.subr.mxu0 %v5012_v12 }
0x1c63   : > { %6522 = vmatpush3.msra.mxu0 %v4996_v16 }
0x1c64   : > { %6849 = vmatprep.subr.mxu0 %v7821_v3 }
0x1c66   : > { %v5285_v4 = vpop.f32.mrf.mxu1 }
0x1c67   : > { %v5286_v14 = vadd.f32 %v5285_v4, %v5216_v7  ;;  %v5046_v7 = vld [vmem:[#allocation31 + $0x190] sm:$0xff]  ;;  %v5045_v4 = vld [vmem:[#allocation31 + $0x188] sm:$0xff] }
0x1c68   : > { %v6848_v20 = vpop.f32.mrf.mxu1  ;;  %6552 = vmatprep.subr.mxu1 %v5046_v7 }
0x1c69   : > { %v5289_v27 = vmax.f32 %v5286_v14, 0.0  ;;  %6553 = vmatpush3.msra.mxu1 %v5030_v9  ;;  %v5044_v14 = vld [vmem:[#allocation31 + $0x180] sm:$0xff] }
0x1c6a   : > { %6554 = vmatprep.subr.mxu1 %v5045_v4 }
0x1c6b   : > { %5291 = vrot.lane.b32.xlu0 %v5289_v27, %s7834_s1  ;;  %6555 = vmatpush3.msra.mxu1 %v5029_v11 }
0x1c6c   : > { %6556 = vmatprep.subr.mxu1 %v5044_v14 }
0x1c6d   : > { %6557 = vmatpush3.msra.mxu1 %v5028_v15 }
0x1cdd   : > { %v5292_v19 = vpop.permute.xlu0 %5291 }
0x1cde   : > { %v5294_v20 = vsel %vm2697_vm8, 0.0, %v5292_v19 }
0x1cdf   : > { %v5296_v21 = vrot.slane %v5294_v20, 7 }
0x1ce1   : > { %v5298_v24 = vsel %vm1613_vm4, 0.0, %v5296_v21 }
0x1ce2   : > { %v5299_v27 = vsel %vm1615_vm5, %v5298_v24, 0.0 }
0x1ce3   : > { %v5307_v37 = vrot.slane %v5299_v27, 2  ;;  %v5301_v62 = vrot.slane %v5299_v27, 1 }
0x1ce5   : > { %5444 = vmatprep.mubr.f32.mxu1 %v5307_v37  ;;  %5302 = vrot.lane.b32.xlu1 %v5301_v62, %s7834_s1  ;;  %s1505_s1 = sand.u32 1, %s7748_s10  }
0x1ce6   : > { %s1506_s2 = scalar_lea.vmem [#allocation32], %s1505_s1  ;;  %s5525_s4 = scalar_lea.sflag [#allocation4], %s1505_s1 }
0x1ce7   : > { %s5537_s26 = sshll.u32 %s1506_s2, 4  ;;  %s5538_s26 = int_to_ptr.vmem [resolvable:$true] %s5537_s26 }
0x1ce8   : > { %s7656_s0 = scalar_lea.vmem %s5538_s26, 16  ;;  %p7663_p11 = scmp.lt.s32.totalorder %s5538_s26, %s7661_s3 }
0x1ce9   : > { %p7657_p8 = scmp.ne.s32.totalorder %s5538_s26, %s7656_s0  ;;  %p7664_p1 = scmp.lt.s32.totalorder %s7662_s15, %s7656_s0 }
0x1ceb   : > { %p7658_p0 = pnand %p7657_p8, %p9213_p4  ;;  %p7665_p5 = por %p7664_p1, %p7663_p11 }
0x1ced   : > { %p7659_p6 = pneg %p7658_p0 }
0x1cef   : > { %p7666_p9 = pnand %p7665_p5, %p7659_p6 }
0x1d57   : > { %v5303_v13 = vpop.permute.xlu1 %5302 }
0x1d58   : > { %v5304_v23 = vsel %vm2697_vm8, %v5303_v13, %v9002_v57  ;;  %v5309_v18 = vsel %vm2697_vm8, %v8995_v47, %v5303_v13  ;;  %v5064_v57 = vld [vmem:[#allocation31 + $0x220] sm:$0xff]  ;;  %v5063_v47 = vld [vmem:[#allocation31 + $0x218] sm:$0xff] }
0x1d59   : > { %5374 = vmatprep.mubr.f32.mxu0 %v5309_v18  ;;  %5445 = vmatmul.mubr.f32.vlgmr.msra.gmra.mxu1 %v5304_v23 }
0x1d5a   : > { %5897 = vmatmul.mubr.msk.f32.vlgmr.msra.gmra.mxu0 %vm1615_vm5, %v5298_v24 }
0x1d5b   : > { %6850 = vmatpush3.msra.mxu0 %v5067_v25  ;;  %6865 = vmatprep.mubr.msk.f32.mxu0 %vm7832_vm0, %v7821_v3 }
0x1d5c   : > { %6851 = vmatprep.subr.mxu0 %v7821_v3 }
0x1d5d   : > { %6852 = vmatpush3.msra.mxu0 %v5066_v26 }
0x1d5e   : > { %6853 = vmatprep.subr.mxu0 %v7821_v3 }
0x1d5f   : > { %6854 = vmatpush3.msra.mxu0 %v5065_v28 }
0x1d60   : > { %6855 = vmatprep.subr.mxu0 %v7821_v3 }
0x1d61   : > { %6856 = vmatpush3.msra.mxu0 %v5064_v57 }
0x1d62   : > { %6857 = vmatprep.subr.mxu0 %v7821_v3 }
0x1d63   : > { %6858 = vmatpush3.msra.mxu0 %v5063_v47 }
0x1d64   : > { %6859 = vmatprep.subr.mxu0 %v7821_v3 }
0x1d65   : > { %6860 = vmatpush3.msra.mxu0 %v5062_v39 }
0x1d66   : > { %6861 = vmatprep.subr.mxu0 %v7821_v3 }
0x1d67   : > { %6862 = vmatpush3.msra.mxu0 %v5061_v29 }
0x1d68   : > { %6863 = vmatprep.subr.mxu0 %v7821_v3 }
0x1d69   : > { %6864 = vmatpush3.msra.mxu0 %v5060_v22 }
0x1d6a   : > { %6866 = vmatmul.mubr.msk.f32.vlgmr.msra.gmra.mxu0 %vm2697_vm8, %v9023_v17 }
0x1e19   : > { %v6558_v32 = vpop.f32.mrf.mxu1 }
0x1e1a   : > { %v6523_v30 = vpop.f32.mrf.mxu0 }
0x1e1b   : > { %v6559_v36 = vpop.f32.mrf.mxu1 }
0x1e1c   : > { %v6524_v31 = vpop.f32.mrf.mxu0  ;;  %v6560_v40 = vadd.f32 %v6559_v36, %v6558_v32 }
0x1e1d   : > { %v6525_v33 = vadd.f32 %v6524_v31, %v6523_v30 }
0x1e1f   : > { %v5377_v38 = vadd.f32 %v6525_v33, %v5068_v34 }
0x1e21   : > { %v5447_v41 = vadd.f32 %v6560_v40, %v5377_v38 }
0x1e2a   : > { %v5516_v63 = vpop.f32.mrf.mxu0 }
0x1e2b   : > { %v5517_v43 = vadd.f32 %v5516_v63, %v5447_v41 }
0x1e2c   : > { %v6867_v3 = vpop.f32.mrf.mxu0 }
0x1e2d   : > { %v5520_v17 = vadd.f32 %v5517_v43, %v4912_v42 }
0x1e2f   : > { %v5521_v44 = vmax.f32 %v5520_v17, 0.0 }
0x1e31   : > { %5523 = vst.msk [vmem:[%s1506_s2] sm:$0x1] %vm5522_vm3, %v5521_v44 }
0x1e32   : > { %7669 = shalt.err (!%p7666_p9)
}
0x1e33   : > { %s7670_s16 = scalar_lea.hbm %s5535_s18, 16  ;;  %s7674_s23 = scalar_lea.hbm %s8050_s19, 32 }
0x1e34   : > { %p7671_p13 = scmp.ne.s32.totalorder %s5535_s18, %s7670_s16  ;;  %p7675_p7 = scmp.lt.s32.totalorder %s5535_s18, %s8050_s19 }
0x1e35   : > { %p7676_p12 = scmp.lt.s32.totalorder %s7674_s23, %s7670_s16 }
0x1e36   : > { %p7672_p2 = pnand %p7671_p13, %p9213_p4 }
0x1e37   : > { %p7677_p10 = por %p7676_p12, %p7675_p7 }
0x1e38   : > { %p7673_p3 = pneg %p7672_p2 }
0x1e3a   : > { %p7678_p8 = pnand %p7677_p10, %p7673_p3 }
0x1e3c   : > { %7681 = shalt.err (!%p7678_p8)
}
0x1e3d   : > { %6944 = dma.vmem_to_hbm [thread:$0]  (%p9213_p4), %s5538_s26, 16, %s5535_s18, %s5525_s4  }
0x1e3e PF: > { %s9214_s17 = sld [smem:[#allocation73_spill]] }
0x1e3f   : > { %s9215_s1 = sld [smem:[#allocation71_spill]] }
0x1e40   : > { %s9216_s7 = sld [smem:[#allocation76_spill]] }
0x1e44   : > { %p7046_p0 = scmp.ge.s32.totalorder %s9214_s17, 2 }
0x1e45   : > { %s5549_s2 = sand.u32 1, %s9215_s1  }
0x1e46   : > { %p9217_p6 = scmp.ne.s32.totalorder %s9216_s7, 0  ;;  %s5550_s0 = scalar_lea.sflag [#allocation4], %s5549_s2 }
0x1e48   : > { %p7005_p11 = pnand %p7046_p0, %p9217_p6 }
0x1e4a   : > { %p7006_p1 = pneg %p7005_p11 }
0x1e4c   : > { %7739 = dma.done.wait (%p7006_p1), %s5550_s0, 16  }
0x1e4d   : > { %7741 = vsyncadd (%p7006_p1), %s5550_s0, 4294967280  ;;  %s9218_s0 = sld [smem:[#allocation74_spill]]  ;;  %s9221_s7 = smov %s7748_s10 }
0x1e4e   : > { %s9219_s11 = sld [smem:[#allocation72_spill]] }
0x1e4f   : > { %s9220_s3 = sld [smem:[#allocation75_spill]] }
0x1e53   : > { %p103_p5 = scmp.ge.s32.totalorder %s9218_s0, 4  }
0x1e54   : > { %s9222_s10 = smov %s9219_s11 }
0x1e55   : > { %s9223_s11 = smov %s9220_s3  ;;  %105 = sbr.rel (!%p103_p5) target bundleno = 83 (0x53), region = 337 }
0x1e5a   :  { %5554 = vsyncpa [#allocation3], 1 }
0x1e5b   :  { %5556 = vsyncpa [#allocation3 + $0x1], 1 }
0x1e5c   :  { %5557 = vsyncpa [#allocation6], 1 }
0x1e5d   :  { %5558 = vsyncpa [#allocation9], 1 }
0x1e5e   :  { %5559 = vsyncpa [#allocation12], 1 }
0x1e5f   :  { %5560 = vsyncpa [#allocation15], 1 }
0x1e60   :  { %5561 = vsyncpa [#allocation18], 1 }
0x1e61   :  { %5562 = vsyncpa [#allocation21], 1 }
0x1e62   :  { %5563 = vsyncpa [#allocation24], 1 }
0x1e63   :  { %5564 = vsyncpa [#allocation27], 1 }
0x1e64   :  { %5565 = vsyncpa [#allocation30], 1 }
0x1e65   :  { %5566 = vsyncpa [#allocation4], 1 }
0x1e66   :  { %5568 = vsyncpa [#allocation4 + $0x1], 1 }

</bundles_post_ra>
